<compile_context>
chip_gen: v7x
topology: tpu7x:2x2x1
jax: 0.10.0
libtpu: 0.0.40
codegen_flags: <defaults>
</compile_context>

<pallas_src>
import functools
import math

import jax
import jax.numpy as jnp
from jax.experimental import pallas as pl
from jax.experimental.pallas import tpu as pltpu


def _round_up(x, m):
    return (x + m - 1) // m * m


def _cdiv(a, b):
    return -(-a // b)


# ------------------------------------------------------------------ kernel --
def _fused_mlp_kernel(x_ref, w1_ref, b1_ref, w2_ref, b2_ref, o_ref,
                      *, hid_p, epilogue_dtype):
    """One row tile of the whole MLP:
         h    = x @ W1 + b1          (W1 = [out-half | gate-half], lane-padded)
         g    = h_out * sigmoid(h_gate)     # GLU
         s    = g * sigmoid(g)              # Swish
         out  = s @ W2 + b2
    MXU matmuls with f32 accumulation; GLU/Swish epilogue in `epilogue_dtype`
    (bf16 on v6e/v7x), bias adds in f32."""
    x = x_ref[...]                                          # (tm, d_in_p) bf16

    # ---- layer 1: one long MXU matmul, N = 2*hid_p ----
    h = jnp.dot(x, w1_ref[...], preferred_element_type=jnp.float32)
    h = h + b1_ref[...].astype(jnp.float32)                 # (tm, 2*hid_p) f32

    # ---- GLU + Swish epilogue; split at a 128-lane-aligned boundary ----
    h_out = h[:, :hid_p].astype(epilogue_dtype)
    h_gate = h[:, hid_p:].astype(epilogue_dtype)
    g = h_out * jax.nn.sigmoid(h_gate)                      # GLU
    s = g * jax.nn.sigmoid(g)                               # Swish

    # ---- layer 2 ----
    y = jnp.dot(s.astype(w2_ref.dtype), w2_ref[...],
                preferred_element_type=jnp.float32)
    y = y + b2_ref[...].astype(jnp.float32)
    o_ref[...] = y.astype(o_ref.dtype)


# ----------------------------------------------------------- parameter prep --
def init_mlp_params(key, dims):
    """PyTorch nn.Linear default init (U(+-1/sqrt(fan_in))).
    Returns [(W, b), ...] with W already transposed to (in, out); the first
    layer has width 2*hidden (GLU)."""
    params = []
    n_layers = len(dims) - 1
    for i in range(n_layers):
        d_in, d_out = dims[i], dims[i + 1]
        width = d_out * 2 if i < n_layers - 1 else d_out
        key, kw, kb = jax.random.split(key, 3)
        bound = 1.0 / math.sqrt(d_in)
        w = jax.random.uniform(kw, (d_in, width), jnp.float32, -bound, bound)
        b = jax.random.uniform(kb, (width,), jnp.float32, -bound, bound)
        params.append((w, b))
    return params


def prepare_mlp_params(params, dims, compute_dtype=jnp.bfloat16):
    """ONE-TIME weight preparation (hoisted out of the forward path).

    Splits the GLU weight into (out, gate) halves, zero-pads every feature axis
    to a multiple of 128 lanes, re-concatenates layer-1 into a single
    (d_in_p, 2*hid_p) RHS so the kernel runs one long matmul, and casts matmul
    operands to `compute_dtype` (biases stay f32).  Zero padding is exact:
    padded hidden columns produce s == 0 and padded output columns are zero."""
    assert len(dims) == 3, "fused kernel covers the Block MLP: [in, hidden, out]"
    d_in, hidden, d_out = dims
    (w1, b1), (w2, b2) = params

    d_in_p = _round_up(d_in, 128)
    hid_p = _round_up(hidden, 128)
    d_out_p = _round_up(d_out, 128)

    w1o, w1g = w1[:, :hidden], w1[:, hidden:]
    b1o, b1g = b1[:hidden], b1[hidden:]

    def pad2(a, rows, cols):
        return jnp.pad(a, ((0, rows - a.shape[0]), (0, cols - a.shape[1])))

    w1_full = jnp.concatenate(
        [pad2(w1o, d_in_p, hid_p), pad2(w1g, d_in_p, hid_p)], axis=1
    ).astype(compute_dtype)                                     # (d_in_p, 2*hid_p)
    b1_full = jnp.concatenate(
        [jnp.pad(b1o, (0, hid_p - hidden)), jnp.pad(b1g, (0, hid_p - hidden))]
    ).reshape(1, 2 * hid_p).astype(jnp.float32)
    w2_p = pad2(w2, hid_p, d_out_p).astype(compute_dtype)       # (hid_p, d_out_p)
    b2_p = jnp.pad(b2, (0, d_out_p - d_out)).reshape(1, d_out_p).astype(jnp.float32)

    return dict(w1=w1_full, b1=b1_full, w2=w2_p, b2=b2_p,
                d_in=d_in, hidden=hidden, d_out=d_out,
                d_in_p=d_in_p, hid_p=hid_p, d_out_p=d_out_p,
                compute_dtype=compute_dtype)


# ----------------------------------------------------------------- forward --
def _choose_tiling(n, tm_cap):
    """Pick (tm, steps): collapse to 1 grid step when rows fit one tile
    (single-TC v5e/v6e), otherwise the smallest EVEN step count whose tile
    fits (balanced megacore work on v7x, padding waste kept small)."""
    n16 = max(16, _round_up(n, 16))
    if n16 <= tm_cap:
        return n16, 1
    steps = 2
    while _round_up(_cdiv(n, steps), 16) > tm_cap:
        steps += 2
    return _round_up(_cdiv(n, steps), 16), steps


def mlp_forward(x, prep, *, tm_cap=1024, out_dtype=None,
                epilogue_dtype=jnp.bfloat16):
    """x: (..., d_in) -> (..., d_out).  Whole 2-layer GLU/Swish MLP as ONE
    pallas_call with VMEM-resident weights.

    `prep` comes from prepare_mlp_params (call it once, reuse every step).
    `out_dtype=jnp.bfloat16` halves the output HBM store if the consumer
    accepts bf16 (biggest win on v5e).  `epilogue_dtype=jnp.float32` can be
    used on v5e (no bf16 VPU/EUP there).  `tm_cap` may be raised to 2048 on
    v5e/v6e (128 MiB VMEM)."""
    out_dtype = out_dtype or x.dtype
    d_in, d_out = prep["d_in"], prep["d_out"]
    d_in_p, hid_p, d_out_p = prep["d_in_p"], prep["hid_p"], prep["d_out_p"]
    compute_dtype = prep["compute_dtype"]

    lead = x.shape[:-1]
    h = x.reshape(-1, d_in)
    n = h.shape[0]

    tm, steps = _choose_tiling(n, tm_cap)
    n_pad = tm * steps
    if n_pad != n or d_in_p != d_in:
        h = jnp.pad(h, ((0, n_pad - n), (0, d_in_p - d_in)))
    h = h.astype(compute_dtype)

    kernel = functools.partial(_fused_mlp_kernel, hid_p=hid_p,
                               epilogue_dtype=epilogue_dtype)
    const = lambda i: (0, 0)

    out = pl.pallas_call(
        kernel,
        out_shape=jax.ShapeDtypeStruct((n_pad, d_out_p), out_dtype),
        grid_spec=pltpu.PrefetchScalarGridSpec(
            num_scalar_prefetch=0,
            grid=(steps,),
            in_specs=[
                pl.BlockSpec((tm, d_in_p), lambda i: (i, 0)),        # x row tile
                pl.BlockSpec((d_in_p, 2 * hid_p), const),            # fused W1 (resident)
                pl.BlockSpec((1, 2 * hid_p), const),                 # fused b1
                pl.BlockSpec((hid_p, d_out_p), const),               # W2 (resident)
                pl.BlockSpec((1, d_out_p), const),                   # b2
            ],
            out_specs=pl.BlockSpec((tm, d_out_p), lambda i: (i, 0)),
        ),
        compiler_params=pltpu.CompilerParams(
            dimension_semantics=("parallel",),   # even grid -> v7x megacore sharding
            vmem_limit_bytes=32 * 1024 * 1024,   # fits scoped VMEM on v5e/v6e/v7x
        ),
    )(h, prep["w1"], prep["b1"], prep["w2"], prep["b2"])

    if n_pad != n:
        out = out[:n]                 # skip the HBM->HBM copy when not padded
    if d_out_p != d_out:
        out = out[:, :d_out]          # no-op when d_out is already 128-aligned
    return out.reshape(*lead, d_out)


# --------------------------------------------------------------- references --
def mlp_reference(x, dims, params):
    """Pure-JAX f32 reference mirroring the PyTorch MLP forward."""
    lead = x.shape[:-1]
    h = x.reshape(-1, dims[0]).astype(jnp.float32)
    n_layers = len(dims) - 1
    for i, (w, b) in enumerate(params):
        y = h @ w + b
        if i < n_layers - 1:
            half = y.shape[-1] // 2
            outs, gate = y[:, :half], y[:, half:]
            g = outs * jax.nn.sigmoid(gate)
            h = g * jax.nn.sigmoid(g)
        else:
            h = y
    return h.reshape(*lead, dims[-1])


def mlp_reference_kernel_contract(x, dims, params, epilogue_dtype=jnp.bfloat16):
    """Reference mirroring the kernel's numeric contract (bf16 matmul operands,
    f32 accumulation + bias, epilogue in `epilogue_dtype`) — isolates
    structural errors from expected rounding."""
    d_in, hidden, d_out = dims
    (w1, b1), (w2, b2) = params
    lead = x.shape[:-1]
    h = x.reshape(-1, d_in).astype(jnp.bfloat16)
    y1 = jnp.dot(h, w1.astype(jnp.bfloat16),
                 preferred_element_type=jnp.float32) + b1
    outs = y1[:, :hidden].astype(epilogue_dtype)
    gate = y1[:, hidden:].astype(epilogue_dtype)
    g = outs * jax.nn.sigmoid(gate)
    s = g * jax.nn.sigmoid(g)
    y2 = jnp.dot(s.astype(jnp.bfloat16), w2.astype(jnp.bfloat16),
                 preferred_element_type=jnp.float32) + b2
    return y2.reshape(*lead, d_out).astype(jnp.float32)


# --------------------------------------------------------------------- main --
if __name__ == "__main__":
    # Shapes implied by Block: hidden_size=128, mlp_ratio=4 -> dims [128, 512, 128].
    hidden_size, mlp_ratio = 128, 4.0
    dims = [hidden_size, int(hidden_size * mlp_ratio), hidden_size]
    batch, seq = 2, 125          # 250 rows: exercises the padded-tail path

    key = jax.random.PRNGKey(0)
    key, kx = jax.random.split(key)
    x = jax.random.normal(kx, (batch, seq, dims[0]), jnp.float32)
    params = init_mlp_params(key, dims)

    # One-time weight prep (hoisted out of the per-step forward path).
    prep = prepare_mlp_params(params, dims, compute_dtype=jnp.bfloat16)

    out = mlp_forward(x, prep)               # second call reuses prepared weights
    out = jax.block_until_ready(out)
    assert out.shape == (batch, seq, dims[-1])

    # Moderate-tolerance check vs a reference with the kernel's exact numeric
    # contract (bf16 operands, f32 accumulate, bf16 epilogue).
    ref_mirror = mlp_reference_kernel_contract(x, dims, params)
    assert jnp.allclose(out, ref_mirror, atol=2e-2, rtol=2e-2), \
        "kernel mismatch (bf16 matmul/epilogue contract)"

    # Loose check vs the full-f32 PyTorch-equivalent reference.
    ref_f32 = mlp_reference(x, dims, params)
    assert jnp.allclose(out, ref_f32, atol=5e-2, rtol=5e-2), \
        "kernel mismatch vs f32 reference"

    print("KERNEL_OK")
</pallas_src>

<mosaic_0001>
module attributes {stable_mosaic.version = 11 : i64} {
  func.func @_fused_mlp_kernel(%arg0: i32, %arg1: memref<256x128xbf16, #tpu.memory_space<vmem>>, %arg2: memref<128x1024xbf16, #tpu.memory_space<vmem>>, %arg3: memref<1x1024xf32, #tpu.memory_space<vmem>>, %arg4: memref<512x128xbf16, #tpu.memory_space<vmem>>, %arg5: memref<1x128xf32, #tpu.memory_space<vmem>>, %arg6: memref<256x128xf32, #tpu.memory_space<vmem>>) attributes {dimension_semantics = [#tpu.dimension_semantics<parallel>], iteration_bounds = array<i64: 1>, scalar_prefetch = 0 : i64, scratch_operands = 0 : i64, tpu.core_type = #tpu.core_type<tc>, window_params = [{transform_indices = @transform_0, window_bounds = array<i64: 256, 128>}, {pipeline_mode = #tpu.pipeline_mode<synchronous>, transform_indices = @transform_1, window_bounds = array<i64: 128, 1024>}, {pipeline_mode = #tpu.pipeline_mode<synchronous>, transform_indices = @transform_2, window_bounds = array<i64: 1, 1024>}, {pipeline_mode = #tpu.pipeline_mode<synchronous>, transform_indices = @transform_3, window_bounds = array<i64: 512, 128>}, {pipeline_mode = #tpu.pipeline_mode<synchronous>, transform_indices = @transform_4, window_bounds = array<i64: 1, 128>}, {transform_indices = @transform_5, window_bounds = array<i64: 256, 128>}]} {
    %c0 = arith.constant 0 : index
    %c0_0 = arith.constant 0 : index
    %0 = vector.load %arg1[%c0, %c0_0] : memref<256x128xbf16, #tpu.memory_space<vmem>>, vector<256x128xbf16>
    %c0_1 = arith.constant 0 : index
    %c0_2 = arith.constant 0 : index
    %1 = vector.load %arg2[%c0_1, %c0_2] : memref<128x1024xbf16, #tpu.memory_space<vmem>>, vector<128x1024xbf16>
    %cst = arith.constant dense<0.000000e+00> : vector<256x1024xf32>
    %2 = tpu.matmul %0, %1, %cst {dimension_numbers = #tpu.dot_dimension_numbers<[1], [0], [0], [1], [0, 0, 1, 1], [], []>} : vector<256x128xbf16>, vector<128x1024xbf16>, vector<256x1024xf32> -> vector<256x1024xf32>
    %c0_3 = arith.constant 0 : index
    %c0_4 = arith.constant 0 : index
    %3 = vector.load %arg3[%c0_3, %c0_4] : memref<1x1024xf32, #tpu.memory_space<vmem>>, vector<1x1024xf32>
    %4 = vector.broadcast %3 : vector<1x1024xf32> to vector<256x1024xf32>
    %5 = arith.addf %2, %4 : vector<256x1024xf32>
    %6 = vector.extract_strided_slice %5 {offsets = [0, 0], sizes = [256, 512], strides = [1, 1]} : vector<256x1024xf32> to vector<256x512xf32>
    %7 = arith.truncf %6 : vector<256x512xf32> to vector<256x512xbf16>
    %8 = vector.extract_strided_slice %5 {offsets = [0, 512], sizes = [256, 512], strides = [1, 1]} : vector<256x1024xf32> to vector<256x512xf32>
    %9 = arith.truncf %8 : vector<256x512xf32> to vector<256x512xbf16>
    %10 = arith.negf %9 : vector<256x512xbf16>
    %11 = math.exp %10 : vector<256x512xbf16>
    %cst_5 = arith.constant 1.000000e+00 : bf16
    %12 = vector.broadcast %cst_5 : bf16 to vector<256x512xbf16>
    %13 = arith.addf %12, %11 : vector<256x512xbf16>
    %14 = arith.divf %12, %13 : vector<256x512xbf16>
    %15 = arith.mulf %7, %14 : vector<256x512xbf16>
    %16 = arith.negf %15 : vector<256x512xbf16>
    %17 = math.exp %16 : vector<256x512xbf16>
    %cst_6 = arith.constant 1.000000e+00 : bf16
    %18 = vector.broadcast %cst_6 : bf16 to vector<256x512xbf16>
    %19 = arith.addf %18, %17 : vector<256x512xbf16>
    %20 = arith.divf %18, %19 : vector<256x512xbf16>
    %21 = arith.mulf %15, %20 : vector<256x512xbf16>
    %c0_7 = arith.constant 0 : index
    %c0_8 = arith.constant 0 : index
    %22 = vector.load %arg4[%c0_7, %c0_8] : memref<512x128xbf16, #tpu.memory_space<vmem>>, vector<512x128xbf16>
    %cst_9 = arith.constant dense<0.000000e+00> : vector<256x128xf32>
    %23 = tpu.matmul %21, %22, %cst_9 {dimension_numbers = #tpu.dot_dimension_numbers<[1], [0], [0], [1], [0, 0, 1, 1], [], []>} : vector<256x512xbf16>, vector<512x128xbf16>, vector<256x128xf32> -> vector<256x128xf32>
    %c0_10 = arith.constant 0 : index
    %c0_11 = arith.constant 0 : index
    %24 = vector.load %arg5[%c0_10, %c0_11] : memref<1x128xf32, #tpu.memory_space<vmem>>, vector<1x128xf32>
    %25 = vector.broadcast %24 : vector<1x128xf32> to vector<256x128xf32>
    %26 = arith.addf %23, %25 : vector<256x128xf32>
    %c0_12 = arith.constant 0 : index
    %c0_13 = arith.constant 0 : index
    %27 = vector.load %arg6[%c0_12, %c0_13] : memref<256x128xf32, #tpu.memory_space<vmem>>, vector<256x128xf32>
    tpu.vector_store %arg6[%c0_12, %c0_13], %26 {strides = array<i32>} : memref<256x128xf32, #tpu.memory_space<vmem>>, vector<256x128xf32>,
    return
  }
  func.func @transform_0(%arg0: i32) -> (i32, i32) {
    %c0_i32 = arith.constant 0 : i32
    %c0_i32_0 = arith.constant 0 : i32
    return %arg0, %c0_i32 : i32, i32
  }
  func.func @transform_1(%arg0: i32) -> (i32, i32) {
    %c0_i32 = arith.constant 0 : i32
    %c0_i32_0 = arith.constant 0 : i32
    %c0_i32_1 = arith.constant 0 : i32
    return %c0_i32, %c0_i32_0 : i32, i32
  }
  func.func @transform_2(%arg0: i32) -> (i32, i32) {
    %c0_i32 = arith.constant 0 : i32
    %c0_i32_0 = arith.constant 0 : i32
    %c0_i32_1 = arith.constant 0 : i32
    return %c0_i32, %c0_i32_0 : i32, i32
  }
  func.func @transform_3(%arg0: i32) -> (i32, i32) {
    %c0_i32 = arith.constant 0 : i32
    %c0_i32_0 = arith.constant 0 : i32
    %c0_i32_1 = arith.constant 0 : i32
    return %c0_i32, %c0_i32_0 : i32, i32
  }
  func.func @transform_4(%arg0: i32) -> (i32, i32) {
    %c0_i32 = arith.constant 0 : i32
    %c0_i32_0 = arith.constant 0 : i32
    %c0_i32_1 = arith.constant 0 : i32
    return %c0_i32, %c0_i32_0 : i32, i32
  }
  func.func @transform_5(%arg0: i32) -> (i32, i32) {
    %c0_i32 = arith.constant 0 : i32
    %c0_i32_0 = arith.constant 0 : i32
    return %arg0, %c0_i32 : i32, i32
  }
}

</mosaic_0001>

<bundles_post_ra>
// kernel: tpu_custom_call.1
= control target key start
LH: loop header
LB: loop body
LE: loop exit
PB: predicated region body
PF: predicated region fallthrough
CT: control target
= control target key end

     0   :  { %10 = vsyncpa [#allocation3], 0  ;;  %s6294_s0 = inlined_call_operand.hbm [shape: bf16[256,128], index: 0, kind: input, shape index: {}]   ;;  %s6295_s1 = inlined_call_operand.hbm [shape: bf16[128,1024], index: 1, kind: input, shape index: {}]   ;;  %s6296_s2 = inlined_call_operand.hbm [shape: f32[1,1024], index: 2, kind: input, shape index: {}]   ;;  %s6297_s3 = inlined_call_operand.hbm [shape: bf16[512,128], index: 3, kind: input, shape index: {}]   ;;  %s6298_s4 = inlined_call_operand.vmem [shape: f32[1,128], index: 4, kind: input, shape index: {}]   ;;  %s6299_s5 = inlined_call_operand.hbm [shape: f32[256,128], index: 5, kind: output, shape index: {}]  }
   0x1   :  { %11 = vsyncpa [#allocation6], 0 }
   0x2   :  { %12 = vsyncpa [#allocation9], 0 }
   0x3   :  { %13 = vsyncpa [#allocation4], 0  ;;  %s4345_s18 = smov [#allocation5]   ;;  %s4227_s22 = scalar_lea.hbm %s6295_s1, 8192 }
   0x4   :  { %s31_s19 = sshll.u32 %s4345_s18, 4  ;;  %p4228_p0 = scmp.ne.s32.totalorder %s6295_s1, %s4227_s22  ;;  %s32_s19 = int_to_ptr.vmem [resolvable:$true] %s31_s19 }
   0x5   :  { %p4231_p1 = scmp.lt.u32.totalorder %s4227_s22, %s6295_s1 }
   0x7   :  { %p4233_p2 = pnand %p4231_p1, %p4228_p0 }
   0x9   :  { %4236 = shalt.err (!%p4233_p2)
}
   0xa   :  { %s4237_s27 = scalar_lea.vmem %s32_s19, 8192  ;;  %p4242_p4 = scmp.lt.s32.totalorder %s32_s19, %s32_s19 }
   0xb   :  { %p4238_p3 = scmp.ne.s32.totalorder %s32_s19, %s4237_s27  ;;  %p4243_p5 = scmp.lt.s32.totalorder %s4237_s27, %s4237_s27 }
   0xd   :  { %p4244_p6 = por %p4243_p5, %p4242_p4 }
   0xf   :  { %p4245_p7 = pnand %p4244_p6, %p4238_p3 }
  0x11   :  { %4248 = shalt.err (!%p4245_p7)
}
  0x12   :  { %s4346_s28 = smov 512   ;;  %s4347_s29 = smov 32  }
  0x13   :  { %37 = dma.hbm_to_vmem [thread:$0]  %s6295_s1, 8192, %s32_s19, [#allocation6], %s4346_s28, %s4346_s28, %s4347_s29  }
  0x14   :  { %s4348_s7 = smov [#allocation2]   ;;  %s4249_s11 = scalar_lea.hbm %s6294_s0, 2048 }
  0x15   :  { %s19_s8 = sshll.u32 %s4348_s7, 4  ;;  %p4250_p8 = scmp.ne.s32.totalorder %s6294_s0, %s4249_s11  ;;  %s20_s8 = int_to_ptr.vmem [resolvable:$true] %s19_s8 }
  0x16   :  { %p4253_p9 = scmp.lt.u32.totalorder %s4249_s11, %s6294_s0 }
  0x18   :  { %p4255_p10 = pnand %p4253_p9, %p4250_p8 }
  0x1a   :  { %4258 = shalt.err (!%p4255_p10)
}
  0x1b   :  { %s4259_s16 = scalar_lea.vmem %s20_s8, 2048  ;;  %p4264_p12 = scmp.lt.s32.totalorder %s20_s8, %s20_s8 }
  0x1c   :  { %p4260_p11 = scmp.ne.s32.totalorder %s20_s8, %s4259_s16  ;;  %p4265_p13 = scmp.lt.s32.totalorder %s4259_s16, %s4259_s16 }
  0x1e   :  { %p4266_p0 = por %p4265_p13, %p4264_p12 }
  0x20   :  { %p4267_p1 = pnand %p4266_p0, %p4260_p11 }
  0x22   :  { %4270 = shalt.err (!%p4267_p1)
}
  0x23   :  { %s4349_s1 = smov 64   ;;  %s4350_s17 = smov 4  }
  0x24   :  { %25 = dma.hbm_to_vmem [thread:$0]  %s6294_s0, 2048, %s20_s8, [#allocation3], %s4349_s1, %s4349_s1, %s4350_s17  }
  0x25   :  { %s4351_s20 = smov [#allocation7]   ;;  %s4352_s22 = smov [#allocation8]  }
  0x26   :  { %s44_s21 = sshll.u32 %s4351_s20, 4  ;;  %s53_s23 = sshll.u32 %s4352_s22, 4  ;;  %s45_s21 = int_to_ptr.vmem [resolvable:$true] %s44_s21  ;;  %s4414_s23 = int_to_ptr.vmem [resolvable:$true] %s53_s23 }
  0x27   :  { %s4271_s26 = scalar_lea.hbm %s6296_s2, 128 }
  0x28   :  { %p4272_p2 = scmp.ne.s32.totalorder %s6296_s2, %s4271_s26  ;;  %p4275_p3 = scmp.lt.u32.totalorder %s4271_s26, %s6296_s2 }
  0x2a   :  { %p4277_p4 = pnand %p4275_p3, %p4272_p2 }
  0x2c   :  { %4280 = shalt.err (!%p4277_p4)
}
  0x2d   :  { %s4281_s0 = scalar_lea.vmem %s45_s21, 128  ;;  %p4286_p6 = scmp.lt.s32.totalorder %s45_s21, %s45_s21 }
  0x2e   :  { %p4282_p5 = scmp.ne.s32.totalorder %s45_s21, %s4281_s0  ;;  %p4287_p7 = scmp.lt.s32.totalorder %s4281_s0, %s4281_s0 }
  0x30   :  { %p4288_p8 = por %p4287_p7, %p4286_p6 }
  0x32   :  { %p4289_p9 = pnand %p4288_p8, %p4282_p5 }
  0x34   :  { %4292 = shalt.err (!%p4289_p9)
}
  0x35   :  { %47 = dma.hbm_to_vmem [thread:$0]  %s6296_s2, 128, %s45_s21, [#allocation6]  }
  0x36   :  { %s4293_s10 = scalar_lea.hbm %s6297_s3, 4096 }
  0x37   :  { %p4294_p10 = scmp.ne.s32.totalorder %s6297_s3, %s4293_s10  ;;  %p4297_p11 = scmp.lt.u32.totalorder %s4293_s10, %s6297_s3 }
  0x39   :  { %p4299_p12 = pnand %p4297_p11, %p4294_p10 }
  0x3b   :  { %4302 = shalt.err (!%p4299_p12)
}
  0x3c   :  { %s4303_s15 = scalar_lea.vmem %s4414_s23, 4096  ;;  %p4308_p0 = scmp.lt.s32.totalorder %s4414_s23, %s4414_s23 }
  0x3d   :  { %p4304_p13 = scmp.ne.s32.totalorder %s4414_s23, %s4303_s15  ;;  %p4309_p1 = scmp.lt.s32.totalorder %s4303_s15, %s4303_s15 }
  0x3f   :  { %p4310_p2 = por %p4309_p1, %p4308_p0 }
  0x41   :  { %p4311_p3 = pnand %p4310_p2, %p4304_p13 }
  0x43   :  { %4314 = shalt.err (!%p4311_p3)
}
  0x44   :  { %59 = dma.hbm_to_vmem [thread:$0]  %s6297_s3, 4096, %s4414_s23, [#allocation9], %s4349_s1, %s4349_s1, %s4350_s17  }
  0x45   :  { %4337 = dma.done.wait [#allocation3], 2048  }
  0x46   :  { %4338 = vsyncadd [#allocation3], 4294965248 }
  0x47   :  { %4339 = dma.done.wait [#allocation6], 8320  }
  0x48   :  { %4340 = vsyncadd [#allocation6], 4294958976 }
  0x49   :  { %4341 = dma.done.wait [#allocation9], 4096  }
  0x4a   :  { %4342 = vsyncadd [#allocation9], 4294963200  ;;  %v4353_v0 = vmov 0   ;;  %v108_v1 = vld [vmem:[#allocation5] sm:$0xff]  ;;  %v109_v3 = vld [vmem:[#allocation5 + $0x8] sm:$0xff] }
  0x4b   :  { %662 = vmatprep.mubr.bf16.mxu0 %v4353_v0  ;;  %855 = vmatprep.mubr.bf16.mxu1 %v4353_v0  ;;  %v112_v2 = vld [vmem:[#allocation5 + $0x20] sm:$0xff]  ;;  %v113_v5 = vld [vmem:[#allocation5 + $0x28] sm:$0xff]  ;;  %v110_v62 = vld [vmem:[#allocation5 + $0x10] sm:$0xff] }
  0x4c   :  { %v3207_v4 = vcombine.high %v108_v1, %v112_v2  ;;  %v3206_v6 = vcombine.low %v108_v1, %v112_v2  ;;  %v116_v7 = vld [vmem:[#allocation5 + $0x40] sm:$0xff]  ;;  %v3209_v9 = vcombine.high %v109_v3, %v113_v5  ;;  %v3208_v10 = vcombine.low %v109_v3, %v113_v5  ;;  %v117_v12 = vld [vmem:[#allocation5 + $0x48] sm:$0xff]  ;;  %v114_v63 = vld [vmem:[#allocation5 + $0x30] sm:$0xff] }
  0x4d   :  { %v120_v8 = vld [vmem:[#allocation5 + $0x60] sm:$0xff]  ;;  %v121_v13 = vld [vmem:[#allocation5 + $0x68] sm:$0xff]  ;;  %v111_v2 = vld [vmem:[#allocation5 + $0x18] sm:$0xff] }
  0x4e   :  { %v3215_v11 = vcombine.high %v116_v7, %v120_v8  ;;  %v124_v14 = vld [vmem:[#allocation5 + $0x80] sm:$0xff]  ;;  %630 = vmatprep.subr.bf16.mxu0 %v3207_v4  ;;  %v3217_v15 = vcombine.high %v117_v12, %v121_v13  ;;  %v125_v17 = vld [vmem:[#allocation5 + $0x88] sm:$0xff]  ;;  %823 = vmatprep.subr.bf16.mxu1 %v3209_v9  ;;  %v3214_v19 = vcombine.low %v116_v7, %v120_v8  ;;  %v115_v3 = vld [vmem:[#allocation5 + $0x38] sm:$0xff] }
  0x4f   :  { %v128_v16 = vld [vmem:[#allocation5 + $0xa0] sm:$0xff]  ;;  %v129_v18 = vld [vmem:[#allocation5 + $0xa8] sm:$0xff]  ;;  %631 = vmatpush1.bf16.msra.mxu0 %v3206_v6  ;;  %824 = vmatpush1.bf16.msra.mxu1 %v3208_v10  ;;  %v3216_v20 = vcombine.low %v117_v12, %v121_v13  ;;  %v3211_v6 = vcombine.high %v110_v62, %v114_v63  ;;  %v3213_v8 = vcombine.high %v111_v2, %v115_v3  ;;  %v118_v9 = vld [vmem:[#allocation5 + $0x50] sm:$0xff] }
  0x50   :  { %632 = vmatprep.subr.bf16.mxu0 %v3215_v11  ;;  %v3223_v21 = vcombine.high %v124_v14, %v128_v16  ;;  %825 = vmatprep.subr.bf16.mxu1 %v3217_v15  ;;  %v3225_v22 = vcombine.high %v125_v17, %v129_v18  ;;  %v132_v23 = vld [vmem:[#allocation5 + $0xc0] sm:$0xff]  ;;  %v133_v25 = vld [vmem:[#allocation5 + $0xc8] sm:$0xff]  ;;  %v3222_v27 = vcombine.low %v124_v14, %v128_v16  ;;  %v122_v10 = vld [vmem:[#allocation5 + $0x70] sm:$0xff] }
  0x51   :  { %v136_v24 = vld [vmem:[#allocation5 + $0xe0] sm:$0xff]  ;;  %v137_v26 = vld [vmem:[#allocation5 + $0xe8] sm:$0xff]  ;;  %v3224_v28 = vcombine.low %v125_v17, %v129_v18  ;;  %v3210_v11 = vcombine.low %v110_v62, %v114_v63  ;;  %v119_v12 = vld [vmem:[#allocation5 + $0x58] sm:$0xff]  ;;  %v3212_v14 = vcombine.low %v111_v2, %v115_v3  ;;  %v3219_v16 = vcombine.high %v118_v9, %v122_v10 }
  0x52   :  { %v3231_v29 = vcombine.high %v132_v23, %v136_v24  ;;  %v3233_v30 = vcombine.high %v133_v25, %v137_v26  ;;  %v140_v31 = vld [vmem:[#allocation5 + $0x100] sm:$0xff]  ;;  %v141_v33 = vld [vmem:[#allocation5 + $0x108] sm:$0xff]  ;;  %v3230_v35 = vcombine.low %v132_v23, %v136_v24  ;;  %v3232_v36 = vcombine.low %v133_v25, %v137_v26  ;;  %v123_v13 = vld [vmem:[#allocation5 + $0x78] sm:$0xff] }
  0x53   :  { %633 = vmatpush1.bf16.msra.mxu0 %v3214_v19  ;;  %826 = vmatpush1.bf16.msra.mxu1 %v3216_v20  ;;  %v144_v32 = vld [vmem:[#allocation5 + $0x120] sm:$0xff]  ;;  %v145_v34 = vld [vmem:[#allocation5 + $0x128] sm:$0xff]  ;;  %v126_v15 = vld [vmem:[#allocation5 + $0x90] sm:$0xff]  ;;  %v3221_v18 = vcombine.high %v119_v12, %v123_v13  ;;  %v3220_v23 = vcombine.low %v119_v12, %v123_v13 }
  0x54   :  { %634 = vmatprep.subr.bf16.mxu0 %v3223_v21  ;;  %827 = vmatprep.subr.bf16.mxu1 %v3225_v22  ;;  %v3239_v37 = vcombine.high %v140_v31, %v144_v32  ;;  %v148_v38 = vld [vmem:[#allocation5 + $0x140] sm:$0xff]  ;;  %v3241_v39 = vcombine.high %v141_v33, %v145_v34  ;;  %v149_v41 = vld [vmem:[#allocation5 + $0x148] sm:$0xff]  ;;  %v3238_v43 = vcombine.low %v140_v31, %v144_v32  ;;  %v130_v17 = vld [vmem:[#allocation5 + $0xb0] sm:$0xff] }
  0x55   :  { %v152_v40 = vld [vmem:[#allocation5 + $0x160] sm:$0xff]  ;;  %v153_v42 = vld [vmem:[#allocation5 + $0x168] sm:$0xff]  ;;  %v3240_v44 = vcombine.low %v141_v33, %v145_v34  ;;  %v127_v19 = vld [vmem:[#allocation5 + $0x98] sm:$0xff]  ;;  %v3218_v21 = vcombine.low %v118_v9, %v122_v10  ;;  %v3227_v24 = vcombine.high %v126_v15, %v130_v17 }
  0x56   :  { %v3247_v45 = vcombine.high %v148_v38, %v152_v40  ;;  %v3249_v46 = vcombine.high %v149_v41, %v153_v42  ;;  %v156_v47 = vld [vmem:[#allocation5 + $0x180] sm:$0xff]  ;;  %v157_v49 = vld [vmem:[#allocation5 + $0x188] sm:$0xff]  ;;  %v3246_v51 = vcombine.low %v148_v38, %v152_v40  ;;  %v3248_v52 = vcombine.low %v149_v41, %v153_v42  ;;  %v131_v20 = vld [vmem:[#allocation5 + $0xb8] sm:$0xff] }
  0x57   :  { %635 = vmatpush1.bf16.msra.mxu0 %v3222_v27  ;;  %828 = vmatpush1.bf16.msra.mxu1 %v3224_v28  ;;  %v160_v48 = vld [vmem:[#allocation5 + $0x1a0] sm:$0xff]  ;;  %v161_v50 = vld [vmem:[#allocation5 + $0x1a8] sm:$0xff]  ;;  %v134_v25 = vld [vmem:[#allocation5 + $0xd0] sm:$0xff]  ;;  %v3229_v27 = vcombine.high %v127_v19, %v131_v20  ;;  %v3228_v33 = vcombine.low %v127_v19, %v131_v20 }
  0x58   :  { %636 = vmatprep.subr.bf16.mxu0 %v3231_v29  ;;  %829 = vmatprep.subr.bf16.mxu1 %v3233_v30  ;;  %v3255_v53 = vcombine.high %v156_v47, %v160_v48  ;;  %v3257_v54 = vcombine.high %v157_v49, %v161_v50  ;;  %v164_v55 = vld [vmem:[#allocation5 + $0x1c0] sm:$0xff]  ;;  %v165_v57 = vld [vmem:[#allocation5 + $0x1c8] sm:$0xff]  ;;  %v3254_v59 = vcombine.low %v156_v47, %v160_v48  ;;  %v138_v26 = vld [vmem:[#allocation5 + $0xf0] sm:$0xff] }
  0x59   :  { %v168_v56 = vld [vmem:[#allocation5 + $0x1e0] sm:$0xff]  ;;  %v169_v58 = vld [vmem:[#allocation5 + $0x1e8] sm:$0xff]  ;;  %v3256_v60 = vcombine.low %v157_v49, %v161_v50  ;;  %v135_v28 = vld [vmem:[#allocation5 + $0xd8] sm:$0xff]  ;;  %v3226_v30 = vcombine.low %v126_v15, %v130_v17  ;;  %v3235_v34 = vcombine.high %v134_v25, %v138_v26 }
  0x5a   :  { %v3263_v61 = vcombine.high %v164_v55, %v168_v56  ;;  %v3265_v1 = vcombine.high %v165_v57, %v169_v58  ;;  %v3262_v4 = vcombine.low %v164_v55, %v168_v56  ;;  %v3264_v5 = vcombine.low %v165_v57, %v169_v58  ;;  %v4450_v7 = vld [vmem:[#allocation2] sm:$0xff]   ;;  %v4455_v22 = vld [vmem:[#allocation2 + $0x8] sm:$0xff]   ;;  %v139_v29 = vld [vmem:[#allocation5 + $0xf8] sm:$0xff] }
  0x5b   :  { %637 = vmatpush1.bf16.msra.mxu0 %v3230_v35  ;;  %830 = vmatpush1.bf16.msra.mxu1 %v3232_v36  ;;  %v142_v31 = vld [vmem:[#allocation5 + $0x110] sm:$0xff]  ;;  %v143_v35 = vld [vmem:[#allocation5 + $0x118] sm:$0xff]  ;;  %v3236_v42 = vcombine.low %v135_v28, %v139_v29  ;;  %v4480_v9 = vld [vmem:[#allocation2 + $0x28] sm:$0xff]  }
  0x5c   :  { %638 = vmatprep.subr.bf16.mxu0 %v3239_v37  ;;  %831 = vmatprep.subr.bf16.mxu1 %v3241_v39  ;;  %v146_v32 = vld [vmem:[#allocation5 + $0x130] sm:$0xff]  ;;  %v147_v36 = vld [vmem:[#allocation5 + $0x138] sm:$0xff]  ;;  %v3237_v37 = vcombine.high %v135_v28, %v139_v29  ;;  %v3234_v39 = vcombine.low %v134_v25, %v138_v26  ;;  %v4498_v12 = vld [vmem:[#allocation2 + $0x40] sm:$0xff]  }
  0x5d   :  { %v4462_v38 = vld [vmem:[#allocation2 + $0x10] sm:$0xff]   ;;  %v3242_v47 = vcombine.low %v142_v31, %v146_v32  ;;  %v3244_v50 = vcombine.low %v143_v35, %v147_v36  ;;  %v4468_v55 = vld [vmem:[#allocation2 + $0x18] sm:$0xff]   ;;  %v4504_v13 = vld [vmem:[#allocation2 + $0x48] sm:$0xff]  }
  0x5e   :  { %v150_v40 = vld [vmem:[#allocation5 + $0x150] sm:$0xff]  ;;  %v171_v62 = vld [vmem:[#allocation5 + $0x1f8] sm:$0xff]  ;;  %v4528_v17 = vld [vmem:[#allocation2 + $0x68] sm:$0xff]  }
  0x5f   :  { %639 = vmatpush1.bf16.msra.mxu0 %v3238_v43  ;;  %832 = vmatpush1.bf16.msra.mxu1 %v3240_v44  ;;  %v154_v41 = vld [vmem:[#allocation5 + $0x170] sm:$0xff]  ;;  %v3243_v43 = vcombine.high %v142_v31, %v146_v32  ;;  %v151_v44 = vld [vmem:[#allocation5 + $0x158] sm:$0xff]  ;;  %v3684_v20 = vld [vmem:[#allocation8] sm:$0xff]   ;;  %v174_v31 = vlaneseq }
  0x60   :  { %640 = vmatprep.subr.bf16.mxu0 %v3247_v45  ;;  %833 = vmatprep.subr.bf16.mxu1 %v3249_v46  ;;  %v155_v45 = vld [vmem:[#allocation5 + $0x178] sm:$0xff]  ;;  %v3245_v46 = vcombine.high %v143_v35, %v147_v36  ;;  %v158_v48 = vld [vmem:[#allocation5 + $0x190] sm:$0xff]  ;;  %v3250_v56 = vcombine.low %v150_v40, %v154_v41  ;;  %v3695_v36 = vld [vmem:[#allocation8 + $0x58] sm:$0xff]  }
  0x61   :  { %v162_v49 = vld [vmem:[#allocation5 + $0x1b0] sm:$0xff]  ;;  %v4516_v15 = vld [vmem:[#allocation2 + $0x58] sm:$0xff]   ;;  %v4586_v32 = vshrl.u32 %v174_v31, 7 }
  0x62   :  { %v166_v57 = vld [vmem:[#allocation5 + $0x1d0] sm:$0xff]  ;;  %v4540_v19 = vld [vmem:[#allocation2 + $0x78] sm:$0xff]  }
  0x63   :  { %641 = vmatpush1.bf16.msra.mxu0 %v3246_v51  ;;  %834 = vmatpush1.bf16.msra.mxu1 %v3248_v52  ;;  %v3251_v51 = vcombine.high %v150_v40, %v154_v41  ;;  %v159_v52 = vld [vmem:[#allocation5 + $0x198] sm:$0xff]  ;;  %v170_v58 = vld [vmem:[#allocation5 + $0x1f0] sm:$0xff]  ;;  %v188_v35 = vsub.s32 3, %v4586_v32  ;;  %v3696_v40 = vld [vmem:[#allocation8 + $0x18] sm:$0xff]  }
  0x64   :  { %642 = vmatprep.subr.bf16.mxu0 %v3255_v53  ;;  %835 = vmatprep.subr.bf16.mxu1 %v3257_v54  ;;  %v163_v53 = vld [vmem:[#allocation5 + $0x1b8] sm:$0xff]  ;;  %v3253_v54 = vcombine.high %v151_v44, %v155_v45  ;;  %v3267_v3 = vcombine.high %v166_v57, %v170_v58  ;;  %v4486_v10 = vld [vmem:[#allocation2 + $0x30] sm:$0xff]  }
  0x65   :  { %v3261_v63 = vcombine.high %v159_v52, %v163_v53  ;;  %v3260_v2 = vcombine.low %v159_v52, %v163_v53  ;;  %v3689_v25 = vld [vmem:[#allocation8 + $0xc8] sm:$0xff]   ;;  %v3692_v28 = vld [vmem:[#allocation8 + $0x10] sm:$0xff]  }
  0x66   :  { %v3690_v26 = vld [vmem:[#allocation8 + $0x88] sm:$0xff]   ;;  %v3693_v29 = vld [vmem:[#allocation8 + $0xd0] sm:$0xff]  }
  0x67   :  { %643 = vmatpush1.bf16.msra.mxu0 %v3254_v59  ;;  %836 = vmatpush1.bf16.msra.mxu1 %v3256_v60  ;;  %v3252_v59 = vcombine.low %v151_v44, %v155_v45  ;;  %v3259_v60 = vcombine.high %v158_v48, %v162_v49  ;;  %v3698_v44 = vld [vmem:[#allocation8 + $0x98] sm:$0xff]  }
  0x68   :  { %644 = vmatprep.subr.bf16.mxu0 %v3263_v61  ;;  %837 = vmatprep.subr.bf16.mxu1 %v3265_v1  ;;  %v167_v61 = vld [vmem:[#allocation5 + $0x1d8] sm:$0xff]  ;;  %v3258_v1 = vcombine.low %v158_v48, %v162_v49 }
  0x6b   :  { %645 = vmatpush1.bf16.msra.mxu0 %v3262_v4  ;;  %838 = vmatpush1.bf16.msra.mxu1 %v3264_v5  ;;  %v3269_v4 = vcombine.high %v167_v61, %v171_v62  ;;  %v3266_v5 = vcombine.low %v166_v57, %v170_v58 }
  0x6c   :  { %1016 = vmatprep.subr.bf16.mxu0 %v3211_v6  ;;  %1209 = vmatprep.subr.bf16.mxu1 %v3213_v8  ;;  %v3268_v6 = vcombine.low %v167_v61, %v171_v62  ;;  %v4474_v8 = vld [vmem:[#allocation2 + $0x20] sm:$0xff]   ;;  %v3703_v61 = vld [vmem:[#allocation8 + $0x68] sm:$0xff]  }
  0x6e   :  { %663 = vmatmul.mubr.bf16.vlgmr.msra.gmra.mrb[0].mxu0 %v4450_v7  ;;  %856 = vmatmul.mubr.bf16.vlgmr.msra.gmra.mrb[0].mxu1 %v4450_v7 }
  0x6f   :  { %1017 = vmatpush1.bf16.msra.mxu0 %v3210_v11  ;;  %1210 = vmatpush1.bf16.msra.mxu1 %v3212_v14  ;;  %v4492_v11 = vld [vmem:[#allocation2 + $0x38] sm:$0xff]   ;;  %v4510_v14 = vld [vmem:[#allocation2 + $0x50] sm:$0xff]  }
  0x70   :  { %672 = vmatprep.mubr.bf16.mxu0 %v4353_v0  ;;  %865 = vmatprep.mubr.bf16.mxu1 %v4353_v0 }
  0x71   :  { %1018 = vmatprep.subr.bf16.mxu0 %v3219_v16  ;;  %1211 = vmatprep.subr.bf16.mxu1 %v3221_v18  ;;  %v4522_v16 = vld [vmem:[#allocation2 + $0x60] sm:$0xff]   ;;  %v4534_v18 = vld [vmem:[#allocation2 + $0x70] sm:$0xff]  }
  0x73   :  { %1019 = vmatpush1.bf16.msra.mxu0 %v3218_v21  ;;  %1212 = vmatpush1.bf16.msra.mxu1 %v3220_v23  ;;  %v3685_v21 = vld [vmem:[#allocation8 + $0xc0] sm:$0xff]   ;;  %v3687_v23 = vld [vmem:[#allocation8 + $0x48] sm:$0xff]  }
  0x74   :  { %1020 = vmatprep.subr.bf16.mxu0 %v3227_v24  ;;  %1213 = vmatprep.subr.bf16.mxu1 %v3229_v27  ;;  %v3688_v24 = vld [vmem:[#allocation8 + $0x8] sm:$0xff]   ;;  %v3691_v27 = vld [vmem:[#allocation8 + $0x50] sm:$0xff]  }
  0x76   :  { %673 = vmatmul.mubr.bf16.gmra.mrb[4].mxu0 %v4455_v22  ;;  %866 = vmatmul.mubr.bf16.gmra.mrb[4].mxu1 %v4455_v22 }
  0x77   :  { %682 = vmatprep.mubr.bf16.mxu0 %v4353_v0  ;;  %875 = vmatprep.mubr.bf16.mxu1 %v4353_v0 }
  0x78   :  { %1021 = vmatpush1.bf16.msra.mxu0 %v3226_v30  ;;  %1214 = vmatpush1.bf16.msra.mxu1 %v3228_v33  ;;  %v3694_v30 = vld [vmem:[#allocation8 + $0x90] sm:$0xff]   ;;  %v184_v33 = vsub.s32 2, %v4586_v32 }
  0x79   :  { %1022 = vmatprep.subr.bf16.mxu0 %v3235_v34  ;;  %1215 = vmatprep.subr.bf16.mxu1 %v3237_v37  ;;  %v176_v34 = vsub.s32 0, %v4586_v32  ;;  %v4591_v37 = vld [vmem:[#allocation7] sm:$0xff] }
  0x7b   :  { %v4601_v41 = vrot.slane %v4591_v37, %v176_v34 }
  0x7c   :  { %1023 = vmatpush1.bf16.msra.mxu0 %v3234_v39  ;;  %1216 = vmatpush1.bf16.msra.mxu1 %v3236_v42  ;;  %v4597_v39 = vrot.slane %v4591_v37, %v184_v33  ;;  %v4604_v42 = vrot.slane %v4591_v37, %v188_v35 }
  0x7d   :  { %1024 = vmatprep.subr.bf16.mxu0 %v3243_v43  ;;  %1217 = vmatprep.subr.bf16.mxu1 %v3245_v46  ;;  %v3697_v43 = vld [vmem:[#allocation8 + $0xd8] sm:$0xff]  }
  0x7e   :  { %683 = vmatmul.mubr.bf16.gmra.mrb[8].mxu0 %v4462_v38  ;;  %876 = vmatmul.mubr.bf16.gmra.mrb[8].mxu1 %v4462_v38 }
  0x7f   :  { %692 = vmatprep.mubr.bf16.mxu0 %v4353_v0  ;;  %885 = vmatprep.mubr.bf16.mxu1 %v4353_v0 }
  0x80   :  { %1025 = vmatpush1.bf16.msra.mxu0 %v3242_v47  ;;  %1218 = vmatpush1.bf16.msra.mxu1 %v3244_v50 }
  0x81   :  { %1026 = vmatprep.subr.bf16.mxu0 %v3251_v51  ;;  %1219 = vmatprep.subr.bf16.mxu1 %v3253_v54 }
  0x84   :  { %1027 = vmatpush1.bf16.msra.mxu0 %v3250_v56  ;;  %1220 = vmatpush1.bf16.msra.mxu1 %v3252_v59 }
  0x85   :  { %1028 = vmatprep.subr.bf16.mxu0 %v3259_v60  ;;  %1221 = vmatprep.subr.bf16.mxu1 %v3261_v63 }
  0x86   :  { %693 = vmatmul.mubr.bf16.gmra.mrb[12].mxu0 %v4468_v55  ;;  %886 = vmatmul.mubr.bf16.gmra.mrb[12].mxu1 %v4468_v55 }
  0x87   :  { %702 = vmatprep.mubr.bf16.mxu0 %v4353_v0  ;;  %895 = vmatprep.mubr.bf16.mxu1 %v4353_v0 }
  0x88   :  { %1029 = vmatpush1.bf16.msra.mxu0 %v3258_v1  ;;  %1222 = vmatpush1.bf16.msra.mxu1 %v3260_v2  ;;  %v3702_v2 = vld [vmem:[#allocation8 + $0xa0] sm:$0xff]  }
  0x89   :  { %1030 = vmatprep.subr.bf16.mxu0 %v3267_v3  ;;  %1223 = vmatprep.subr.bf16.mxu1 %v3269_v4 }
  0x8c   :  { %1031 = vmatpush1.bf16.msra.mxu0 %v3266_v5  ;;  %1224 = vmatpush1.bf16.msra.mxu1 %v3268_v6 }
  0x8d   :  { %3543 = vmatprep.subr.bf16.mxu1 %v3685_v21 }
  0x8e   :  { %703 = vmatmul.mubr.bf16.gmra.mrb[16].mxu0 %v4474_v8  ;;  %896 = vmatmul.mubr.bf16.gmra.mrb[16].mxu1 %v4474_v8 }
  0x8f   :  { %712 = vmatprep.mubr.bf16.mxu0 %v4353_v0  ;;  %905 = vmatprep.mubr.bf16.mxu1 %v4353_v0 }
  0x96   :  { %713 = vmatmul.mubr.bf16.gmra.mrb[20].mxu0 %v4480_v9  ;;  %906 = vmatmul.mubr.bf16.gmra.mrb[20].mxu1 %v4480_v9 }
  0x97   :  { %722 = vmatprep.mubr.bf16.mxu0 %v4353_v0  ;;  %915 = vmatprep.mubr.bf16.mxu1 %v4353_v0 }
  0x9e   :  { %723 = vmatmul.mubr.bf16.gmra.mrb[24].mxu0 %v4486_v10  ;;  %916 = vmatmul.mubr.bf16.gmra.mrb[24].mxu1 %v4486_v10 }
  0x9f   :  { %732 = vmatprep.mubr.bf16.mxu0 %v4353_v0  ;;  %925 = vmatprep.mubr.bf16.mxu1 %v4353_v0 }
  0xa6   :  { %733 = vmatmul.mubr.bf16.gmra.mrb[28].mxu0 %v4492_v11  ;;  %926 = vmatmul.mubr.bf16.gmra.mrb[28].mxu1 %v4492_v11 }
  0xa7   :  { %742 = vmatprep.mubr.bf16.mxu0 %v4353_v0  ;;  %935 = vmatprep.mubr.bf16.mxu1 %v4353_v0 }
  0xae   :  { %743 = vmatmul.mubr.bf16.gmra.mrb[32].mxu0 %v4498_v12  ;;  %936 = vmatmul.mubr.bf16.gmra.mrb[32].mxu1 %v4498_v12 }
  0xaf   :  { %752 = vmatprep.mubr.bf16.mxu0 %v4353_v0  ;;  %945 = vmatprep.mubr.bf16.mxu1 %v4353_v0 }
  0xb6   :  { %753 = vmatmul.mubr.bf16.gmra.mrb[36].mxu0 %v4504_v13  ;;  %946 = vmatmul.mubr.bf16.gmra.mrb[36].mxu1 %v4504_v13 }
  0xb7   :  { %762 = vmatprep.mubr.bf16.mxu0 %v4353_v0  ;;  %955 = vmatprep.mubr.bf16.mxu1 %v4353_v0 }
  0xbe   :  { %763 = vmatmul.mubr.bf16.gmra.mrb[40].mxu0 %v4510_v14  ;;  %956 = vmatmul.mubr.bf16.gmra.mrb[40].mxu1 %v4510_v14 }
  0xbf   :  { %772 = vmatprep.mubr.bf16.mxu0 %v4353_v0  ;;  %965 = vmatprep.mubr.bf16.mxu1 %v4353_v0 }
  0xc6   :  { %773 = vmatmul.mubr.bf16.gmra.mrb[44].mxu0 %v4516_v15  ;;  %966 = vmatmul.mubr.bf16.gmra.mrb[44].mxu1 %v4516_v15 }
  0xc7   :  { %782 = vmatprep.mubr.bf16.mxu0 %v4353_v0  ;;  %975 = vmatprep.mubr.bf16.mxu1 %v4353_v0 }
  0xce   :  { %783 = vmatmul.mubr.bf16.gmra.mrb[48].mxu0 %v4522_v16  ;;  %976 = vmatmul.mubr.bf16.gmra.mrb[48].mxu1 %v4522_v16 }
  0xcf   :  { %792 = vmatprep.mubr.bf16.mxu0 %v4353_v0  ;;  %985 = vmatprep.mubr.bf16.mxu1 %v4353_v0 }
  0xd6   :  { %793 = vmatmul.mubr.bf16.gmra.mrb[52].mxu0 %v4528_v17  ;;  %986 = vmatmul.mubr.bf16.gmra.mrb[52].mxu1 %v4528_v17 }
  0xd7   :  { %802 = vmatprep.mubr.bf16.mxu0 %v4353_v0  ;;  %995 = vmatprep.mubr.bf16.mxu1 %v4353_v0 }
  0xde   :  { %803 = vmatmul.mubr.bf16.gmra.mrb[56].mxu0 %v4534_v18  ;;  %996 = vmatmul.mubr.bf16.gmra.mrb[56].mxu1 %v4534_v18 }
  0xdf   :  { %812 = vmatprep.mubr.bf16.mxu0 %v4353_v0  ;;  %1005 = vmatprep.mubr.bf16.mxu1 %v4353_v0 }
  0xe6   :  { %813 = vmatmul.mubr.bf16.gmra.mrb[60].mxu0 %v4540_v19  ;;  %1006 = vmatmul.mubr.bf16.gmra.mrb[60].mxu1 %v4540_v19 }
  0xe7   :  { %1048 = vmatprep.mubr.bf16.mxu0 %v4353_v0  ;;  %1241 = vmatprep.mubr.bf16.mxu1 %v4353_v0 }
  0xee   :  { %1049 = vmatmul.mubr.bf16.vlgmr.msra.gmra.mrb[64].mxu0 %v4450_v7  ;;  %1242 = vmatmul.mubr.bf16.vlgmr.msra.gmra.mrb[64].mxu1 %v4450_v7  ;;  %v3683_v7 = vld [vmem:[#allocation8 + $0x40] sm:$0xff]  }
  0xef   :  { %1058 = vmatprep.mubr.bf16.mxu0 %v4353_v0  ;;  %1251 = vmatprep.mubr.bf16.mxu1 %v4353_v0 }
  0xf0   :  { %3431 = vmatprep.subr.bf16.mxu0 %v3683_v7 }
  0xf1   :  { %3432 = vmatpush3.bf16.msra.mxu0 %v3684_v20 }
  0xf2   :  { %3433 = vmatprep.subr.bf16.mxu0 %v3687_v23 }
  0xf5   :  { %3434 = vmatpush3.bf16.msra.mxu0 %v3688_v24  ;;  %v3699_v24 = vld [vmem:[#allocation8 + $0x60] sm:$0xff]  }
  0xf6   :  { %1059 = vmatmul.mubr.bf16.gmra.mrb[68].mxu0 %v4455_v22  ;;  %1252 = vmatmul.mubr.bf16.gmra.mrb[68].mxu1 %v4455_v22  ;;  %v3686_v22 = vld [vmem:[#allocation8 + $0x80] sm:$0xff]  }
  0xf7   :  { %1068 = vmatprep.mubr.bf16.mxu0 %v4353_v0  ;;  %1261 = vmatprep.mubr.bf16.mxu1 %v4353_v0 }
  0xf8   :  { %3544 = vmatpush3.bf16.msra.mxu1 %v3686_v22  ;;  %3435 = vmatprep.subr.bf16.mxu0 %v3691_v27  ;;  %v3700_v22 = vld [vmem:[#allocation8 + $0x20] sm:$0xff]  }
  0xf9   :  { %3545 = vmatprep.subr.bf16.mxu1 %v3689_v25  ;;  %3436 = vmatpush3.bf16.msra.mxu0 %v3692_v28 }
  0xfa   :  { %3437 = vmatprep.subr.bf16.mxu0 %v3695_v36 }
  0xfc   :  { %3546 = vmatpush3.bf16.msra.mxu1 %v3690_v26  ;;  %v3701_v26 = vld [vmem:[#allocation8 + $0xe0] sm:$0xff]  }
  0xfd   :  { %3547 = vmatprep.subr.bf16.mxu1 %v3693_v29  ;;  %3438 = vmatpush3.bf16.msra.mxu0 %v3696_v40 }
  0xfe   :  { %1069 = vmatmul.mubr.bf16.gmra.mrb[72].mxu0 %v4462_v38  ;;  %1262 = vmatmul.mubr.bf16.gmra.mrb[72].mxu1 %v4462_v38  ;;  %v180_v38 = vsub.s32 1, %v4586_v32 }
  0xff   :  { %1078 = vmatprep.mubr.bf16.mxu0 %v4353_v0  ;;  %1271 = vmatprep.mubr.bf16.mxu1 %v4353_v0 }
 0x100   :  { %3548 = vmatpush3.bf16.msra.mxu1 %v3694_v30  ;;  %v4608_v46 = vrot.slane %v4591_v37, %v180_v38  ;;  %3439 = vmatprep.subr.bf16.mxu0 %v3699_v24 }
 0x101   :  { %3549 = vmatprep.subr.bf16.mxu1 %v3697_v43  ;;  %3440 = vmatpush3.bf16.msra.mxu0 %v3700_v22 }
 0x102   :  { %3441 = vmatprep.subr.bf16.mxu0 %v3703_v61 }
 0x104   :  { %3550 = vmatpush3.bf16.msra.mxu1 %v3698_v44 }
 0x105   :  { %3551 = vmatprep.subr.bf16.mxu1 %v3701_v26 }
 0x106   :  { %1079 = vmatmul.mubr.bf16.gmra.mrb[76].mxu0 %v4468_v55  ;;  %1272 = vmatmul.mubr.bf16.gmra.mrb[76].mxu1 %v4468_v55 }
 0x107   :  { %1088 = vmatprep.mubr.bf16.mxu0 %v4353_v0  ;;  %1281 = vmatprep.mubr.bf16.mxu1 %v4353_v0 }
 0x108   :  { %3552 = vmatpush3.bf16.msra.mxu1 %v3702_v2  ;;  %v3704_v2 = vld [vmem:[#allocation8 + $0x28] sm:$0xff]  }
 0x109   :  { %3442 = vmatpush3.bf16.msra.mxu0 %v3704_v2 }
 0x10e   :  { %1089 = vmatmul.mubr.bf16.gmra.mrb[80].mxu0 %v4474_v8  ;;  %1282 = vmatmul.mubr.bf16.gmra.mrb[80].mxu1 %v4474_v8 }
 0x10f   :  { %1098 = vmatprep.mubr.bf16.mxu0 %v4353_v0  ;;  %1291 = vmatprep.mubr.bf16.mxu1 %v4353_v0 }
 0x116   :  { %1099 = vmatmul.mubr.bf16.gmra.mrb[84].mxu0 %v4480_v9  ;;  %1292 = vmatmul.mubr.bf16.gmra.mrb[84].mxu1 %v4480_v9 }
 0x117   :  { %1108 = vmatprep.mubr.bf16.mxu0 %v4353_v0  ;;  %1301 = vmatprep.mubr.bf16.mxu1 %v4353_v0 }
 0x11e   :  { %1109 = vmatmul.mubr.bf16.gmra.mrb[88].mxu0 %v4486_v10  ;;  %1302 = vmatmul.mubr.bf16.gmra.mrb[88].mxu1 %v4486_v10 }
 0x11f   :  { %1118 = vmatprep.mubr.bf16.mxu0 %v4353_v0  ;;  %1311 = vmatprep.mubr.bf16.mxu1 %v4353_v0 }
 0x126   :  { %1119 = vmatmul.mubr.bf16.gmra.mrb[92].mxu0 %v4492_v11  ;;  %1312 = vmatmul.mubr.bf16.gmra.mrb[92].mxu1 %v4492_v11 }
 0x127   :  { %1128 = vmatprep.mubr.bf16.mxu0 %v4353_v0  ;;  %1321 = vmatprep.mubr.bf16.mxu1 %v4353_v0 }
 0x12e   :  { %1129 = vmatmul.mubr.bf16.gmra.mrb[96].mxu0 %v4498_v12  ;;  %1322 = vmatmul.mubr.bf16.gmra.mrb[96].mxu1 %v4498_v12 }
 0x12f   :  { %1138 = vmatprep.mubr.bf16.mxu0 %v4353_v0  ;;  %1331 = vmatprep.mubr.bf16.mxu1 %v4353_v0 }
 0x136   :  { %1139 = vmatmul.mubr.bf16.gmra.mrb[100].mxu0 %v4504_v13  ;;  %1332 = vmatmul.mubr.bf16.gmra.mrb[100].mxu1 %v4504_v13 }
 0x137   :  { %1148 = vmatprep.mubr.bf16.mxu0 %v4353_v0  ;;  %1341 = vmatprep.mubr.bf16.mxu1 %v4353_v0 }
 0x13e   :  { %1149 = vmatmul.mubr.bf16.gmra.mrb[104].mxu0 %v4510_v14  ;;  %1342 = vmatmul.mubr.bf16.gmra.mrb[104].mxu1 %v4510_v14 }
 0x13f   :  { %1158 = vmatprep.mubr.bf16.mxu0 %v4353_v0  ;;  %1351 = vmatprep.mubr.bf16.mxu1 %v4353_v0 }
 0x141   :  { %v664_v45 = vpop.f32.mrb[0].mxu0  ;;  %v857_v47 = vpop.f32.mrb[0].mxu1 }
 0x142   :  { %v666_v48 = vpop.f32.mrb[1].mxu0  ;;  %v4611_v49 = vadd.f32 %v857_v47, %v4597_v39  ;;  %v859_v50 = vpop.f32.mrb[1].mxu1  ;;  %v4614_v52 = vadd.f32 %v664_v45, %v4601_v41 }
 0x143   :  { %v668_v51 = vpop.f32.mrb[2].mxu0  ;;  %v4617_v53 = vadd.f32 %v859_v50, %v4604_v42  ;;  %v861_v55 = vpop.f32.mrb[2].mxu1  ;;  %v4623_v57 = vadd.f32 %v666_v48, %v4608_v46 }
 0x144   :  { %v4620_v54 = vadd.f32 %v668_v51, %v4601_v41  ;;  %v670_v56 = vpop.f32.mrb[3].mxu0  ;;  %v4626_v58 = vadd.f32 %v861_v55, %v4597_v39  ;;  %v863_v60 = vpop.f32.mrb[3].mxu1 }
 0x145   :  { %v4629_v59 = vadd.f32 %v670_v56, %v4608_v46  ;;  %v4634_v62 = vadd.f32 %v863_v60, %v4604_v42 }
 0x146   :  { %1159 = vmatmul.mubr.bf16.gmra.mrb[108].mxu0 %v4516_v15  ;;  %1352 = vmatmul.mubr.bf16.gmra.mrb[108].mxu1 %v4516_v15 }
 0x147   :  { %1168 = vmatprep.mubr.bf16.mxu0 %v4353_v0  ;;  %1361 = vmatprep.mubr.bf16.mxu1 %v4353_v0 }
 0x149   :  { %v674_v3 = vpop.f32.mrb[4].mxu0  ;;  %v867_v4 = vpop.f32.mrb[4].mxu1 }
 0x14a   :  { %v676_v5 = vpop.f32.mrb[5].mxu0  ;;  %v4647_v6 = vadd.f32 %v867_v4, %v4597_v39  ;;  %v869_v8 = vpop.f32.mrb[5].mxu1  ;;  %v4650_v10 = vadd.f32 %v674_v3, %v4601_v41 }
 0x14b   :  { %v678_v9 = vpop.f32.mrb[6].mxu0  ;;  %v4653_v11 = vadd.f32 %v869_v8, %v4604_v42  ;;  %v871_v13 = vpop.f32.mrb[6].mxu1  ;;  %v4659_v15 = vadd.f32 %v676_v5, %v4608_v46 }
 0x14c   :  { %v4656_v12 = vadd.f32 %v678_v9, %v4601_v41  ;;  %v680_v14 = vpop.f32.mrb[7].mxu0  ;;  %v4662_v7 = vadd.f32 %v871_v13, %v4597_v39  ;;  %v873_v21 = vpop.f32.mrb[7].mxu1 }
 0x14d   :  { %v4665_v20 = vadd.f32 %v680_v14, %v4608_v46  ;;  %v4670_v23 = vadd.f32 %v873_v21, %v4604_v42 }
 0x14e   :  { %1169 = vmatmul.mubr.bf16.gmra.mrb[112].mxu0 %v4522_v16  ;;  %1362 = vmatmul.mubr.bf16.gmra.mrb[112].mxu1 %v4522_v16 }
 0x14f   :  { %1178 = vmatprep.mubr.bf16.mxu0 %v4353_v0  ;;  %1371 = vmatprep.mubr.bf16.mxu1 %v4353_v0 }
 0x151   :  { %v684_v27 = vpop.f32.mrb[8].mxu0  ;;  %v877_v28 = vpop.f32.mrb[8].mxu1 }
 0x152   :  { %v686_v29 = vpop.f32.mrb[9].mxu0  ;;  %v4683_v30 = vadd.f32 %v877_v28, %v4597_v39  ;;  %v879_v31 = vpop.f32.mrb[9].mxu1  ;;  %v4686_v34 = vadd.f32 %v684_v27, %v4601_v41 }
 0x153   :  { %v688_v33 = vpop.f32.mrb[10].mxu0  ;;  %v4689_v16 = vadd.f32 %v879_v31, %v4604_v42  ;;  %v881_v36 = vpop.f32.mrb[10].mxu1  ;;  %v4695_v40 = vadd.f32 %v686_v29, %v4608_v46 }
 0x154   :  { %v4692_v35 = vadd.f32 %v688_v33, %v4601_v41  ;;  %v690_v38 = vpop.f32.mrb[11].mxu0  ;;  %v4698_v43 = vadd.f32 %v881_v36, %v4597_v39  ;;  %v883_v45 = vpop.f32.mrb[11].mxu1 }
 0x155   :  { %v4701_v44 = vadd.f32 %v690_v38, %v4608_v46  ;;  %v4706_v48 = vadd.f32 %v883_v45, %v4604_v42 }
 0x156   :  { %1179 = vmatmul.mubr.bf16.gmra.mrb[116].mxu0 %v4528_v17  ;;  %1372 = vmatmul.mubr.bf16.gmra.mrb[116].mxu1 %v4528_v17 }
 0x157   :  { %1188 = vmatprep.mubr.bf16.mxu0 %v4353_v0  ;;  %1381 = vmatprep.mubr.bf16.mxu1 %v4353_v0 }
 0x159   :  { %v694_v56 = vpop.f32.mrb[12].mxu0  ;;  %v887_v60 = vpop.f32.mrb[12].mxu1 }
 0x15a   :  { %v696_v3 = vpop.f32.mrb[13].mxu0  ;;  %v4719_v4 = vadd.f32 %v887_v60, %v4597_v39  ;;  %v889_v5 = vpop.f32.mrb[13].mxu1  ;;  %v4722_v9 = vadd.f32 %v694_v56, %v4601_v41 }
 0x15b   :  { %v698_v8 = vpop.f32.mrb[14].mxu0  ;;  %v4725_v17 = vadd.f32 %v889_v5, %v4604_v42  ;;  %v891_v14 = vpop.f32.mrb[14].mxu1  ;;  %v4731_v27 = vadd.f32 %v696_v3, %v4608_v46 }
 0x15c   :  { %6416 = vst [vmem:[#allocation15_spill] sm:$0xff] %v4719_v4  ;;  %6417 = vst [vmem:[#allocation16_spill] sm:$0xff] %v4722_v9  ;;  %v4728_v13 = vadd.f32 %v698_v8, %v4601_v41  ;;  %v700_v21 = vpop.f32.mrb[15].mxu0  ;;  %v4734_v28 = vadd.f32 %v891_v14, %v4597_v39  ;;  %v893_v31 = vpop.f32.mrb[15].mxu1 }
 0x15d   :  { %v4737_v29 = vadd.f32 %v700_v21, %v4608_v46  ;;  %v4742_v36 = vadd.f32 %v893_v31, %v4604_v42 }
 0x15e   :  { %6418 = vst [vmem:[#allocation17_spill] sm:$0xff] %v4734_v28  ;;  %1189 = vmatmul.mubr.bf16.gmra.mrb[120].mxu0 %v4534_v18  ;;  %1382 = vmatmul.mubr.bf16.gmra.mrb[120].mxu1 %v4534_v18 }
 0x15f   :  { %1198 = vmatprep.mubr.bf16.mxu0 %v4353_v0  ;;  %1391 = vmatprep.mubr.bf16.mxu1 %v4353_v0 }
 0x161   :  { %v704_v60 = vpop.f32.mrb[16].mxu0  ;;  %v897_v3 = vpop.f32.mrb[16].mxu1 }
 0x162   :  { %v706_v5 = vpop.f32.mrb[17].mxu0  ;;  %v4755_v8 = vadd.f32 %v897_v3, %v4597_v39  ;;  %v899_v14 = vpop.f32.mrb[17].mxu1  ;;  %v4758_v31 = vadd.f32 %v704_v60, %v4601_v41 }
 0x163   :  { %v708_v21 = vpop.f32.mrb[18].mxu0  ;;  %v4761_v18 = vadd.f32 %v899_v14, %v4604_v42  ;;  %v901_v33 = vpop.f32.mrb[18].mxu1  ;;  %v4767_v0 = vadd.f32 %v706_v5, %v4608_v46 }
 0x164   :  { %6419 = vst [vmem:[#allocation18_spill] sm:$0xff] %v4755_v8  ;;  %6420 = vst [vmem:[#allocation19_spill] sm:$0xff] %v4758_v31  ;;  %v4764_v38 = vadd.f32 %v708_v21, %v4601_v41  ;;  %v710_v56 = vpop.f32.mrb[19].mxu0  ;;  %v4770_v45 = vadd.f32 %v901_v33, %v4597_v39  ;;  %v903_v50 = vpop.f32.mrb[19].mxu1 }
 0x165   :  { %6421 = vst [vmem:[#allocation20_spill] sm:$0xff] %v4761_v18  ;;  %6423 = vst [vmem:[#allocation22_spill] sm:$0xff] %v4767_v0  ;;  %v4773_v3 = vadd.f32 %v710_v56, %v4608_v46  ;;  %v4778_v14 = vadd.f32 %v903_v50, %v4604_v42 }
 0x166   :  { %6422 = vst [vmem:[#allocation21_spill] sm:$0xff] %v4764_v38  ;;  %6424 = vst [vmem:[#allocation23_spill] sm:$0xff] %v4770_v45  ;;  %1199 = vmatmul.mubr.bf16.gmra.mrb[124].mxu0 %v4540_v19  ;;  %1392 = vmatmul.mubr.bf16.gmra.mrb[124].mxu1 %v4540_v19 }
 0x167   :  { %6425 = vst [vmem:[#allocation24_spill] sm:$0xff] %v4773_v3  ;;  %6426 = vst [vmem:[#allocation25_spill] sm:$0xff] %v4778_v14 }
 0x169   :  { %v714_v56 = vpop.f32.mrb[20].mxu0  ;;  %v907_v47 = vpop.f32.mrb[20].mxu1 }
 0x16a   :  { %v716_v55 = vpop.f32.mrb[21].mxu0  ;;  %v4789_v60 = vadd.f32 %v907_v47, %v4597_v39  ;;  %v909_v50 = vpop.f32.mrb[21].mxu1  ;;  %v4792_v21 = vadd.f32 %v714_v56, %v4601_v41 }
 0x16b   :  { %v718_v51 = vpop.f32.mrb[22].mxu0  ;;  %v4795_v5 = vadd.f32 %v909_v50, %v4604_v42  ;;  %v911_v33 = vpop.f32.mrb[22].mxu1  ;;  %v4801_v47 = vadd.f32 %v716_v55, %v4608_v46 }
 0x16c   :  { %6427 = vst [vmem:[#allocation26_spill] sm:$0xff] %v4789_v60  ;;  %6428 = vst [vmem:[#allocation27_spill] sm:$0xff] %v4792_v21  ;;  %v4798_v19 = vadd.f32 %v718_v51, %v4601_v41  ;;  %v720_v25 = vpop.f32.mrb[23].mxu0  ;;  %v4804_v1 = vadd.f32 %v911_v33, %v4597_v39  ;;  %v913_v56 = vpop.f32.mrb[23].mxu1 }
 0x16d   :  { %6429 = vst [vmem:[#allocation28_spill] sm:$0xff] %v4795_v5  ;;  %6431 = vst [vmem:[#allocation30_spill] sm:$0xff] %v4801_v47  ;;  %v4807_v63 = vadd.f32 %v720_v25, %v4608_v46  ;;  %v4812_v51 = vadd.f32 %v913_v56, %v4604_v42  ;;  %v3706_v5 = vld [vmem:[#allocation8 + $0xa8] sm:$0xff]  }
 0x16e   :  { %6430 = vst [vmem:[#allocation29_spill] sm:$0xff] %v4798_v19  ;;  %6432 = vst [vmem:[#allocation31_spill] sm:$0xff] %v4804_v1 }
 0x16f   :  { %6433 = vst [vmem:[#allocation32_spill] sm:$0xff] %v4807_v63  ;;  %6434 = vst [vmem:[#allocation33_spill] sm:$0xff] %v4812_v51 }
 0x171   :  { %v724_v24 = vpop.f32.mrb[24].mxu0  ;;  %v917_v26 = vpop.f32.mrb[24].mxu1 }
 0x172   :  { %v726_v8 = vpop.f32.mrb[25].mxu0  ;;  %v4821_v50 = vadd.f32 %v917_v26, %v4597_v39  ;;  %v919_v56 = vpop.f32.mrb[25].mxu1  ;;  %v4824_v21 = vadd.f32 %v724_v24, %v4601_v41  ;;  %v3705_v24 = vld [vmem:[#allocation8 + $0xe8] sm:$0xff]  }
 0x173   :  { %v728_v22 = vpop.f32.mrb[26].mxu0  ;;  %v4827_v55 = vadd.f32 %v919_v56, %v4604_v42  ;;  %v921_v25 = vpop.f32.mrb[26].mxu1  ;;  %v4833_v61 = vadd.f32 %v726_v8, %v4608_v46  ;;  %3553 = vmatprep.subr.bf16.mxu1 %v3705_v24 }
 0x174   :  { %6435 = vst [vmem:[#allocation34_spill] sm:$0xff] %v4821_v50  ;;  %6436 = vst [vmem:[#allocation35_spill] sm:$0xff] %v4824_v21  ;;  %v4830_v33 = vadd.f32 %v728_v22, %v4601_v41  ;;  %v730_v60 = vpop.f32.mrb[27].mxu0  ;;  %v4836_v26 = vadd.f32 %v921_v25, %v4597_v39  ;;  %v923_v19 = vpop.f32.mrb[27].mxu1  ;;  %3554 = vmatpush3.bf16.msra.mxu1 %v3706_v5 }
 0x175   :  { %6437 = vst [vmem:[#allocation36_spill] sm:$0xff] %v4827_v55  ;;  %6439 = vst [vmem:[#allocation38_spill] sm:$0xff] %v4833_v61  ;;  %v4839_v1 = vadd.f32 %v730_v60, %v4608_v46  ;;  %v4844_v22 = vadd.f32 %v923_v19, %v4604_v42 }
 0x176   :  { %6438 = vst [vmem:[#allocation37_spill] sm:$0xff] %v4830_v33  ;;  %6440 = vst [vmem:[#allocation39_spill] sm:$0xff] %v4836_v26 }
 0x177   :  { %6441 = vst [vmem:[#allocation40_spill] sm:$0xff] %v4839_v1  ;;  %6442 = vst [vmem:[#allocation41_spill] sm:$0xff] %v4844_v22 }
 0x179   :  { %v734_v2 = vpop.f32.mrb[28].mxu0  ;;  %v927_v51 = vpop.f32.mrb[28].mxu1 }
 0x17a   :  { %v736_v47 = vpop.f32.mrb[29].mxu0  ;;  %v4853_v63 = vadd.f32 %v927_v51, %v4597_v39  ;;  %v929_v56 = vpop.f32.mrb[29].mxu1  ;;  %v4856_v21 = vadd.f32 %v734_v2, %v4601_v41 }
 0x17b   :  { %v738_v19 = vpop.f32.mrb[30].mxu0  ;;  %v4859_v8 = vadd.f32 %v929_v56, %v4604_v42  ;;  %v931_v25 = vpop.f32.mrb[30].mxu1  ;;  %v4865_v5 = vadd.f32 %v736_v47, %v4608_v46 }
 0x17c   :  { %6443 = vst [vmem:[#allocation42_spill] sm:$0xff] %v4853_v63  ;;  %6444 = vst [vmem:[#allocation43_spill] sm:$0xff] %v4856_v21  ;;  %v4862_v24 = vadd.f32 %v738_v19, %v4601_v41  ;;  %v740_v60 = vpop.f32.mrb[31].mxu0  ;;  %v4868_v50 = vadd.f32 %v931_v25, %v4597_v39  ;;  %v933_v26 = vpop.f32.mrb[31].mxu1 }
 0x17d   :  { %6445 = vst [vmem:[#allocation44_spill] sm:$0xff] %v4859_v8  ;;  %6447 = vst [vmem:[#allocation46_spill] sm:$0xff] %v4865_v5  ;;  %v4871_v51 = vadd.f32 %v740_v60, %v4608_v46  ;;  %v4876_v56 = vadd.f32 %v933_v26, %v4604_v42  ;;  %v3709_v5 = vld [vmem:[#allocation8 + $0xf0] sm:$0xff]  }
 0x17e   :  { %6446 = vst [vmem:[#allocation45_spill] sm:$0xff] %v4862_v24  ;;  %6448 = vst [vmem:[#allocation47_spill] sm:$0xff] %v4868_v50  ;;  %3555 = vmatprep.subr.bf16.mxu1 %v3709_v5 }
 0x17f   :  { %6449 = vst [vmem:[#allocation48_spill] sm:$0xff] %v4871_v51  ;;  %6450 = vst [vmem:[#allocation49_spill] sm:$0xff] %v4876_v56  ;;  %v3710_v51 = vld [vmem:[#allocation8 + $0xb0] sm:$0xff]  }
 0x180   :  { %3556 = vmatpush3.bf16.msra.mxu1 %v3710_v51 }
 0x181   :  { %v744_v33 = vpop.f32.mrb[32].mxu0  ;;  %v937_v55 = vpop.f32.mrb[32].mxu1 }
 0x182   :  { %v746_v60 = vpop.f32.mrb[33].mxu0  ;;  %v4885_v22 = vadd.f32 %v937_v55, %v4597_v39  ;;  %v939_v61 = vpop.f32.mrb[33].mxu1  ;;  %v4888_v26 = vadd.f32 %v744_v33, %v4601_v41  ;;  %v3707_v33 = vld [vmem:[#allocation8 + $0x70] sm:$0xff]  }
 0x183   :  { %v748_v2 = vpop.f32.mrb[34].mxu0  ;;  %v4891_v21 = vadd.f32 %v939_v61, %v4604_v42  ;;  %v941_v47 = vpop.f32.mrb[34].mxu1  ;;  %v4897_v25 = vadd.f32 %v746_v60, %v4608_v46  ;;  %3443 = vmatprep.subr.bf16.mxu0 %v3707_v33 }
 0x184   :  { %6451 = vst [vmem:[#allocation50_spill] sm:$0xff] %v4885_v22  ;;  %6452 = vst [vmem:[#allocation51_spill] sm:$0xff] %v4888_v26  ;;  %v4894_v19 = vadd.f32 %v748_v2, %v4601_v41  ;;  %v750_v63 = vpop.f32.mrb[35].mxu0  ;;  %v4900_v50 = vadd.f32 %v941_v47, %v4597_v39  ;;  %v943_v24 = vpop.f32.mrb[35].mxu1  ;;  %v3708_v47 = vld [vmem:[#allocation8 + $0x30] sm:$0xff]  }
 0x185   :  { %6453 = vst [vmem:[#allocation52_spill] sm:$0xff] %v4891_v21  ;;  %6455 = vst [vmem:[#allocation54_spill] sm:$0xff] %v4897_v25  ;;  %v4903_v55 = vadd.f32 %v750_v63, %v4608_v46  ;;  %v4908_v8 = vadd.f32 %v943_v24, %v4604_v42  ;;  %3444 = vmatpush3.bf16.msra.mxu0 %v3708_v47 }
 0x186   :  { %6454 = vst [vmem:[#allocation53_spill] sm:$0xff] %v4894_v19  ;;  %6456 = vst [vmem:[#allocation55_spill] sm:$0xff] %v4900_v50 }
 0x187   :  { %6457 = vst [vmem:[#allocation56_spill] sm:$0xff] %v4903_v55  ;;  %6458 = vst [vmem:[#allocation57_spill] sm:$0xff] %v4908_v8  ;;  %v3713_v8 = vld [vmem:[#allocation8 + $0xf8] sm:$0xff]  }
 0x188   :  { %3557 = vmatprep.subr.bf16.mxu1 %v3713_v8 }
 0x189   :  { %v754_v56 = vpop.f32.mrb[36].mxu0  ;;  %v947_v1 = vpop.f32.mrb[36].mxu1 }
 0x18a   :  { %v756_v61 = vpop.f32.mrb[37].mxu0  ;;  %v4917_v24 = vadd.f32 %v947_v1, %v4597_v39  ;;  %v949_v26 = vpop.f32.mrb[37].mxu1  ;;  %v4920_v2 = vadd.f32 %v754_v56, %v4601_v41 }
 0x18b   :  { %v758_v19 = vpop.f32.mrb[38].mxu0  ;;  %v4923_v33 = vadd.f32 %v949_v26, %v4604_v42  ;;  %v951_v47 = vpop.f32.mrb[38].mxu1  ;;  %v4929_v22 = vadd.f32 %v756_v61, %v4608_v46  ;;  %v3711_v61 = vld [vmem:[#allocation8 + $0x78] sm:$0xff]  }
 0x18c   :  { %6459 = vst [vmem:[#allocation58_spill] sm:$0xff] %v4917_v24  ;;  %6460 = vst [vmem:[#allocation59_spill] sm:$0xff] %v4920_v2  ;;  %v4926_v63 = vadd.f32 %v758_v19, %v4601_v41  ;;  %v760_v60 = vpop.f32.mrb[39].mxu0  ;;  %v4932_v1 = vadd.f32 %v951_v47, %v4597_v39  ;;  %v953_v56 = vpop.f32.mrb[39].mxu1  ;;  %3445 = vmatprep.subr.bf16.mxu0 %v3711_v61  ;;  %v3714_v26 = vld [vmem:[#allocation8 + $0xb8] sm:$0xff]  }
 0x18d   :  { %6461 = vst [vmem:[#allocation60_spill] sm:$0xff] %v4923_v33  ;;  %6463 = vst [vmem:[#allocation62_spill] sm:$0xff] %v4929_v22  ;;  %v4935_v5 = vadd.f32 %v760_v60, %v4608_v46  ;;  %v4940_v50 = vadd.f32 %v953_v56, %v4604_v42  ;;  %v3712_v60 = vld [vmem:[#allocation8 + $0x38] sm:$0xff]   ;;  %3558 = vmatpush3.bf16.msra.mxu1 %v3714_v26 }
 0x18e   :  { %6462 = vst [vmem:[#allocation61_spill] sm:$0xff] %v4926_v63  ;;  %6464 = vst [vmem:[#allocation63_spill] sm:$0xff] %v4932_v1  ;;  %3446 = vmatpush3.bf16.msra.mxu0 %v3712_v60 }
 0x18f   :  { %6465 = vst [vmem:[#allocation64_spill] sm:$0xff] %v4935_v5  ;;  %6466 = vst [vmem:[#allocation65_spill] sm:$0xff] %v4940_v50 }
 0x191   :  { %v764_v21 = vpop.f32.mrb[40].mxu0  ;;  %v957_v25 = vpop.f32.mrb[40].mxu1 }
 0x192   :  { %v766_v55 = vpop.f32.mrb[41].mxu0  ;;  %v4949_v56 = vadd.f32 %v957_v25, %v4597_v39  ;;  %v959_v2 = vpop.f32.mrb[41].mxu1  ;;  %v4952_v19 = vadd.f32 %v764_v21, %v4601_v41 }
 0x193   :  { %v768_v63 = vpop.f32.mrb[42].mxu0  ;;  %v4955_v51 = vadd.f32 %v959_v2, %v4604_v42  ;;  %v961_v47 = vpop.f32.mrb[42].mxu1  ;;  %v4961_v1 = vadd.f32 %v766_v55, %v4608_v46 }
 0x194   :  { %6467 = vst [vmem:[#allocation66_spill] sm:$0xff] %v4949_v56  ;;  %6468 = vst [vmem:[#allocation67_spill] sm:$0xff] %v4952_v19  ;;  %v4958_v61 = vadd.f32 %v768_v63, %v4601_v41  ;;  %v770_v24 = vpop.f32.mrb[43].mxu0  ;;  %v4964_v25 = vadd.f32 %v961_v47, %v4597_v39  ;;  %v963_v21 = vpop.f32.mrb[43].mxu1 }
 0x195   :  { %6469 = vst [vmem:[#allocation68_spill] sm:$0xff] %v4955_v51  ;;  %6471 = vst [vmem:[#allocation70_spill] sm:$0xff] %v4961_v1  ;;  %v4967_v8 = vadd.f32 %v770_v24, %v4608_v46  ;;  %v4972_v60 = vadd.f32 %v963_v21, %v4604_v42 }
 0x196   :  { %6470 = vst [vmem:[#allocation69_spill] sm:$0xff] %v4958_v61  ;;  %6472 = vst [vmem:[#allocation71_spill] sm:$0xff] %v4964_v25 }
 0x197   :  { %6473 = vst [vmem:[#allocation72_spill] sm:$0xff] %v4967_v8  ;;  %6474 = vst [vmem:[#allocation73_spill] sm:$0xff] %v4972_v60 }
 0x199   :  { %v774_v47 = vpop.f32.mrb[44].mxu0  ;;  %v967_v33 = vpop.f32.mrb[44].mxu1 }
 0x19a   :  { %v776_v24 = vpop.f32.mrb[45].mxu0  ;;  %v4981_v50 = vadd.f32 %v967_v33, %v4597_v39  ;;  %v969_v22 = vpop.f32.mrb[45].mxu1  ;;  %v4984_v21 = vadd.f32 %v774_v47, %v4601_v41 }
 0x19b   :  { %v778_v2 = vpop.f32.mrb[46].mxu0  ;;  %v4987_v19 = vadd.f32 %v969_v22, %v4604_v42  ;;  %v971_v55 = vpop.f32.mrb[46].mxu1  ;;  %v4993_v26 = vadd.f32 %v776_v24, %v4608_v46 }
 0x19c   :  { %6475 = vst [vmem:[#allocation74_spill] sm:$0xff] %v4981_v50  ;;  %6476 = vst [vmem:[#allocation75_spill] sm:$0xff] %v4984_v21  ;;  %v4990_v63 = vadd.f32 %v778_v2, %v4601_v41  ;;  %v780_v56 = vpop.f32.mrb[47].mxu0  ;;  %v4996_v25 = vadd.f32 %v971_v55, %v4597_v39  ;;  %v973_v61 = vpop.f32.mrb[47].mxu1 }
 0x19d   :  { %6477 = vst [vmem:[#allocation76_spill] sm:$0xff] %v4987_v19  ;;  %6479 = vst [vmem:[#allocation78_spill] sm:$0xff] %v4993_v26  ;;  %v4999_v33 = vadd.f32 %v780_v56, %v4608_v46  ;;  %v5004_v22 = vadd.f32 %v973_v61, %v4604_v42 }
 0x19e   :  { %6478 = vst [vmem:[#allocation77_spill] sm:$0xff] %v4990_v63  ;;  %6480 = vst [vmem:[#allocation79_spill] sm:$0xff] %v4996_v25 }
 0x19f   :  { %6481 = vst [vmem:[#allocation80_spill] sm:$0xff] %v4999_v33  ;;  %6482 = vst [vmem:[#allocation81_spill] sm:$0xff] %v5004_v22 }
 0x1a1   :  { %v784_v51 = vpop.f32.mrb[48].mxu0  ;;  %v977_v60 = vpop.f32.mrb[48].mxu1 }
 0x1a2   :  { %v786_v56 = vpop.f32.mrb[49].mxu0  ;;  %v5013_v1 = vadd.f32 %v977_v60, %v4597_v39  ;;  %v979_v8 = vpop.f32.mrb[49].mxu1  ;;  %v5016_v61 = vadd.f32 %v784_v51, %v4601_v41 }
 0x1a3   :  { %v788_v47 = vpop.f32.mrb[50].mxu0  ;;  %v5019_v21 = vadd.f32 %v979_v8, %v4604_v42  ;;  %v981_v24 = vpop.f32.mrb[50].mxu1  ;;  %v5025_v55 = vadd.f32 %v786_v56, %v4608_v46 }
 0x1a4   :  { %6483 = vst [vmem:[#allocation82_spill] sm:$0xff] %v5013_v1  ;;  %6484 = vst [vmem:[#allocation83_spill] sm:$0xff] %v5016_v61  ;;  %v5022_v2 = vadd.f32 %v788_v47, %v4601_v41  ;;  %v790_v50 = vpop.f32.mrb[51].mxu0  ;;  %v5028_v25 = vadd.f32 %v981_v24, %v4597_v39  ;;  %v983_v63 = vpop.f32.mrb[51].mxu1 }
 0x1a5   :  { %6485 = vst [vmem:[#allocation84_spill] sm:$0xff] %v5019_v21  ;;  %6487 = vst [vmem:[#allocation86_spill] sm:$0xff] %v5025_v55  ;;  %v5031_v60 = vadd.f32 %v790_v50, %v4608_v46  ;;  %v5036_v8 = vadd.f32 %v983_v63, %v4604_v42 }
 0x1a6   :  { %6486 = vst [vmem:[#allocation85_spill] sm:$0xff] %v5022_v2  ;;  %6488 = vst [vmem:[#allocation87_spill] sm:$0xff] %v5028_v25 }
 0x1a7   :  { %6489 = vst [vmem:[#allocation88_spill] sm:$0xff] %v5031_v60  ;;  %6490 = vst [vmem:[#allocation89_spill] sm:$0xff] %v5036_v8 }
 0x1a9   :  { %v794_v19 = vpop.f32.mrb[52].mxu0  ;;  %v987_v22 = vpop.f32.mrb[52].mxu1 }
 0x1aa   :  { %v796_v50 = vpop.f32.mrb[53].mxu0  ;;  %v5045_v26 = vadd.f32 %v987_v22, %v4597_v39  ;;  %v989_v33 = vpop.f32.mrb[53].mxu1  ;;  %v5048_v63 = vadd.f32 %v794_v19, %v4601_v41 }
 0x1ab   :  { %v798_v51 = vpop.f32.mrb[54].mxu0  ;;  %v5051_v61 = vadd.f32 %v989_v33, %v4604_v42  ;;  %v991_v56 = vpop.f32.mrb[54].mxu1  ;;  %v5057_v24 = vadd.f32 %v796_v50, %v4608_v46 }
 0x1ac   :  { %6491 = vst [vmem:[#allocation90_spill] sm:$0xff] %v5045_v26  ;;  %6492 = vst [vmem:[#allocation91_spill] sm:$0xff] %v5048_v63  ;;  %v5054_v47 = vadd.f32 %v798_v51, %v4601_v41  ;;  %v800_v1 = vpop.f32.mrb[55].mxu0  ;;  %v5060_v25 = vadd.f32 %v991_v56, %v4597_v39  ;;  %v993_v2 = vpop.f32.mrb[55].mxu1 }
 0x1ad   :  { %6493 = vst [vmem:[#allocation92_spill] sm:$0xff] %v5051_v61  ;;  %6495 = vst [vmem:[#allocation94_spill] sm:$0xff] %v5057_v24  ;;  %v5063_v22 = vadd.f32 %v800_v1, %v4608_v46  ;;  %v5068_v33 = vadd.f32 %v993_v2, %v4604_v42 }
 0x1ae   :  { %6494 = vst [vmem:[#allocation93_spill] sm:$0xff] %v5054_v47  ;;  %6496 = vst [vmem:[#allocation95_spill] sm:$0xff] %v5060_v25 }
 0x1af   :  { %6497 = vst [vmem:[#allocation96_spill] sm:$0xff] %v5063_v22  ;;  %6498 = vst [vmem:[#allocation97_spill] sm:$0xff] %v5068_v33 }
 0x1b1   :  { %v804_v21 = vpop.f32.mrb[56].mxu0  ;;  %v997_v8 = vpop.f32.mrb[56].mxu1 }
 0x1b2   :  { %v806_v1 = vpop.f32.mrb[57].mxu0  ;;  %v5077_v55 = vadd.f32 %v997_v8, %v4597_v39  ;;  %v999_v60 = vpop.f32.mrb[57].mxu1  ;;  %v5080_v2 = vadd.f32 %v804_v21, %v4601_v41 }
 0x1b3   :  { %v808_v19 = vpop.f32.mrb[58].mxu0  ;;  %v5083_v63 = vadd.f32 %v999_v60, %v4604_v42  ;;  %v1001_v50 = vpop.f32.mrb[58].mxu1  ;;  %v5089_v56 = vadd.f32 %v806_v1, %v4608_v46 }
 0x1b4   :  { %6499 = vst [vmem:[#allocation98_spill] sm:$0xff] %v5077_v55  ;;  %6500 = vst [vmem:[#allocation99_spill] sm:$0xff] %v5080_v2  ;;  %v5086_v51 = vadd.f32 %v808_v19, %v4601_v41  ;;  %v810_v26 = vpop.f32.mrb[59].mxu0  ;;  %v5092_v25 = vadd.f32 %v1001_v50, %v4597_v39  ;;  %v1003_v47 = vpop.f32.mrb[59].mxu1  ;;  %v200_v2 = vsub.s32 6, %v4586_v32 }
 0x1b5   :  { %6501 = vst [vmem:[#allocation100_spill] sm:$0xff] %v5083_v63  ;;  %6503 = vst [vmem:[#allocation102_spill] sm:$0xff] %v5089_v56  ;;  %v5095_v8 = vadd.f32 %v810_v26, %v4608_v46  ;;  %v5100_v60 = vadd.f32 %v1003_v47, %v4604_v42  ;;  %v192_v47 = vsub.s32 4, %v4586_v32 }
 0x1b6   :  { %6502 = vst [vmem:[#allocation101_spill] sm:$0xff] %v5086_v51  ;;  %6504 = vst [vmem:[#allocation103_spill] sm:$0xff] %v5092_v25 }
 0x1b7   :  { %6505 = vst [vmem:[#allocation104_spill] sm:$0xff] %v5095_v8  ;;  %6506 = vst [vmem:[#allocation105_spill] sm:$0xff] %v5100_v60 }
 0x1b9   :  { %v814_v61 = vpop.f32.mrb[60].mxu0  ;;  %v1007_v33 = vpop.f32.mrb[60].mxu1 }
 0x1ba   :  { %v816_v26 = vpop.f32.mrb[61].mxu0  ;;  %v5109_v24 = vadd.f32 %v1007_v33, %v4597_v39  ;;  %v1009_v22 = vpop.f32.mrb[61].mxu1  ;;  %v5114_v19 = vadd.f32 %v814_v61, %v4601_v41  ;;  %v204_v33 = vsub.s32 7, %v4586_v32 }
 0x1bb   :  { %v818_v21 = vpop.f32.mrb[62].mxu0  ;;  %v5117_v1 = vadd.f32 %v1009_v22, %v4604_v42  ;;  %v1011_v63 = vpop.f32.mrb[62].mxu1  ;;  %v5124_v56 = vadd.f32 %v816_v26, %v4608_v46  ;;  %v196_v22 = vsub.s32 5, %v4586_v32  ;;  %v5148_v32 = vrot.slane %v4591_v37, %v192_v47 }
 0x1bc   :  { %6507 = vst [vmem:[#allocation106_spill] sm:$0xff] %v5109_v24  ;;  %6508 = vst [vmem:[#allocation107_spill] sm:$0xff] %v5114_v19  ;;  %v5120_v50 = vadd.f32 %v818_v21, %v4601_v41  ;;  %v820_v60 = vpop.f32.mrb[63].mxu0  ;;  %v5127_v8 = vadd.f32 %v1011_v63, %v4597_v39  ;;  %v1013_v61 = vpop.f32.mrb[63].mxu1  ;;  %v5143_v39 = vrot.slane %v4591_v37, %v200_v2 }
 0x1bd   :  { %6509 = vst [vmem:[#allocation108_spill] sm:$0xff] %v5117_v1  ;;  %6511 = vst [vmem:[#allocation110_spill] sm:$0xff] %v5124_v56  ;;  %v5130_v55 = vadd.f32 %v820_v60, %v4608_v46  ;;  %v5136_v21 = vadd.f32 %v1013_v61, %v4604_v42  ;;  %v5151_v63 = vrot.slane %v4591_v37, %v204_v33 }
 0x1be   :  { %6510 = vst [vmem:[#allocation109_spill] sm:$0xff] %v5120_v50  ;;  %6512 = vst [vmem:[#allocation111_spill] sm:$0xff] %v5127_v8  ;;  %v5154_v60 = vrot.slane %v4591_v37, %v196_v22 }
 0x1bf   :  { %6513 = vst [vmem:[#allocation112_spill] sm:$0xff] %v5130_v55  ;;  %6514 = vst [vmem:[#allocation113_spill] sm:$0xff] %v5136_v21 }
 0x1c1   :  { %v1050_v42 = vpop.f32.mrb[64].mxu0  ;;  %v1243_v61 = vpop.f32.mrb[64].mxu1 }
 0x1c2   :  { %v1052_v25 = vpop.f32.mrb[65].mxu0  ;;  %v1244_v26 = vadd.f32 %v1243_v61, %v5143_v39  ;;  %v1245_v41 = vpop.f32.mrb[65].mxu1  ;;  %v1051_v56 = vadd.f32 %v1050_v42, %v5148_v32 }
 0x1c3   :  { %v1054_v2 = vpop.f32.mrb[66].mxu0  ;;  %v1246_v46 = vadd.f32 %v1245_v41, %v5151_v63  ;;  %v1247_v1 = vpop.f32.mrb[66].mxu1  ;;  %v1053_v33 = vadd.f32 %v1052_v25, %v5154_v60 }
 0x1c4   :  { %v1055_v47 = vadd.f32 %v1054_v2, %v5148_v32  ;;  %v1056_v21 = vpop.f32.mrb[67].mxu0  ;;  %v1248_v55 = vadd.f32 %v1247_v1, %v5143_v39  ;;  %v1249_v22 = vpop.f32.mrb[67].mxu1 }
 0x1c5   :  { %v1057_v37 = vadd.f32 %v1056_v21, %v5154_v60  ;;  %v1250_v61 = vadd.f32 %v1249_v22, %v5151_v63 }
 0x1c6   :  { %v1466_v24 = vpack.c.bf16 %v1055_v47, %v1051_v56  ;;  %v1468_v8 = vpack.c.bf16 %v1248_v55, %v1244_v26 }
 0x1c7   :  { %v1467_v19 = vpack.c.bf16 %v1057_v37, %v1053_v33  ;;  %v1469_v42 = vpack.c.bf16 %v1250_v61, %v1246_v46 }
 0x1c8   :  { %v3270_v50 = vmul.bf16 3216621497, %v1466_v24  ;;  %v3272_v51 = vmul.bf16 3216621497, %v1468_v8 }
 0x1c9   :  { %v3271_v41 = vmul.bf16 3216621497, %v1467_v19  ;;  %v1060_v5 = vpop.f32.mrb[68].mxu0  ;;  %v3273_v2 = vmul.bf16 3216621497, %v1469_v42  ;;  %v1253_v45 = vpop.f32.mrb[68].mxu1 }
 0x1ca   :  { %3715 = vpow.bf16 %v3270_v50  ;;  %v1062_v31 = vpop.f32.mrb[69].mxu0  ;;  %v1254_v25 = vadd.f32 %v1253_v45, %v5143_v39  ;;  %v1255_v1 = vpop.f32.mrb[69].mxu1  ;;  %v1061_v56 = vadd.f32 %v1060_v5, %v5148_v32 }
 0x1cb   :  { %3717 = vpow.bf16 %v3272_v51  ;;  %v1064_v21 = vpop.f32.mrb[70].mxu0  ;;  %v1256_v55 = vadd.f32 %v1255_v1, %v5151_v63  ;;  %v1257_v26 = vpop.f32.mrb[70].mxu1  ;;  %v1063_v19 = vadd.f32 %v1062_v31, %v5154_v60 }
 0x1cc   :  { %3719 = vpow.bf16 %v3271_v41  ;;  %v1065_v24 = vadd.f32 %v1064_v21, %v5148_v32  ;;  %v1066_v8 = vpop.f32.mrb[71].mxu0  ;;  %v1258_v50 = vadd.f32 %v1257_v26, %v5143_v39  ;;  %v1259_v46 = vpop.f32.mrb[71].mxu1 }
 0x1cd   :  { %3721 = vpow.bf16 %v3273_v2  ;;  %v1067_v51 = vadd.f32 %v1066_v8, %v5154_v60  ;;  %v1260_v47 = vadd.f32 %v1259_v46, %v5151_v63 }
 0x1ce   :  { %v1470_v45 = vpack.c.bf16 %v1065_v24, %v1061_v56  ;;  %v1472_v33 = vpack.c.bf16 %v1258_v50, %v1254_v25 }
 0x1cf   :  { %v1471_v37 = vpack.c.bf16 %v1067_v51, %v1063_v19  ;;  %v1473_v22 = vpack.c.bf16 %v1260_v47, %v1256_v55 }
 0x1d0   :  { %v3274_v5 = vmul.bf16 3216621497, %v1470_v45  ;;  %v3276_v61 = vmul.bf16 3216621497, %v1472_v33 }
 0x1d1   :  { %v3275_v42 = vmul.bf16 3216621497, %v1471_v37  ;;  %v1070_v41 = vpop.f32.mrb[72].mxu0  ;;  %v3277_v1 = vmul.bf16 3216621497, %v1473_v22  ;;  %v1263_v2 = vpop.f32.mrb[72].mxu1 }
 0x1d2   :  { %3723 = vpow.bf16 %v3274_v5  ;;  %v1072_v21 = vpop.f32.mrb[73].mxu0  ;;  %v1264_v31 = vadd.f32 %v1263_v2, %v5143_v39  ;;  %v1265_v26 = vpop.f32.mrb[73].mxu1  ;;  %v1071_v56 = vadd.f32 %v1070_v41, %v5148_v32 }
 0x1d3   :  { %3725 = vpow.bf16 %v3276_v61  ;;  %v1074_v8 = vpop.f32.mrb[74].mxu0  ;;  %v1266_v25 = vadd.f32 %v1265_v26, %v5151_v63  ;;  %v1267_v55 = vpop.f32.mrb[74].mxu1  ;;  %v1073_v51 = vadd.f32 %v1072_v21, %v5154_v60 }
 0x1d4   :  { %3727 = vpow.bf16 %v3275_v42  ;;  %v1075_v24 = vadd.f32 %v1074_v8, %v5148_v32  ;;  %v1076_v19 = vpop.f32.mrb[75].mxu0  ;;  %v1268_v46 = vadd.f32 %v1267_v55, %v5143_v39  ;;  %v1269_v47 = vpop.f32.mrb[75].mxu1 }
 0x1d5   :  { %v3716_v50 = vpop.eup %3715  ;;  %3729 = vpow.bf16 %v3277_v1  ;;  %v1077_v45 = vadd.f32 %v1076_v19, %v5154_v60  ;;  %v1270_v22 = vadd.f32 %v1269_v47, %v5151_v63 }
 0x1d6   :  { %v3718_v33 = vpop.eup %3717  ;;  %v1786_v37 = vadd.bf16 1065369472, %v3716_v50  ;;  %v1474_v5 = vpack.c.bf16 %v1075_v24, %v1071_v56  ;;  %v1476_v41 = vpack.c.bf16 %v1268_v46, %v1264_v31 }
 0x1d7   :  { %v3720_v61 = vpop.eup %3719  ;;  %v1788_v42 = vadd.bf16 1065369472, %v3718_v33  ;;  %v1475_v2 = vpack.c.bf16 %v1077_v45, %v1073_v51  ;;  %v1477_v38 = vpack.c.bf16 %v1270_v22, %v1266_v25 }
 0x1d8   :  { %v3722_v26 = vpop.eup %3721  ;;  %3731 = vrcp.bf16 %v1786_v37  ;;  %v1787_v8 = vadd.bf16 1065369472, %v3720_v61  ;;  %v3278_v1 = vmul.bf16 3216621497, %v1474_v5  ;;  %v3280_v55 = vmul.bf16 3216621497, %v1476_v41 }
 0x1d9   :  { %3733 = vrcp.bf16 %v1788_v42  ;;  %v1789_v21 = vadd.bf16 1065369472, %v3722_v26  ;;  %v3279_v19 = vmul.bf16 3216621497, %v1475_v2  ;;  %v1080_v18 = vpop.f32.mrb[76].mxu0  ;;  %v1273_v14 = vpop.f32.mrb[76].mxu1 }
 0x1da   :  { %3735 = vrcp.bf16 %v1787_v8  ;;  %v3281_v56 = vmul.bf16 3216621497, %v1477_v38  ;;  %v1274_v24 = vadd.f32 %v1273_v14, %v5143_v39  ;;  %v1082_v50 = vpop.f32.mrb[77].mxu0  ;;  %v1275_v47 = vpop.f32.mrb[77].mxu1  ;;  %v1081_v31 = vadd.f32 %v1080_v18, %v5148_v32 }
 0x1db   :  { %3737 = vrcp.bf16 %v1789_v21  ;;  %v1276_v51 = vadd.f32 %v1275_v47, %v5151_v63  ;;  %v1084_v46 = vpop.f32.mrb[78].mxu0  ;;  %v1277_v25 = vpop.f32.mrb[78].mxu1  ;;  %v1083_v33 = vadd.f32 %v1082_v50, %v5154_v60 }
 0x1dc   :  { %3739 = vpow.bf16 %v3278_v1  ;;  %v1085_v37 = vadd.f32 %v1084_v46, %v5148_v32  ;;  %v1278_v5 = vadd.f32 %v1277_v25, %v5143_v39  ;;  %v1086_v38 = vpop.f32.mrb[79].mxu0  ;;  %v1279_v22 = vpop.f32.mrb[79].mxu1 }
 0x1dd   :  { %v3724_v45 = vpop.eup %3723  ;;  %3741 = vpow.bf16 %v3280_v55  ;;  %v1087_v42 = vadd.f32 %v1086_v38, %v5154_v60  ;;  %v1280_v18 = vadd.f32 %v1279_v22, %v5151_v63 }
 0x1de   :  { %v3726_v14 = vpop.eup %3725  ;;  %v1790_v61 = vadd.bf16 1065369472, %v3724_v45  ;;  %3743 = vpow.bf16 %v3279_v19  ;;  %v1478_v26 = vpack.c.bf16 %v1085_v37, %v1081_v31  ;;  %v1480_v8 = vpack.c.bf16 %v1278_v5, %v1274_v24 }
 0x1df   :  { %v3728_v41 = vpop.eup %3727  ;;  %v1792_v2 = vadd.bf16 1065369472, %v3726_v14  ;;  %3745 = vpow.bf16 %v3281_v56  ;;  %v1479_v55 = vpack.c.bf16 %v1087_v42, %v1083_v33  ;;  %v1481_v50 = vpack.c.bf16 %v1280_v18, %v1276_v51 }
 0x1e0   :  { %v3730_v1 = vpop.eup %3729  ;;  %v1791_v21 = vadd.bf16 1065369472, %v3728_v41  ;;  %3747 = vrcp.bf16 %v1790_v61  ;;  %v3282_v47 = vmul.bf16 3216621497, %v1478_v26  ;;  %v3284_v46 = vmul.bf16 3216621497, %v1480_v8 }
 0x1e1   :  { %3749 = vrcp.bf16 %v1792_v2  ;;  %v1793_v25 = vadd.bf16 1065369472, %v3730_v1  ;;  %v3283_v45 = vmul.bf16 3216621497, %v1479_v55  ;;  %v1090_v19 = vpop.f32.mrb[80].mxu0  ;;  %v1283_v0 = vpop.f32.mrb[80].mxu1 }
 0x1e2   :  { %3751 = vrcp.bf16 %v1791_v21  ;;  %v3285_v22 = vmul.bf16 3216621497, %v1481_v50  ;;  %v1091_v14 = vadd.f32 %v1090_v19, %v5148_v32  ;;  %v1284_v56 = vadd.f32 %v1283_v0, %v5143_v39  ;;  %v1092_v24 = vpop.f32.mrb[81].mxu0  ;;  %v1285_v31 = vpop.f32.mrb[81].mxu1 }
 0x1e3   :  { %v3732_v38 = vpop.eup %3731  ;;  %3753 = vpow.bf16 %v3282_v47  ;;  %v5191_v51 = vadd.f32 %v1092_v24, %v5154_v60  ;;  %v5194_v5 = vadd.f32 %v1285_v31, %v5151_v63  ;;  %v1094_v61 = vpop.f32.mrb[82].mxu0  ;;  %v6515_v21 = vpack.c.bf16 %v4620_v54, %v4614_v52 }
 0x1e4   :  { %v3734_v37 = vpop.eup %3733  ;;  %v1851_v33 = vmul.bf16 1065369472, %v3732_v38  ;;  %v1287_v42 = vpop.f32.mrb[82].mxu1  ;;  %3755 = vpow.bf16 %v3284_v46  ;;  %v1095_v2 = vadd.f32 %v1094_v61, %v5148_v32  ;;  %v6517_v19 = vpack.c.bf16 %v4626_v58, %v4611_v49 }
 0x1e5   :  { %v3736_v18 = vpop.eup %3735  ;;  %v1855_v41 = vmul.bf16 1065369472, %v3734_v37  ;;  %v1288_v0 = vadd.f32 %v1287_v42, %v5143_v39  ;;  %v1096_v26 = vpop.f32.mrb[83].mxu0  ;;  %3757 = vpow.bf16 %v3283_v45 }
 0x1e6   :  { %v1289_v8 = vpop.f32.mrb[83].mxu1  ;;  %v3738_v1 = vpop.eup %3737  ;;  %v5201_v55 = vmul.bf16 %v1851_v33, %v6515_v21  ;;  %v5204_v50 = vadd.f32 %v1096_v26, %v5154_v60  ;;  %3759 = vpow.bf16 %v3285_v22  ;;  %v1482_v24 = vpack.c.bf16 %v1095_v2, %v1091_v14 }
 0x1e7   :  { %v5207_v47 = vadd.f32 %v1289_v8, %v5151_v63  ;;  %v3740_v46 = vpop.eup %3739  ;;  %v5212_v38 = vmul.bf16 %v1855_v41, %v6517_v19  ;;  %v1484_v31 = vpack.c.bf16 %v1288_v0, %v1284_v56  ;;  %3761 = vrcp.bf16 %v1793_v25 }
 0x1e8   :  { %6516 = vst [vmem:[#allocation114_spill] sm:$0xff] %v5201_v55  ;;  %v3742_v37 = vpop.eup %3741  ;;  %v3334_v52 = vmul.bf16 3216621497, %v5201_v55  ;;  %v1794_v54 = vadd.bf16 1065369472, %v3740_v46  ;;  %v1483_v45 = vpack.c.bf16 %v5204_v50, %v5191_v51 }
 0x1e9   :  { %6518 = vst [vmem:[#allocation115_spill] sm:$0xff] %v5212_v38  ;;  %v1485_v33 = vpack.c.bf16 %v5207_v47, %v5194_v5  ;;  %v3744_v61 = vpop.eup %3743  ;;  %v3336_v42 = vmul.bf16 3216621497, %v5212_v38  ;;  %v1796_v49 = vadd.bf16 1065369472, %v3742_v37  ;;  %v1100_v2 = vpop.f32.mrb[84].mxu0 }
 0x1ea   :  { %v3746_v58 = vpop.eup %3745  ;;  %3763 = vpow.bf16 %v3334_v52  ;;  %v1795_v22 = vadd.bf16 1065369472, %v3744_v61  ;;  %v3286_v14 = vmul.bf16 3216621497, %v1482_v24  ;;  %v3288_v41 = vmul.bf16 3216621497, %v1484_v31 }
 0x1eb   :  { %3765 = vpow.bf16 %v3336_v42  ;;  %v1797_v56 = vadd.bf16 1065369472, %v3746_v58  ;;  %v1293_v0 = vpop.f32.mrb[84].mxu1  ;;  %v5220_v26 = vpop.eup %3747  ;;  %v1101_v51 = vadd.f32 %v1100_v2, %v5148_v32  ;;  %v1853_v25 = vmul.bf16 1065369472, %v3736_v18 }
 0x1ec   :  { %3767 = vrcp.bf16 %v1794_v54  ;;  %v1294_v5 = vadd.f32 %v1293_v0, %v5143_v39  ;;  %v1102_v8 = vpop.f32.mrb[85].mxu0  ;;  %v1295_v21 = vpop.f32.mrb[85].mxu1  ;;  %v1857_v31 = vmul.bf16 1065369472, %v3738_v1  ;;  %v6519_v18 = vpack.c.bf16 %v4629_v59, %v4623_v57 }
 0x1ed   :  { %v5224_v50 = vpop.eup %3749  ;;  %3769 = vrcp.bf16 %v1796_v49  ;;  %v1103_v47 = vadd.f32 %v1102_v8, %v5154_v60  ;;  %v1296_v46 = vadd.f32 %v1295_v21, %v5151_v63  ;;  %v1104_v19 = vpop.f32.mrb[86].mxu0  ;;  %v6520_v1 = vpack.c.bf16 %v4634_v62, %v4617_v53 }
 0x1ee   :  { %v1297_v24 = vpop.f32.mrb[86].mxu1  ;;  %v3752_v37 = vpop.eup %3751  ;;  %3771 = vrcp.bf16 %v1795_v22  ;;  %v1105_v52 = vadd.f32 %v1104_v19, %v5148_v32  ;;  %v5233_v58 = vmul.bf16 %v1853_v25, %v6519_v18  ;;  %v3289_v53 = vmul.bf16 3216621497, %v1485_v33 }
 0x1ef   :  { %v1298_v54 = vadd.f32 %v1297_v24, %v5143_v39  ;;  %v1106_v61 = vpop.f32.mrb[87].mxu0  ;;  %v1299_v42 = vpop.f32.mrb[87].mxu1  ;;  %3773 = vrcp.bf16 %v1797_v56  ;;  %v5240_v22 = vmul.bf16 %v1857_v31, %v6520_v1 }
 0x1f0   :  { %v3754_v49 = vpop.eup %3753  ;;  %v1107_v2 = vadd.f32 %v1106_v61, %v5154_v60  ;;  %v1300_v0 = vadd.f32 %v1299_v42, %v5151_v63  ;;  %3775 = vpow.bf16 %v3286_v14  ;;  %v1486_v19 = vpack.c.bf16 %v1105_v52, %v1101_v51 }
 0x1f1   :  { %v3756_v8 = vpop.eup %3755  ;;  %v1798_v21 = vadd.bf16 1065369472, %v3754_v49  ;;  %v1488_v24 = vpack.c.bf16 %v1298_v54, %v1294_v5  ;;  %3777 = vpow.bf16 %v3288_v41  ;;  %v1110_v56 = vpop.f32.mrb[88].mxu0  ;;  %v3287_v42 = vmul.bf16 3216621497, %v1483_v45 }
 0x1f2   :  { %v3758_v3 = vpop.eup %3757  ;;  %v1800_v57 = vadd.bf16 1065369472, %v3756_v8  ;;  %v1487_v59 = vpack.c.bf16 %v1107_v2, %v1103_v47  ;;  %v1489_v25 = vpack.c.bf16 %v1300_v0, %v1296_v46  ;;  %v3290_v62 = vmul.bf16 3216621497, %v1486_v19  ;;  %v1303_v5 = vpop.f32.mrb[88].mxu1 }
 0x1f3   :  { %v3760_v18 = vpop.eup %3759  ;;  %3779 = vrcp.bf16 %v1798_v21  ;;  %v1799_v61 = vadd.bf16 1065369472, %v3758_v3  ;;  %v3292_v14 = vmul.bf16 3216621497, %v1488_v24  ;;  %v1112_v52 = vpop.f32.mrb[89].mxu0  ;;  %v1304_v47 = vadd.f32 %v1303_v5, %v5143_v39 }
 0x1f4   :  { %3781 = vrcp.bf16 %v1800_v57  ;;  %v1801_v38 = vadd.bf16 1065369472, %v3760_v18  ;;  %v5242_v31 = vpop.eup %3761  ;;  %v3291_v51 = vmul.bf16 3216621497, %v1487_v59  ;;  %v3293_v41 = vmul.bf16 3216621497, %v1489_v25 }
 0x1f5   :  { %3783 = vrcp.bf16 %v1799_v61  ;;  %v5244_v54 = vpop.eup %3763  ;;  %v1305_v46 = vpop.f32.mrb[89].mxu1  ;;  %v1861_v45 = vmul.bf16 1065369472, %v3752_v37  ;;  %v1111_v33 = vadd.f32 %v1110_v56, %v5148_v32  ;;  %v6521_v56 = vpack.c.bf16 %v4665_v20, %v4659_v15 }
 0x1f6   :  { %3785 = vrcp.bf16 %v1801_v38  ;;  %v1114_v3 = vpop.f32.mrb[90].mxu0  ;;  %v5247_v49 = vpop.eup %3765  ;;  %v1306_v2 = vadd.f32 %v1305_v46, %v5151_v63  ;;  %v1113_v38 = vadd.f32 %v1112_v52, %v5154_v60 }
 0x1f7   :  { %3787 = vpow.bf16 %v3287_v42  ;;  %v1115_v0 = vadd.f32 %v1114_v3, %v5148_v32  ;;  %v1307_v1 = vpop.f32.mrb[90].mxu1  ;;  %v1116_v8 = vpop.f32.mrb[91].mxu0  ;;  %v5263_v18 = vmul.bf16 %v1861_v45, %v6521_v56 }
 0x1f8   :  { %v5252_v21 = vpop.eup %3767  ;;  %3789 = vpow.bf16 %v3289_v53  ;;  %v1308_v19 = vadd.f32 %v1307_v1, %v5143_v39  ;;  %v1117_v37 = vadd.f32 %v1116_v8, %v5154_v60  ;;  %v1309_v24 = vpop.f32.mrb[91].mxu1 }
 0x1f9   :  { %v5257_v57 = vpop.eup %3769  ;;  %3791 = vpow.bf16 %v3290_v62  ;;  %v1490_v59 = vpack.c.bf16 %v1115_v0, %v1111_v33  ;;  %v1310_v25 = vadd.f32 %v1309_v24, %v5151_v63  ;;  %v1120_v5 = vpop.f32.mrb[92].mxu0  ;;  %v1865_v0 = vmul.bf16 1065369472, %v5242_v31 }
 0x1fa   :  { %v5265_v61 = vpop.eup %3771  ;;  %3793 = vpow.bf16 %v3292_v14  ;;  %v1492_v42 = vpack.c.bf16 %v1308_v19, %v1304_v47  ;;  %v1491_v53 = vpack.c.bf16 %v1117_v37, %v1113_v38  ;;  %v1313_v62 = vpop.f32.mrb[92].mxu1  ;;  %v1121_v45 = vadd.f32 %v1120_v5, %v5148_v32 }
 0x1fb   :  { %v5267_v52 = vpop.eup %3773  ;;  %3795 = vpow.bf16 %v3291_v51  ;;  %v3294_v46 = vmul.bf16 3216621497, %v1490_v59  ;;  %v1493_v3 = vpack.c.bf16 %v1310_v25, %v1306_v2  ;;  %v1122_v33 = vpop.f32.mrb[93].mxu0  ;;  %v1314_v51 = vadd.f32 %v1313_v62, %v5143_v39 }
 0x1fc   :  { %v3776_v1 = vpop.eup %3775  ;;  %3797 = vpow.bf16 %v3293_v41  ;;  %v3296_v15 = vmul.bf16 3216621497, %v1492_v42  ;;  %v3295_v20 = vmul.bf16 3216621497, %v1491_v53  ;;  %v1315_v8 = vpop.f32.mrb[93].mxu1  ;;  %v1123_v31 = vadd.f32 %v1122_v33, %v5154_v60 }
 0x1fd   :  { %v1124_v14 = vpop.f32.mrb[94].mxu0  ;;  %v3778_v47 = vpop.eup %3777  ;;  %v1802_v38 = vadd.bf16 1065369472, %v3776_v1  ;;  %3799 = vpow.bf16 %v3294_v46  ;;  %v3297_v19 = vmul.bf16 3216621497, %v1493_v3  ;;  %v5276_v41 = vadd.f32 %v1315_v8, %v5151_v63 }
 0x1fe   :  { %v1317_v37 = vpop.f32.mrb[94].mxu1  ;;  %v1126_v2 = vpop.f32.mrb[95].mxu0  ;;  %3801 = vpow.bf16 %v3296_v15  ;;  %v1125_v59 = vadd.f32 %v1124_v14, %v5148_v32  ;;  %v1804_v42 = vadd.bf16 1065369472, %v3778_v47  ;;  %v6522_v33 = vpack.c.bf16 %v4670_v23, %v4653_v11 }
 0x1ff   :  { %v5272_v24 = vpop.eup %3779  ;;  %v1319_v25 = vpop.f32.mrb[95].mxu1  ;;  %v1318_v53 = vadd.f32 %v1317_v37, %v5143_v39  ;;  %v1127_v5 = vadd.f32 %v1126_v2, %v5154_v60  ;;  %3803 = vrcp.bf16 %v1802_v38 }
 0x200   :  { %v5279_v56 = vpop.eup %3781  ;;  %v1320_v46 = vadd.f32 %v1319_v25, %v5151_v63  ;;  %v1494_v62 = vpack.c.bf16 %v1125_v59, %v1121_v45  ;;  %v5289_v1 = vmul.bf16 %v1865_v0, %v6522_v33  ;;  %3805 = vpow.bf16 %v3295_v20 }
 0x201   :  { %v5284_v3 = vpop.eup %3783  ;;  %v1496_v8 = vpack.c.bf16 %v1318_v53, %v1314_v51  ;;  %v1495_v14 = vpack.c.bf16 %v1127_v5, %v1123_v31  ;;  %3807 = vpow.bf16 %v3297_v19  ;;  %v1130_v25 = vpop.f32.mrb[96].mxu0 }
 0x202   :  { %v5291_v15 = vpop.eup %3785  ;;  %v1497_v47 = vpack.c.bf16 %v1320_v46, %v5276_v41  ;;  %v3298_v2 = vmul.bf16 3216621497, %v1494_v62  ;;  %3809 = vrcp.bf16 %v1804_v42  ;;  %v1131_v20 = vadd.f32 %v1130_v25, %v5148_v32  ;;  %v1323_v51 = vpop.f32.mrb[96].mxu1 }
 0x203   :  { %v3788_v37 = vpop.eup %3787  ;;  %v3300_v45 = vmul.bf16 3216621497, %v1496_v8  ;;  %v3299_v0 = vmul.bf16 3216621497, %v1495_v14  ;;  %v1132_v31 = vpop.f32.mrb[97].mxu0  ;;  %v1324_v19 = vadd.f32 %v1323_v51, %v5143_v39 }
 0x204   :  { %v3790_v55 = vpop.eup %3789  ;;  %v1803_v38 = vadd.bf16 1065369472, %v3788_v37  ;;  %3811 = vpow.bf16 %v3298_v2  ;;  %v5298_v5 = vadd.f32 %v1132_v31, %v5154_v60  ;;  %v1325_v42 = vpop.f32.mrb[97].mxu1 }
 0x205   :  { %v3792_v11 = vpop.eup %3791  ;;  %v1805_v23 = vadd.bf16 1065369472, %v3790_v55  ;;  %v1134_v46 = vpop.f32.mrb[98].mxu0  ;;  %v5301_v55 = vadd.f32 %v1325_v42, %v5151_v63 }
 0x206   :  { %v3794_v53 = vpop.eup %3793  ;;  %3813 = vrcp.bf16 %v1803_v38  ;;  %v1806_v41 = vadd.bf16 1065369472, %v3792_v11  ;;  %v1135_v8 = vadd.f32 %v1134_v46, %v5148_v32  ;;  %v1327_v14 = vpop.f32.mrb[98].mxu1 }
 0x207   :  { %v3796_v62 = vpop.eup %3795  ;;  %3815 = vrcp.bf16 %v1805_v23  ;;  %v1808_v33 = vadd.bf16 1065369472, %v3794_v53  ;;  %v1136_v37 = vpop.f32.mrb[99].mxu0  ;;  %v1328_v38 = vadd.f32 %v1327_v14, %v5143_v39 }
 0x208   :  { %v3798_v2 = vpop.eup %3797  ;;  %3817 = vrcp.bf16 %v1806_v41  ;;  %v1807_v25 = vadd.bf16 1065369472, %v3796_v62  ;;  %v1137_v11 = vadd.f32 %v1136_v37, %v5154_v60  ;;  %v1329_v51 = vpop.f32.mrb[99].mxu1  ;;  %v1498_v23 = vpack.c.bf16 %v1135_v8, %v1131_v20 }
 0x209   :  { %v3800_v31 = vpop.eup %3799  ;;  %3819 = vrcp.bf16 %v1808_v33  ;;  %v1809_v59 = vadd.bf16 1065369472, %v3798_v2  ;;  %v1330_v53 = vadd.f32 %v1329_v51, %v5151_v63  ;;  %v1500_v46 = vpack.c.bf16 %v1328_v38, %v1324_v19  ;;  %v1140_v9 = vpop.f32.mrb[100].mxu0 }
 0x20a   :  { %v3802_v42 = vpop.eup %3801  ;;  %3821 = vrcp.bf16 %v1807_v25  ;;  %v1810_v4 = vadd.bf16 1065369472, %v3800_v31  ;;  %v1499_v28 = vpack.c.bf16 %v1137_v11, %v5298_v5  ;;  %v3301_v62 = vmul.bf16 3216621497, %v1497_v47  ;;  %v1333_v20 = vpop.f32.mrb[100].mxu1 }
 0x20b   :  { %3823 = vrcp.bf16 %v1809_v59  ;;  %v1812_v41 = vadd.bf16 1065369472, %v3802_v42  ;;  %v1501_v14 = vpack.c.bf16 %v1330_v53, %v5301_v55  ;;  %v5309_v37 = vpop.eup %3803  ;;  %v3302_v33 = vmul.bf16 3216621497, %v1498_v23  ;;  %v1142_v8 = vpop.f32.mrb[101].mxu0 }
 0x20c   :  { %3825 = vrcp.bf16 %v1810_v4  ;;  %v3304_v2 = vmul.bf16 3216621497, %v1500_v46  ;;  %v3806_v51 = vpop.eup %3805  ;;  %v5312_v25 = vadd.f32 %v1140_v9, %v5148_v32  ;;  %v5315_v19 = vadd.f32 %v1333_v20, %v5143_v39  ;;  %v1335_v59 = vpop.f32.mrb[101].mxu1 }
 0x20d   :  { %3827 = vrcp.bf16 %v1812_v41  ;;  %v5318_v47 = vadd.f32 %v1142_v8, %v5154_v60  ;;  %v1144_v5 = vpop.f32.mrb[102].mxu0  ;;  %v3808_v55 = vpop.eup %3807  ;;  %v1811_v38 = vadd.bf16 1065369472, %v3806_v51  ;;  %v5321_v4 = vadd.f32 %v1335_v59, %v5151_v63 }
 0x20e   :  { %3829 = vpow.bf16 %v3300_v45  ;;  %v5324_v11 = vadd.f32 %v1144_v5, %v5148_v32  ;;  %v1337_v31 = vpop.f32.mrb[102].mxu1  ;;  %v1146_v9 = vpop.f32.mrb[103].mxu0  ;;  %v1813_v53 = vadd.bf16 1065369472, %v3808_v55  ;;  %v1859_v51 = vmul.bf16 1065369472, %v5220_v26 }
 0x20f   :  { %v5326_v23 = vpop.eup %3809  ;;  %3831 = vpow.bf16 %v3299_v0  ;;  %v5329_v42 = vadd.f32 %v1337_v31, %v5143_v39  ;;  %v5332_v46 = vadd.f32 %v1146_v9, %v5154_v60  ;;  %v1339_v41 = vpop.f32.mrb[103].mxu1  ;;  %v6523_v26 = vpack.c.bf16 %v4656_v12, %v4650_v10 }
 0x210   :  { %v3812_v45 = vpop.eup %3811  ;;  %3833 = vrcp.bf16 %v1811_v38  ;;  %v1502_v20 = vpack.c.bf16 %v5324_v11, %v5312_v25  ;;  %v5337_v8 = vadd.f32 %v1339_v41, %v5151_v63  ;;  %v3303_v38 = vmul.bf16 3216621497, %v1499_v28 }
 0x211   :  { %v5340_v59 = vpop.eup %3813  ;;  %3835 = vrcp.bf16 %v1813_v53  ;;  %v1814_v0 = vadd.bf16 1065369472, %v3812_v45  ;;  %v1504_v5 = vpack.c.bf16 %v5329_v42, %v5315_v19  ;;  %v1503_v55 = vpack.c.bf16 %v5332_v46, %v5318_v47  ;;  %v1150_v42 = vpop.f32.mrb[104].mxu0 }
 0x212   :  { %v5346_v31 = vpop.eup %3815  ;;  %3837 = vpow.bf16 %v3301_v62  ;;  %v5353_v11 = vmul.bf16 %v1859_v51, %v6523_v26  ;;  %v3305_v53 = vmul.bf16 3216621497, %v1501_v14  ;;  %v3337_v19 = vmul.bf16 3216621497, %v5240_v22  ;;  %v1343_v10 = vpop.f32.mrb[104].mxu1 }
 0x213   :  { %v5355_v9 = vpop.eup %3817  ;;  %3839 = vrcp.bf16 %v1814_v0  ;;  %v2298_v28 = vadd.bf16 1065369472, %v5244_v54  ;;  %v2300_v62 = vadd.bf16 1065369472, %v5247_v49  ;;  %v5363_v46 = vadd.f32 %v1150_v42, %v5148_v32  ;;  %v1152_v12 = vpop.f32.mrb[105].mxu0 }
 0x214   :  { %6524 = vst [vmem:[#allocation116_spill] sm:$0xff] %v5353_v11  ;;  %6525 = vst [vmem:[#allocation117_spill] sm:$0xff] %v5355_v9  ;;  %v5358_v47 = vpop.eup %3819  ;;  %3841 = vpow.bf16 %v3302_v33  ;;  %v5368_v14 = vadd.f32 %v1343_v10, %v5143_v39  ;;  %v5371_v45 = vadd.f32 %v1152_v12, %v5154_v60  ;;  %v1345_v51 = vpop.f32.mrb[105].mxu1  ;;  %v1863_v33 = vmul.bf16 1065369472, %v5224_v50 }
 0x215   :  { %6526 = vst [vmem:[#allocation118_spill] sm:$0xff] %v5358_v47  ;;  %v5365_v41 = vpop.eup %3821  ;;  %3843 = vpow.bf16 %v3304_v2  ;;  %v1154_v54 = vpop.f32.mrb[106].mxu0  ;;  %v5377_v49 = vadd.f32 %v1345_v51, %v5151_v63  ;;  %v1869_v10 = vmul.bf16 1065369472, %v5265_v61  ;;  %v6530_v50 = vpack.c.bf16 %v4662_v7, %v4647_v6 }
 0x216   :  { %6527 = vst [vmem:[#allocation119_spill] sm:$0xff] %v5365_v41  ;;  %v5374_v0 = vpop.eup %3823  ;;  %3845 = vpow.bf16 %v3303_v38  ;;  %v5380_v26 = vadd.f32 %v1154_v54, %v5148_v32  ;;  %v1347_v2 = vpop.f32.mrb[106].mxu1  ;;  %v6533_v9 = vmul.bf16 3216621497, %v5233_v58  ;;  %v6534_v6 = vpack.c.bf16 %v4701_v44, %v4695_v40 }
 0x217   :  { %6528 = vst [vmem:[#allocation120_spill] sm:$0xff] %v5374_v0  ;;  %v1156_v42 = vpop.f32.mrb[107].mxu0  ;;  %v5383_v25 = vpop.eup %3825  ;;  %3847 = vpow.bf16 %v3305_v53  ;;  %v5388_v12 = vmul.bf16 %v1863_v33, %v6530_v50  ;;  %v5391_v38 = vadd.f32 %v1347_v2, %v5143_v39  ;;  %v3306_v61 = vmul.bf16 3216621497, %v1502_v20 }
 0x218   :  { %6529 = vst [vmem:[#allocation121_spill] sm:$0xff] %v5383_v25  ;;  %v5394_v51 = vadd.f32 %v1156_v42, %v5154_v60  ;;  %v1349_v54 = vpop.f32.mrb[107].mxu1  ;;  %v5396_v47 = vpop.eup %3827  ;;  %3849 = vpow.bf16 %v6533_v9  ;;  %v5408_v7 = vmul.bf16 %v1869_v10, %v6534_v6  ;;  %v3308_v44 = vmul.bf16 3216621497, %v1504_v5 }
 0x219   :  { %6531 = vst [vmem:[#allocation122_spill] sm:$0xff] %v5388_v12  ;;  %6532 = vst [vmem:[#allocation123_spill] sm:$0xff] %v5396_v47  ;;  %v5403_v53 = vadd.f32 %v1349_v54, %v5151_v63  ;;  %v3830_v33 = vpop.eup %3829  ;;  %3851 = vpow.bf16 %v3337_v19  ;;  %v1160_v19 = vpop.f32.mrb[108].mxu0  ;;  %v3307_v42 = vmul.bf16 3216621497, %v1503_v55  ;;  %v6538_v55 = vpack.c.bf16 %v4706_v48, %v4689_v16 }
 0x21a   :  { %v3832_v9 = vpop.eup %3831  ;;  %v1816_v50 = vadd.bf16 1065369472, %v3830_v33  ;;  %3853 = vrcp.bf16 %v2298_v28  ;;  %v1353_v6 = vpop.f32.mrb[108].mxu1  ;;  %v1873_v33 = vmul.bf16 1065369472, %v5267_v52  ;;  %v6539_v48 = vpack.c.bf16 %v4692_v35, %v4686_v34 }
 0x21b   :  { %v5416_v47 = vpop.eup %3833  ;;  %v1815_v40 = vadd.bf16 1065369472, %v3832_v9  ;;  %3855 = vrcp.bf16 %v2300_v62  ;;  %v1162_v28 = vpop.f32.mrb[109].mxu0  ;;  %v5424_v9 = vadd.f32 %v1160_v19, %v5148_v32  ;;  %v5427_v5 = vadd.f32 %v1353_v6, %v5143_v39 }
 0x21c   :  { %6535 = vst [vmem:[#allocation124_spill] sm:$0xff] %v5416_v47  ;;  %v5418_v10 = vpop.eup %3835  ;;  %3857 = vrcp.bf16 %v1816_v50  ;;  %v1355_v20 = vpop.f32.mrb[109].mxu1  ;;  %v5432_v52 = vmul.bf16 %v1873_v33, %v6538_v55  ;;  %v3339_v16 = vmul.bf16 3216621497, %v5263_v18  ;;  %v3341_v55 = vmul.bf16 3216621497, %v5289_v1 }
 0x21d   :  { %6536 = vst [vmem:[#allocation125_spill] sm:$0xff] %v5418_v10  ;;  %v3838_v2 = vpop.eup %3837  ;;  %3859 = vrcp.bf16 %v1815_v40  ;;  %v1164_v62 = vpop.f32.mrb[110].mxu0  ;;  %v1867_v40 = vmul.bf16 1065369472, %v5252_v21 }
 0x21e   :  { %v5421_v25 = vpop.eup %3839  ;;  %v1817_v54 = vadd.bf16 1065369472, %v3838_v2  ;;  %3861 = vpow.bf16 %v3306_v61  ;;  %v1357_v50 = vpop.f32.mrb[110].mxu1  ;;  %v1871_v2 = vmul.bf16 1065369472, %v5257_v57  ;;  %v5437_v6 = vadd.f32 %v1164_v62, %v5148_v32 }
 0x21f   :  { %6537 = vst [vmem:[#allocation126_spill] sm:$0xff] %v5421_v25  ;;  %v3842_v10 = vpop.eup %3841  ;;  %3863 = vpow.bf16 %v3308_v44  ;;  %v1166_v61 = vpop.f32.mrb[111].mxu0  ;;  %v5440_v0 = vadd.f32 %v1357_v50, %v5143_v39  ;;  %v5446_v21 = vmul.bf16 %v1867_v40, %v6539_v48 }
 0x220   :  { %v1359_v25 = vpop.f32.mrb[111].mxu1  ;;  %v3844_v19 = vpop.eup %3843  ;;  %3865 = vrcp.bf16 %v1817_v54  ;;  %v1818_v47 = vadd.bf16 1065369472, %v3842_v10  ;;  %v6540_v10 = vpack.c.bf16 %v4698_v43, %v4683_v30  ;;  %v6541_v30 = vpack.c.bf16 %v5337_v8, %v5321_v4 }
 0x221   :  { %v3846_v44 = vpop.eup %3845  ;;  %v1820_v41 = vadd.bf16 1065369472, %v3844_v19  ;;  %3867 = vpow.bf16 %v3307_v42  ;;  %v1170_v35 = vpop.f32.mrb[112].mxu0  ;;  %v5470_v48 = vadd.f32 %v1166_v61, %v5154_v60  ;;  %v3338_v4 = vmul.bf16 3216621497, %v5353_v11 }
 0x222   :  { %v3848_v57 = vpop.eup %3847  ;;  %3869 = vrcp.bf16 %v1818_v47  ;;  %v1819_v54 = vadd.bf16 1065369472, %v3846_v44  ;;  %v5451_v33 = vmul.bf16 %v1871_v2, %v6540_v10  ;;  %v3309_v43 = vmul.bf16 3216621497, %v6541_v30 }
 0x223   :  { %v3850_v50 = vpop.eup %3849  ;;  %3871 = vrcp.bf16 %v1820_v41  ;;  %v1821_v42 = vadd.bf16 1065369472, %v3848_v57  ;;  %v5462_v2 = vadd.f32 %v1355_v20, %v5151_v63  ;;  %v5467_v44 = vadd.f32 %v1162_v28, %v5154_v60  ;;  %v1363_v57 = vpop.f32.mrb[112].mxu1 }
 0x224   :  { %v3852_v40 = vpop.eup %3851  ;;  %3873 = vrcp.bf16 %v1819_v54  ;;  %v2299_v47 = vadd.bf16 1065369472, %v3850_v50  ;;  %v1172_v54 = vpop.f32.mrb[113].mxu0  ;;  %v3340_v8 = vmul.bf16 3216621497, %v5388_v12  ;;  %v5477_v20 = vadd.f32 %v1359_v25, %v5151_v63 }
 0x225   :  { %v5464_v19 = vpop.eup %3853  ;;  %3875 = vrcp.bf16 %v1821_v42  ;;  %v2301_v41 = vadd.bf16 1065369472, %v3852_v40  ;;  %v1365_v50 = vpop.f32.mrb[113].mxu1  ;;  %v6543_v28 = vpack.c.bf16 %v5380_v26, %v5363_v46  ;;  %v6544_v30 = vpack.c.bf16 %v5391_v38, %v5368_v14 }
 0x226   :  { %v5472_v10 = vpop.eup %3855  ;;  %3877 = vrcp.bf16 %v2299_v47  ;;  %v1174_v42 = vpop.f32.mrb[114].mxu0  ;;  %v1877_v26 = vmul.bf16 1065369472, %v5284_v3  ;;  %v6547_v38 = vpack.c.bf16 %v5403_v53, %v5377_v49  ;;  %v5511_v49 = vadd.f32 %v1170_v35, %v5148_v32 }
 0x227   :  { %v5479_v40 = vpop.eup %3857  ;;  %3879 = vrcp.bf16 %v2301_v41  ;;  %v3310_v61 = vmul.bf16 3216621497, %v6543_v28  ;;  %v3312_v47 = vmul.bf16 3216621497, %v6544_v30  ;;  %v1367_v62 = vpop.f32.mrb[114].mxu1 }
 0x228   :  { %6542 = vst [vmem:[#allocation127_spill] sm:$0xff] %v5479_v40  ;;  %v1176_v12 = vpop.f32.mrb[115].mxu0  ;;  %v5489_v25 = vpop.eup %3859  ;;  %3881 = vpow.bf16 %v3309_v43  ;;  %v6546_v40 = vpack.c.bf16 %v5394_v51, %v5371_v45  ;;  %v3313_v30 = vmul.bf16 3216621497, %v6547_v38  ;;  %v1881_v43 = vmul.bf16 1065369472, %v5291_v15 }
 0x229   :  { %6545 = vst [vmem:[#allocation128_spill] sm:$0xff] %v5489_v25  ;;  %v1369_v28 = vpop.f32.mrb[115].mxu1  ;;  %v3862_v14 = vpop.eup %3861  ;;  %3883 = vpow.bf16 %v3339_v16  ;;  %v6548_v51 = vpack.c.bf16 %v4737_v29, %v4731_v27  ;;  %v6551_v15 = vpack.c.bf16 %v4742_v36, %v4725_v17  ;;  %v5521_v27 = vadd.f32 %v1363_v57, %v5143_v39 }
 0x22a   :  { %v3311_v41 = vmul.bf16 3216621497, %v6546_v40  ;;  %v3864_v25 = vpop.eup %3863  ;;  %v1822_v11 = vadd.bf16 1065369472, %v3862_v14  ;;  %3885 = vpow.bf16 %v3341_v55  ;;  %v5518_v55 = vpop.f32.mrb[116].mxu0  ;;  %v5524_v29 = vadd.f32 %v1172_v54, %v5154_v60  ;;  %v6554_v54 = vld [vmem:[#allocation16_spill] sm:$0xff] }
 0x22b   :  { %v5506_v3 = vmul.bf16 %v1877_v26, %v6548_v51  ;;  %v5508_v40 = vpop.eup %3865  ;;  %v1824_v16 = vadd.bf16 1065369472, %v3864_v25  ;;  %3887 = vpow.bf16 %v3338_v4  ;;  %v5516_v53 = vmul.bf16 %v1881_v43, %v6551_v15  ;;  %v5527_v25 = vpop.f32.mrb[116].mxu1 }
 0x22c   :  { %6550 = vst [vmem:[#allocation130_spill] sm:$0xff] %v5508_v40  ;;  %v3868_v14 = vpop.eup %3867  ;;  %3889 = vrcp.bf16 %v1822_v11  ;;  %v1875_v4 = vmul.bf16 1065369472, %v5272_v24  ;;  %v5529_v35 = vpop.f32.mrb[117].mxu0  ;;  %v5534_v36 = vadd.f32 %v1365_v50, %v5151_v63  ;;  %v1879_v11 = vmul.bf16 1065369472, %v5279_v56 }
 0x22d   :  { %6549 = vst [vmem:[#allocation129_spill] sm:$0xff] %v5506_v3  ;;  %v5531_v26 = vpop.eup %3869  ;;  %3891 = vrcp.bf16 %v1824_v16  ;;  %v1823_v17 = vadd.bf16 1065369472, %v3868_v14  ;;  %v6555_v38 = vpack.c.bf16 %v4728_v13, %v6554_v54  ;;  %v5545_v43 = vadd.f32 %v1174_v42, %v5148_v32  ;;  %v5550_v16 = vpop.f32.mrb[117].mxu1  ;;  %v6557_v56 = vld [vmem:[#allocation17_spill] sm:$0xff] }
 0x22e   :  { %6552 = vst [vmem:[#allocation131_spill] sm:$0xff] %v5531_v26  ;;  %v5537_v57 = vpop.eup %3871  ;;  %3893 = vpow.bf16 %v3340_v8  ;;  %v5548_v51 = vadd.f32 %v1367_v62, %v5143_v39  ;;  %v5552_v50 = vpop.f32.mrb[118].mxu0  ;;  %v6558_v8 = vld [vmem:[#allocation15_spill] sm:$0xff]  ;;  %v5562_v13 = vadd.f32 %v1176_v12, %v5154_v60  ;;  %v5565_v42 = vadd.f32 %v1369_v28, %v5151_v63 }
 0x22f   :  { %6553 = vst [vmem:[#allocation132_spill] sm:$0xff] %v5537_v57  ;;  %v5542_v24 = vmul.bf16 %v1875_v4, %v6555_v38  ;;  %v5554_v15 = vpop.eup %3873  ;;  %3895 = vrcp.bf16 %v1823_v17  ;;  %v6559_v14 = vpack.c.bf16 %v6557_v56, %v6558_v8  ;;  %v5567_v62 = vpop.f32.mrb[118].mxu1  ;;  %v2363_v38 = vmul.bf16 1065369472, %v5464_v19 }
 0x230   :  { %6556 = vst [vmem:[#allocation16_spill] sm:$0xff] %v5554_v15  ;;  %v5569_v4 = vpop.f32.mrb[119].mxu0  ;;  %v5571_v54 = vpop.eup %3875  ;;  %3897 = vpow.bf16 %v3310_v61  ;;  %v2367_v28 = vmul.bf16 1065369472, %v5472_v10  ;;  %v3342_v17 = vmul.bf16 3216621497, %v5446_v21  ;;  %v6562_v10 = vpack.c.bf16 %v5437_v6, %v5424_v9 }
 0x231   :  { %v5559_v46 = vmul.bf16 %v1879_v11, %v6559_v14  ;;  %6561 = vst [vmem:[#allocation15_spill] sm:$0xff] %v5571_v54  ;;  %v5578_v12 = vpop.f32.mrb[119].mxu1  ;;  %v3878_v56 = vpop.eup %3877  ;;  %3899 = vpow.bf16 %v3312_v47  ;;  %v3344_v45 = vmul.bf16 3216621497, %v5451_v33  ;;  %v6563_v8 = vpack.c.bf16 %v5440_v0, %v5427_v5 }
 0x232   :  { %v3880_v19 = vpop.eup %3879  ;;  %v2365_v61 = vmul.bf16 1065369472, %v3878_v56  ;;  %3901 = vpow.bf16 %v3311_v41  ;;  %v5590_v47 = vmul.bf16 3216621497, %v6562_v10  ;;  %v6564_v56 = vld [vmem:[#allocation114_spill] sm:$0xff]  ;;  %v6566_v10 = vld [vmem:[#allocation115_spill] sm:$0xff] }
 0x233   :  { %6560 = vst [vmem:[#allocation17_spill] sm:$0xff] %v5559_v46  ;;  %v3882_v11 = vpop.eup %3881  ;;  %v2369_v34 = vmul.bf16 1065369472, %v3880_v19  ;;  %3903 = vpow.bf16 %v3313_v30  ;;  %v5595_v57 = vmul.bf16 3216621497, %v6563_v8  ;;  %v2490_v26 = vmul.bf16 %v2363_v38, %v6564_v56  ;;  %v5601_v30 = vpop.f32.mrb[120].mxu0 }
 0x234   :  { %v3884_v14 = vpop.eup %3883  ;;  %v2491_v41 = vmul.bf16 %v2365_v61, %v5233_v58  ;;  %v1825_v54 = vadd.bf16 1065369472, %v3882_v11  ;;  %v6565_v15 = vmul.bf16 3216621497, %v5408_v7  ;;  %v5603_v19 = vpop.f32.mrb[120].mxu1  ;;  %v2492_v0 = vmul.bf16 %v2367_v28, %v6566_v10 }
 0x235   :  { %v3886_v9 = vpop.eup %3885  ;;  %v2493_v6 = vmul.bf16 %v2369_v34, %v5240_v22  ;;  %v2303_v5 = vadd.bf16 1065369472, %v3884_v14  ;;  %v6567_v8 = vmul.bf16 3216621497, %v5432_v52  ;;  %v5609_v58 = vpop.f32.mrb[121].mxu0  ;;  %v5619_v34 = vadd.f32 %v5518_v55, %v5148_v32  ;;  %v6575_v55 = vld [vmem:[#allocation20_spill] sm:$0xff] }
 0x236   :  { %3905 = vpow.bf16 %v6565_v15  ;;  %v5611_v38 = vpop.f32.mrb[121].mxu1  ;;  %v3888_v11 = vpop.eup %3887  ;;  %2849 = vmatprep.mubr.bf16.mxu0 %v2491_v41  ;;  %v2305_v15 = vadd.bf16 1065369472, %v3886_v9  ;;  %v1885_v61 = vmul.bf16 1065369472, %v5340_v59  ;;  %v5623_v28 = vadd.f32 %v5527_v25, %v5143_v39 }
 0x237   :  { %3907 = vpow.bf16 %v6567_v8  ;;  %v1889_v56 = vmul.bf16 1065369472, %v5346_v31  ;;  %v5615_v40 = vpop.eup %3889  ;;  %3010 = vmatprep.mubr.bf16.mxu1 %v2493_v6  ;;  %2850 = vmatmul.mubr.bf16.vlgmr.msra.gmra.mrb[128].mxu0 %v2490_v26  ;;  %v2302_v22 = vadd.bf16 1065369472, %v3888_v11  ;;  %v5627_v14 = vpop.f32.mrb[122].mxu1  ;;  %v6571_v31 = vld [vmem:[#allocation24_spill] sm:$0xff] }
 0x238   :  { %3909 = vrcp.bf16 %v1825_v54  ;;  %6568 = vst [vmem:[#allocation114_spill] sm:$0xff] %v5615_v40  ;;  %6569 = vst [vmem:[#allocation115_spill] sm:$0xff] %v5623_v28  ;;  %v5625_v54 = vpop.f32.mrb[122].mxu0  ;;  %v5629_v59 = vpop.eup %3891  ;;  %3011 = vmatmul.mubr.bf16.vlgmr.msra.gmra.mrb[128].mxu1 %v2492_v0  ;;  %v6572_v26 = vld [vmem:[#allocation22_spill] sm:$0xff]  ;;  %v6574_v6 = vld [vmem:[#allocation25_spill] sm:$0xff] }
 0x239   :  { %3911 = vrcp.bf16 %v2303_v5  ;;  %6570 = vst [vmem:[#allocation133_spill] sm:$0xff] %v5629_v59  ;;  %v6573_v41 = vpack.c.bf16 %v6571_v31, %v6572_v26  ;;  %v6576_v10 = vpack.c.bf16 %v6574_v6, %v6575_v55  ;;  %v1883_v25 = vmul.bf16 1065369472, %v5309_v37  ;;  %v5642_v8 = vpop.f32.mrb[123].mxu0  ;;  %v5644_v11 = vpop.f32.mrb[123].mxu1  ;;  %v6582_v6 = vld [vmem:[#allocation19_spill] sm:$0xff] }
 0x23a   :  { %3913 = vrcp.bf16 %v2305_v15  ;;  %v3894_v40 = vpop.eup %3893  ;;  %v1887_v0 = vmul.bf16 1065369472, %v5326_v23  ;;  %v5649_v15 = vadd.f32 %v5552_v50, %v5148_v32  ;;  %v6579_v37 = vpack.c.bf16 %v5470_v48, %v5467_v44  ;;  %v6581_v50 = vld [vmem:[#allocation21_spill] sm:$0xff]  ;;  %v6585_v59 = vld [vmem:[#allocation18_spill] sm:$0xff]  ;;  %v5677_v48 = vpop.f32.mrb[124].mxu0 }
 0x23b   :  { %v5634_v9 = vmul.bf16 %v1885_v61, %v6573_v41  ;;  %v5639_v5 = vmul.bf16 %v1889_v56, %v6576_v10  ;;  %3915 = vrcp.bf16 %v2302_v22  ;;  %v5653_v61 = vadd.f32 %v5567_v62, %v5143_v39  ;;  %v5655_v56 = vpop.eup %3895  ;;  %v6584_v10 = vld [vmem:[#allocation23_spill] sm:$0xff] }
 0x23c   :  { %6578 = vst [vmem:[#allocation22_spill] sm:$0xff] %v5655_v56  ;;  %v2304_v31 = vadd.bf16 1065369472, %v3894_v40  ;;  %3917 = vpow.bf16 %v3342_v17  ;;  %v3315_v26 = vmul.bf16 3216621497, %v6579_v37  ;;  %v6580_v22 = vpack.c.bf16 %v5477_v20, %v5462_v2  ;;  %v3898_v41 = vpop.eup %3897  ;;  %v5685_v37 = vpop.f32.mrb[124].mxu1 }
 0x23d   :  { %6577 = vst [vmem:[#allocation24_spill] sm:$0xff] %v5653_v61  ;;  %3919 = vpow.bf16 %v3344_v45  ;;  %v6583_v55 = vpack.c.bf16 %v6581_v50, %v6582_v6  ;;  %v6586_v40 = vpack.c.bf16 %v6584_v10, %v6585_v59  ;;  %v3900_v2 = vpop.eup %3899  ;;  %v1826_v20 = vadd.bf16 1065369472, %v3898_v41  ;;  %v5687_v59 = vpop.f32.mrb[125].mxu0  ;;  %v6594_v45 = vld [vmem:[#allocation119_spill] sm:$0xff] }
 0x23e   :  { %v5663_v23 = vmul.bf16 3216621497, %v6580_v22  ;;  %3921 = vrcp.bf16 %v2304_v31  ;;  %v1828_v22 = vadd.bf16 1065369472, %v3900_v2  ;;  %v5692_v50 = vadd.f32 %v5529_v35, %v5154_v60  ;;  %v5706_v2 = vpop.f32.mrb[125].mxu1 }
 0x23f   :  { %v5668_v62 = vmul.bf16 %v1883_v25, %v6583_v55  ;;  %v5673_v17 = vmul.bf16 %v1887_v0, %v6586_v40  ;;  %v5683_v25 = vadd.f32 %v5569_v4, %v5154_v60  ;;  %v3902_v0 = vpop.eup %3901  ;;  %3923 = vpow.bf16 %v5590_v47  ;;  %v5711_v44 = vpop.f32.mrb[126].mxu1 }
 0x240   :  { %6588 = vst [vmem:[#allocation20_spill] sm:$0xff] %v5692_v50  ;;  %v5696_v31 = vadd.f32 %v5550_v16, %v5151_v63  ;;  %v3904_v41 = vpop.eup %3903  ;;  %3925 = vrcp.bf16 %v1826_v20  ;;  %v1827_v4 = vadd.bf16 1065369472, %v3902_v0  ;;  %v3347_v6 = vmul.bf16 3216621497, %v5506_v3  ;;  %v5708_v16 = vpop.f32.mrb[126].mxu0 }
 0x241   :  { %6587 = vst [vmem:[#allocation25_spill] sm:$0xff] %v5683_v25  ;;  %v3906_v10 = vpop.eup %3905  ;;  %3927 = vrcp.bf16 %v1828_v22  ;;  %v1829_v40 = vadd.bf16 1065369472, %v3904_v41  ;;  %v5704_v35 = vadd.f32 %v5578_v12, %v5151_v63  ;;  %v5713_v22 = vpop.f32.mrb[127].mxu0  ;;  %v3348_v12 = vmul.bf16 3216621497, %v5559_v46 }
 0x242   :  { %6589 = vst [vmem:[#allocation21_spill] sm:$0xff] %v5696_v31  ;;  %v3908_v20 = vpop.eup %3907  ;;  %3929 = vrcp.bf16 %v1827_v4  ;;  %v2307_v0 = vadd.bf16 1065369472, %v3906_v10  ;;  %v5720_v56 = vpop.f32.mrb[127].mxu1  ;;  %v6593_v4 = vpack.c.bf16 %v5545_v43, %v5511_v49  ;;  %v1893_v50 = vmul.bf16 1065369472, %v6594_v45 }
 0x243   :  { %6590 = vst [vmem:[#allocation19_spill] sm:$0xff] %v5704_v35  ;;  %v5715_v41 = vpop.eup %3909  ;;  %3931 = vrcp.bf16 %v1829_v40  ;;  %v2309_v47 = vadd.bf16 1065369472, %v3908_v20  ;;  %6592 = vst [vmem:[#allocation18_spill] sm:$0xff] %v5720_v56  ;;  %v6595_v25 = vld [vmem:[#allocation120_spill] sm:$0xff]  ;;  %v6596_v20 = vpack.c.bf16 %v5548_v51, %v5521_v27  ;;  %v5732_v55 = vadd.f32 %v5601_v30, %v5148_v32  ;;  %v6598_v43 = vld [vmem:[#allocation30_spill] sm:$0xff] }
 0x244   :  { %6591 = vst [vmem:[#allocation23_spill] sm:$0xff] %v5715_v41  ;;  %v3912_v3 = vpop.eup %3911  ;;  %3933 = vrcp.bf16 %v2307_v0  ;;  %v3318_v10 = vmul.bf16 3216621497, %v6593_v4  ;;  %v1897_v28 = vmul.bf16 1065369472, %v6595_v25  ;;  %v6597_v49 = vld [vmem:[#allocation32_spill] sm:$0xff] }
 0x245   :  { %v3914_v41 = vpop.eup %3913  ;;  %v2373_v40 = vmul.bf16 1065369472, %v3912_v3  ;;  %3935 = vrcp.bf16 %v2309_v47  ;;  %v3320_v46 = vmul.bf16 3216621497, %v6596_v20  ;;  %v6599_v45 = vpack.c.bf16 %v6597_v49, %v6598_v43  ;;  %v6601_v25 = vld [vmem:[#allocation33_spill] sm:$0xff]  ;;  %v6602_v3 = vld [vmem:[#allocation28_spill] sm:$0xff] }
 0x246   :  { %v3916_v0 = vpop.eup %3915  ;;  %v2377_v31 = vmul.bf16 1065369472, %v3914_v41  ;;  %3937 = vpow.bf16 %v5595_v57  ;;  %v6603_v47 = vpack.c.bf16 %v6601_v25, %v6602_v3  ;;  %v6604_v30 = vld [vmem:[#allocation117_spill] sm:$0xff] }
 0x247   :  { %v5738_v4 = vmul.bf16 %v1893_v50, %v6599_v45  ;;  %v3918_v27 = vpop.eup %3917  ;;  %v2495_v51 = vmul.bf16 %v2373_v40, %v5263_v18  ;;  %v2371_v20 = vmul.bf16 1065369472, %v3916_v0  ;;  %3939 = vpow.bf16 %v3315_v26 }
 0x248   :  { %v5743_v35 = vmul.bf16 %v1897_v28, %v6603_v47  ;;  %v1891_v61 = vmul.bf16 1065369472, %v6604_v30  ;;  %v3920_v41 = vpop.eup %3919  ;;  %v2497_v57 = vmul.bf16 %v2377_v31, %v5289_v1  ;;  %v2306_v56 = vadd.bf16 1065369472, %v3918_v27  ;;  %v6605_v28 = vld [vmem:[#allocation116_spill] sm:$0xff]  ;;  %v6606_v31 = vld [vmem:[#allocation29_spill] sm:$0xff] }
 0x249   :  { %6600 = vst [vmem:[#allocation119_spill] sm:$0xff] %v5738_v4  ;;  %3941 = vpow.bf16 %v5663_v23  ;;  %v5751_v50 = vadd.f32 %v5603_v19, %v5143_v39  ;;  %v3922_v49 = vpop.eup %3921  ;;  %2857 = vmatprep.mubr.bf16.mxu0 %v2495_v51  ;;  %v2494_v43 = vmul.bf16 %v2371_v20, %v6605_v28  ;;  %v2308_v45 = vadd.bf16 1065369472, %v3920_v41  ;;  %v6607_v23 = vld [vmem:[#allocation27_spill] sm:$0xff]  ;;  %v6610_v19 = vld [vmem:[#allocation118_spill] sm:$0xff] }
 0x24a   :  { %3943 = vpow.bf16 %v3347_v6  ;;  %v5756_v18 = vadd.f32 %v5609_v58, %v5154_v60  ;;  %v3924_v26 = vpop.eup %3923  ;;  %3018 = vmatprep.mubr.bf16.mxu1 %v2497_v57  ;;  %v2375_v1 = vmul.bf16 1065369472, %v3922_v49  ;;  %v6608_v40 = vpack.c.bf16 %v6606_v31, %v6607_v23  ;;  %v6611_v27 = vld [vmem:[#allocation122_spill] sm:$0xff]  ;;  %v6613_v30 = vld [vmem:[#allocation31_spill] sm:$0xff] }
 0x24b   :  { %3945 = vrcp.bf16 %v2306_v56  ;;  %v1895_v25 = vmul.bf16 1065369472, %v6610_v19  ;;  %v5764_v3 = vpop.eup %3925  ;;  %2858 = vmatmul.mubr.bf16.gmra.mrb[132].mxu0 %v2494_v43  ;;  %v1830_v6 = vadd.bf16 1065369472, %v3924_v26  ;;  %v5768_v58 = vadd.f32 %v5625_v54, %v5148_v32  ;;  %v6614_v41 = vld [vmem:[#allocation26_spill] sm:$0xff] }
 0x24c   :  { %v5761_v0 = vmul.bf16 %v1891_v61, %v6608_v40  ;;  %3947 = vrcp.bf16 %v2308_v45  ;;  %v5772_v47 = vadd.f32 %v5627_v14, %v5143_v39  ;;  %v5774_v56 = vpop.eup %3927  ;;  %v2496_v61 = vmul.bf16 %v2375_v1, %v6611_v27 }
 0x24d   :  { %v6612_v51 = vmul.bf16 3216621497, %v5516_v53  ;;  %v5781_v20 = vadd.f32 %v5611_v38, %v5151_v63  ;;  %v6615_v57 = vpack.c.bf16 %v6613_v30, %v6614_v41  ;;  %v5788_v49 = vpop.eup %3929  ;;  %v5796_v43 = vadd.f32 %v5642_v8, %v5154_v60 }
 0x24e   :  { %6609 = vst [vmem:[#allocation120_spill] sm:$0xff] %v5761_v0  ;;  %v5798_v38 = vpop.eup %3931  ;;  %3019 = vmatmul.mubr.bf16.gmra.mrb[132].mxu1 %v2496_v61  ;;  %v6617_v45 = vmul.bf16 3216621497, %v5542_v24  ;;  %v6618_v26 = vpack.c.bf16 %v5562_v13, %v5524_v29  ;;  %v5807_v31 = vadd.f32 %v5644_v11, %v5151_v63  ;;  %v6619_v8 = vpack.c.bf16 %v5565_v42, %v5534_v36  ;;  %v6620_v61 = vld [vmem:[#allocation124_spill] sm:$0xff] }
 0x24f   :  { %3949 = vpow.bf16 %v6612_v51  ;;  %v5786_v54 = vmul.bf16 %v1895_v25, %v6615_v57  ;;  %v3934_v23 = vpop.eup %3933  ;;  %v3351_v11 = vmul.bf16 3216621497, %v5634_v9  ;;  %v3353_v30 = vmul.bf16 3216621497, %v5639_v5 }
 0x250   :  { %3951 = vrcp.bf16 %v1830_v6  ;;  %v3319_v1 = vmul.bf16 3216621497, %v6618_v26  ;;  %v3321_v40 = vmul.bf16 3216621497, %v6619_v8  ;;  %v3936_v25 = vpop.eup %3935  ;;  %v2381_v6 = vmul.bf16 1065369472, %v3934_v23 }
 0x251   :  { %6616 = vst [vmem:[#allocation32_spill] sm:$0xff] %v5786_v54  ;;  %3953 = vpow.bf16 %v6617_v45  ;;  %v3938_v13 = vpop.eup %3937  ;;  %v2385_v27 = vmul.bf16 1065369472, %v3936_v25  ;;  %v6621_v45 = vld [vmem:[#allocation40_spill] sm:$0xff]  ;;  %v6622_v26 = vld [vmem:[#allocation38_spill] sm:$0xff] }
 0x252   :  { %3955 = vpow.bf16 %v3348_v12  ;;  %v1901_v12 = vmul.bf16 1065369472, %v6620_v61  ;;  %v3940_v51 = vpop.eup %3939  ;;  %v2499_v36 = vmul.bf16 %v2381_v6, %v5408_v7  ;;  %v1832_v42 = vadd.bf16 1065369472, %v3938_v13  ;;  %v6624_v6 = vld [vmem:[#allocation125_spill] sm:$0xff] }
 0x253   :  { %3957 = vpow.bf16 %v3318_v10  ;;  %v2501_v10 = vmul.bf16 %v2385_v27, %v5432_v52  ;;  %v1831_v57 = vadd.bf16 1065369472, %v3940_v51  ;;  %v6623_v23 = vpack.c.bf16 %v6621_v45, %v6622_v26  ;;  %v6625_v51 = vld [vmem:[#allocation41_spill] sm:$0xff] }
 0x254   :  { %3959 = vpow.bf16 %v3320_v46  ;;  %v3942_v41 = vpop.eup %3941  ;;  %2865 = vmatprep.mubr.bf16.mxu0 %v2499_v36  ;;  %v3350_v7 = vmul.bf16 3216621497, %v5668_v62  ;;  %v3352_v52 = vmul.bf16 3216621497, %v5673_v17  ;;  %v6626_v36 = vld [vmem:[#allocation36_spill] sm:$0xff]  ;;  %v6628_v45 = vld [vmem:[#allocation121_spill] sm:$0xff] }
 0x255   :  { %3961 = vpow.bf16 %v3319_v1  ;;  %v5824_v46 = vmul.bf16 %v1901_v12, %v6623_v23  ;;  %v3944_v8 = vpop.eup %3943  ;;  %v1833_v25 = vadd.bf16 1065369472, %v3942_v41  ;;  %v1905_v1 = vmul.bf16 1065369472, %v6624_v6  ;;  %3026 = vmatprep.mubr.bf16.mxu1 %v2501_v10 }
 0x256   :  { %3963 = vpow.bf16 %v3321_v40  ;;  %v3946_v13 = vpop.eup %3945  ;;  %v2311_v61 = vadd.bf16 1065369472, %v3944_v8  ;;  %v5831_v40 = vadd.f32 %v5677_v48, %v5148_v32  ;;  %v1899_v26 = vmul.bf16 1065369472, %v6628_v45 }
 0x257   :  { %3965 = vrcp.bf16 %v1832_v42  ;;  %v3948_v27 = vpop.eup %3947  ;;  %v2379_v12 = vmul.bf16 1065369472, %v3946_v13  ;;  %v6627_v42 = vpack.c.bf16 %v6625_v51, %v6626_v36  ;;  %v5842_v6 = vadd.f32 %v5708_v16, %v5148_v32  ;;  %v6631_v36 = vld [vmem:[#allocation35_spill] sm:$0xff]  ;;  %v6634_v16 = vld [vmem:[#allocation34_spill] sm:$0xff] }
 0x258   :  { %3967 = vrcp.bf16 %v1831_v57  ;;  %v2383_v10 = vmul.bf16 1065369472, %v3948_v27  ;;  %v6629_v57 = vld [vmem:[#allocation123_spill] sm:$0xff] }
 0x259   :  { %3969 = vrcp.bf16 %v1833_v25  ;;  %v5836_v41 = vmul.bf16 %v1905_v1, %v6627_v42  ;;  %v1903_v8 = vmul.bf16 1065369472, %v6629_v57  ;;  %v2498_v25 = vmul.bf16 %v2379_v12, %v5446_v21  ;;  %v6633_v32 = vld [vmem:[#allocation39_spill] sm:$0xff] }
 0x25a   :  { %v3950_v23 = vpop.eup %3949  ;;  %3971 = vrcp.bf16 %v2311_v61  ;;  %v5849_v1 = vadd.f32 %v5685_v37, %v5143_v39  ;;  %v2500_v27 = vmul.bf16 %v2383_v10, %v5451_v33  ;;  %v6630_v61 = vld [vmem:[#allocation37_spill] sm:$0xff]  ;;  %v6635_v57 = vpack.c.bf16 %v6633_v32, %v6634_v16  ;;  %v6641_v32 = vld [vmem:[#allocation128_spill] sm:$0xff] }
 0x25b   :  { %v5844_v48 = vpop.eup %3951  ;;  %v2313_v13 = vadd.bf16 1065369472, %v3950_v23  ;;  %3973 = vpow.bf16 %v3351_v11  ;;  %v6632_v42 = vpack.c.bf16 %v6630_v61, %v6631_v36  ;;  %2866 = vmatmul.mubr.bf16.gmra.mrb[136].mxu0 %v2498_v25  ;;  %v5866_v33 = vadd.f32 %v5711_v44, %v5143_v39  ;;  %v6638_v61 = vld [vmem:[#allocation24_spill] sm:$0xff]  ;;  %v6654_v39 = vld [vmem:[#allocation127_spill] sm:$0xff] }
 0x25c   :  { %v3954_v51 = vpop.eup %3953  ;;  %3975 = vpow.bf16 %v3353_v30  ;;  %v5860_v29 = vmul.bf16 %v1903_v8, %v6635_v57  ;;  %3027 = vmatmul.mubr.bf16.gmra.mrb[136].mxu1 %v2500_v27  ;;  %v5873_v10 = vadd.f32 %v5706_v2, %v5151_v63  ;;  %v1909_v16 = vmul.bf16 1065369472, %v6641_v32  ;;  %v6651_v32 = vld [vmem:[#allocation19_spill] sm:$0xff] }
 0x25d   :  { %v5855_v45 = vmul.bf16 %v1899_v26, %v6632_v42  ;;  %v3956_v21 = vpop.eup %3955  ;;  %3977 = vrcp.bf16 %v2313_v13  ;;  %v2310_v11 = vadd.bf16 1065369472, %v3954_v51  ;;  %v6636_v26 = vpack.c.bf16 %v5649_v15, %v5619_v34  ;;  %v6637_v15 = vld [vmem:[#allocation18_spill] sm:$0xff] }
 0x25e   :  { %v3958_v30 = vpop.eup %3957  ;;  %v2312_v12 = vadd.bf16 1065369472, %v3956_v21  ;;  %3979 = vpow.bf16 %v3350_v7  ;;  %v5877_v13 = vadd.f32 %v5687_v59, %v5154_v60  ;;  %v5883_v34 = vadd.f32 %v5713_v22, %v5154_v60  ;;  %v6639_v59 = vld [vmem:[#allocation115_spill] sm:$0xff] }
 0x25f   :  { %v3322_v23 = vmul.bf16 3216621497, %v6636_v26  ;;  %v3960_v8 = vpop.eup %3959  ;;  %3981 = vrcp.bf16 %v2310_v11  ;;  %v1834_v25 = vadd.bf16 1065369472, %v3958_v30  ;;  %v5887_v2 = vadd.f32 %v6637_v15, %v5151_v63  ;;  %v6642_v11 = vld [vmem:[#allocation48_spill] sm:$0xff]  ;;  %v6643_v30 = vld [vmem:[#allocation46_spill] sm:$0xff] }
 0x260   :  { %v3962_v44 = vpop.eup %3961  ;;  %3983 = vrcp.bf16 %v2312_v12  ;;  %v1836_v7 = vadd.bf16 1065369472, %v3960_v8  ;;  %v6640_v36 = vpack.c.bf16 %v6638_v61, %v6639_v59  ;;  %v6644_v12 = vpack.c.bf16 %v6642_v11, %v6643_v30  ;;  %v6646_v8 = vld [vmem:[#allocation130_spill] sm:$0xff]  ;;  %v6649_v61 = vld [vmem:[#allocation20_spill] sm:$0xff]  ;;  %v6652_v63 = vld [vmem:[#allocation21_spill] sm:$0xff] }
 0x261   :  { %v3964_v51 = vpop.eup %3963  ;;  %3985 = vrcp.bf16 %v1834_v25  ;;  %v1835_v27 = vadd.bf16 1065369472, %v3962_v44  ;;  %v1913_v25 = vmul.bf16 1065369472, %v6646_v8  ;;  %v6647_v44 = vld [vmem:[#allocation126_spill] sm:$0xff]  ;;  %v6653_v60 = vpack.c.bf16 %v6651_v32, %v6652_v63  ;;  %v6655_v30 = vld [vmem:[#allocation49_spill] sm:$0xff] }
 0x262   :  { %v3324_v42 = vmul.bf16 3216621497, %v6640_v36  ;;  %v5893_v57 = vpop.eup %3965  ;;  %3987 = vrcp.bf16 %v1836_v7  ;;  %v1837_v21 = vadd.bf16 1065369472, %v3964_v51  ;;  %v5904_v26 = vmul.bf16 %v1909_v16, %v6644_v12  ;;  %v6648_v51 = vld [vmem:[#allocation25_spill] sm:$0xff]  ;;  %v6656_v12 = vld [vmem:[#allocation44_spill] sm:$0xff] }
 0x263   :  { %v5899_v22 = vpop.eup %3967  ;;  %3989 = vrcp.bf16 %v1835_v27  ;;  %v1907_v15 = vmul.bf16 1065369472, %v6647_v44  ;;  %v6650_v59 = vpack.c.bf16 %v6648_v51, %v6649_v61  ;;  %v3325_v27 = vmul.bf16 3216621497, %v6653_v60  ;;  %v6658_v44 = vld [vmem:[#allocation45_spill] sm:$0xff]  ;;  %v6659_v51 = vld [vmem:[#allocation43_spill] sm:$0xff] }
 0x264   :  { %6645 = vst [vmem:[#allocation30_spill] sm:$0xff] %v5904_v26  ;;  %v5908_v7 = vpop.eup %3969  ;;  %3991 = vrcp.bf16 %v1837_v21  ;;  %v1911_v37 = vmul.bf16 1065369472, %v6654_v39  ;;  %v3355_v16 = vmul.bf16 3216621497, %v5738_v4  ;;  %v6657_v8 = vpack.c.bf16 %v6655_v30, %v6656_v12  ;;  %v6661_v39 = vld [vmem:[#allocation47_spill] sm:$0xff] }
 0x265   :  { %v3323_v36 = vmul.bf16 3216621497, %v6650_v59  ;;  %v3972_v11 = vpop.eup %3971  ;;  %3993 = vpow.bf16 %v3352_v52  ;;  %v6660_v61 = vpack.c.bf16 %v6658_v44, %v6659_v51  ;;  %v6662_v32 = vld [vmem:[#allocation42_spill] sm:$0xff]  ;;  %v6664_v52 = vld [vmem:[#allocation16_spill] sm:$0xff]  ;;  %v3354_v30 = vmul.bf16 3216621497, %v5761_v0 }
 0x266   :  { %v5923_v21 = vmul.bf16 %v1913_v25, %v6657_v8  ;;  %v3974_v63 = vpop.eup %3973  ;;  %v2389_v60 = vmul.bf16 1065369472, %v3972_v11  ;;  %3995 = vpow.bf16 %v3322_v23  ;;  %v6663_v19 = vpack.c.bf16 %v6661_v39, %v6662_v32  ;;  %v6671_v0 = vld [vmem:[#allocation131_spill] sm:$0xff] }
 0x267   :  { %v5928_v59 = vmul.bf16 %v1907_v15, %v6660_v61  ;;  %v1917_v14 = vmul.bf16 1065369472, %v6664_v52  ;;  %v3976_v4 = vpop.eup %3975  ;;  %v2315_v26 = vadd.bf16 1065369472, %v3974_v63  ;;  %3997 = vpow.bf16 %v3324_v42  ;;  %v6665_v15 = vld [vmem:[#allocation129_spill] sm:$0xff]  ;;  %v6670_v42 = vld [vmem:[#allocation15_spill] sm:$0xff] }
 0x268   :  { %v5933_v28 = vmul.bf16 %v1911_v37, %v6663_v19  ;;  %v3357_v25 = vmul.bf16 3216621497, %v5743_v35  ;;  %v3978_v12 = vpop.eup %3977  ;;  %v2503_v8 = vmul.bf16 %v2389_v60, %v6665_v15  ;;  %v2317_v44 = vadd.bf16 1065369472, %v3976_v4  ;;  %v6666_v19 = vld [vmem:[#allocation56_spill] sm:$0xff]  ;;  %v6667_v37 = vld [vmem:[#allocation54_spill] sm:$0xff] }
 0x269   :  { %3999 = vpow.bf16 %v3323_v36  ;;  %v3356_v23 = vmul.bf16 3216621497, %v5786_v54  ;;  %v3980_v11 = vpop.eup %3979  ;;  %v2393_v51 = vmul.bf16 1065369472, %v3978_v12  ;;  %v6668_v61 = vpack.c.bf16 %v6666_v19, %v6667_v37  ;;  %v6672_v4 = vld [vmem:[#allocation132_spill] sm:$0xff] }
 0x26a   :  { %4001 = vrcp.bf16 %v2315_v26  ;;  %v1921_v63 = vmul.bf16 1065369472, %v6670_v42  ;;  %v3982_v32 = vpop.eup %3981  ;;  %2873 = vmatprep.mubr.bf16.mxu0 %v2503_v8  ;;  %v2314_v52 = vadd.bf16 1065369472, %v3980_v11  ;;  %v1915_v60 = vmul.bf16 1065369472, %v6671_v0 }
 0x26b   :  { %v5943_v39 = vmul.bf16 %v1917_v14, %v6668_v61  ;;  %4003 = vrcp.bf16 %v2317_v44  ;;  %v1919_v36 = vmul.bf16 1065369472, %v6672_v4  ;;  %v3984_v15 = vpop.eup %3983  ;;  %v2505_v54 = vmul.bf16 %v2393_v51, %v5516_v53  ;;  %v6674_v8 = vld [vmem:[#allocation57_spill] sm:$0xff]  ;;  %v6675_v44 = vld [vmem:[#allocation52_spill] sm:$0xff]  ;;  %v6678_v42 = vld [vmem:[#allocation51_spill] sm:$0xff] }
 0x26c   :  { %v2387_v12 = vmul.bf16 1065369472, %v3982_v32  ;;  %4005 = vpow.bf16 %v3325_v27  ;;  %v6673_v26 = vpack.c.bf16 %v5768_v58, %v5732_v55  ;;  %v5952_v19 = vpop.eup %3985  ;;  %v2391_v37 = vmul.bf16 1065369472, %v3984_v15  ;;  %v6677_v0 = vld [vmem:[#allocation53_spill] sm:$0xff]  ;;  %v6680_v58 = vld [vmem:[#allocation55_spill] sm:$0xff] }
 0x26d   :  { %6669 = vst [vmem:[#allocation33_spill] sm:$0xff] %v5943_v39  ;;  %4007 = vrcp.bf16 %v2314_v52  ;;  %v6676_v11 = vpack.c.bf16 %v6674_v8, %v6675_v44  ;;  %v6679_v4 = vpack.c.bf16 %v6677_v0, %v6678_v42  ;;  %v5964_v53 = vpop.eup %3987  ;;  %3034 = vmatprep.mubr.bf16.mxu1 %v2505_v54  ;;  %v6681_v27 = vld [vmem:[#allocation50_spill] sm:$0xff] }
 0x26e   :  { %v3326_v14 = vmul.bf16 3216621497, %v6673_v26  ;;  %v2502_v55 = vmul.bf16 %v2387_v12, %v5542_v24  ;;  %4009 = vpow.bf16 %v3355_v16  ;;  %v6682_v51 = vpack.c.bf16 %v6680_v58, %v6681_v27  ;;  %v6683_v52 = vld [vmem:[#allocation22_spill] sm:$0xff]  ;;  %v6684_v26 = vld [vmem:[#allocation17_spill] sm:$0xff]  ;;  %v6686_v24 = vld [vmem:[#allocation64_spill] sm:$0xff] }
 0x26f   :  { %v5957_v61 = vmul.bf16 %v1921_v63, %v6676_v11  ;;  %v5962_v39 = vmul.bf16 %v1915_v60, %v6679_v4  ;;  %v1925_v15 = vmul.bf16 1065369472, %v6683_v52  ;;  %v5973_v63 = vpop.eup %3989  ;;  %v2504_v8 = vmul.bf16 %v2391_v37, %v6684_v26  ;;  %v6687_v16 = vld [vmem:[#allocation62_spill] sm:$0xff]  ;;  %v6689_v11 = vld [vmem:[#allocation23_spill] sm:$0xff]  ;;  %v6691_v4 = vld [vmem:[#allocation133_spill] sm:$0xff] }
 0x270   :  { %v5970_v32 = vmul.bf16 %v1919_v36, %v6682_v51  ;;  %4011 = vpow.bf16 %v3357_v25  ;;  %v6685_v60 = vpack.c.bf16 %v5772_v47, %v5751_v50  ;;  %v5979_v54 = vpop.eup %3991  ;;  %2874 = vmatmul.mubr.bf16.gmra.mrb[140].mxu0 %v2502_v55  ;;  %v6688_v12 = vpack.c.bf16 %v6686_v24, %v6687_v16  ;;  %v6690_v37 = vld [vmem:[#allocation114_spill] sm:$0xff]  ;;  %v6693_v55 = vld [vmem:[#allocation60_spill] sm:$0xff]  ;;  %v6698_v16 = vld [vmem:[#allocation63_spill] sm:$0xff] }
 0x271   :  { %4013 = vpow.bf16 %v3354_v30  ;;  %v1929_v0 = vmul.bf16 1065369472, %v6689_v11  ;;  %v3994_v42 = vpop.eup %3993  ;;  %3035 = vmatmul.mubr.bf16.gmra.mrb[140].mxu1 %v2504_v8  ;;  %v1923_v25 = vmul.bf16 1065369472, %v6690_v37  ;;  %v1927_v58 = vmul.bf16 1065369472, %v6691_v4 }
 0x272   :  { %v3328_v44 = vmul.bf16 3216621497, %v6685_v60  ;;  %v5984_v36 = vmul.bf16 %v1925_v15, %v6688_v12  ;;  %4015 = vpow.bf16 %v3356_v23  ;;  %v1933_v50 = vmul.bf16 1065369472, %v5788_v49  ;;  %v3996_v47 = vpop.eup %3995  ;;  %v6692_v30 = vld [vmem:[#allocation65_spill] sm:$0xff]  ;;  %v6696_v8 = vld [vmem:[#allocation59_spill] sm:$0xff] }
 0x273   :  { %v2316_v27 = vadd.bf16 1065369472, %v3994_v42  ;;  %4017 = vpow.bf16 %v3326_v14  ;;  %v6694_v51 = vpack.c.bf16 %v6692_v30, %v6693_v55  ;;  %v3998_v15 = vpop.eup %3997  ;;  %v1838_v26 = vadd.bf16 1065369472, %v3996_v47  ;;  %v6695_v60 = vld [vmem:[#allocation61_spill] sm:$0xff]  ;;  %v6699_v12 = vld [vmem:[#allocation58_spill] sm:$0xff] }
 0x274   :  { %4019 = vpow.bf16 %v3328_v44  ;;  %v6697_v23 = vpack.c.bf16 %v6695_v60, %v6696_v8  ;;  %v6700_v11 = vpack.c.bf16 %v6698_v16, %v6699_v12  ;;  %v4000_v42 = vpop.eup %3999  ;;  %v1840_v14 = vadd.bf16 1065369472, %v3998_v15  ;;  %v6702_v4 = vld [vmem:[#allocation72_spill] sm:$0xff]  ;;  %v6703_v47 = vld [vmem:[#allocation70_spill] sm:$0xff] }
 0x275   :  { %v5993_v52 = vmul.bf16 %v1929_v0, %v6694_v51  ;;  %4021 = vrcp.bf16 %v2316_v27  ;;  %v6701_v0 = vpack.c.bf16 %v5796_v43, %v5756_v18  ;;  %v6704_v44 = vpack.c.bf16 %v6702_v4, %v6703_v47  ;;  %v4002_v55 = vpop.eup %4001  ;;  %v6709_v4 = vld [vmem:[#allocation69_spill] sm:$0xff]  ;;  %v6710_v47 = vld [vmem:[#allocation67_spill] sm:$0xff] }
 0x276   :  { %v5998_v24 = vmul.bf16 %v1923_v25, %v6697_v23  ;;  %v6003_v49 = vmul.bf16 %v1927_v58, %v6700_v11  ;;  %4023 = vrcp.bf16 %v1838_v26  ;;  %v1839_v25 = vadd.bf16 1065369472, %v4000_v42  ;;  %v4004_v60 = vpop.eup %4003 }
 0x277   :  { %v3327_v37 = vmul.bf16 3216621497, %v6701_v0  ;;  %v6011_v30 = vmul.bf16 %v1933_v50, %v6704_v44  ;;  %v6705_v51 = vpack.c.bf16 %v5807_v31, %v5781_v20  ;;  %v2397_v8 = vmul.bf16 1065369472, %v4002_v55  ;;  %v4006_v43 = vpop.eup %4005  ;;  %v6706_v20 = vld [vmem:[#allocation73_spill] sm:$0xff]  ;;  %v6707_v31 = vld [vmem:[#allocation68_spill] sm:$0xff] }
 0x278   :  { %4025 = vrcp.bf16 %v1840_v14  ;;  %v3359_v27 = vmul.bf16 3216621497, %v5824_v46  ;;  %v1937_v18 = vmul.bf16 1065369472, %v5798_v38  ;;  %v2401_v15 = vmul.bf16 1065369472, %v4004_v60  ;;  %v4008_v26 = vpop.eup %4007 }
 0x279   :  { %v3329_v58 = vmul.bf16 3216621497, %v6705_v51  ;;  %4027 = vrcp.bf16 %v1839_v25  ;;  %v1931_v50 = vmul.bf16 1065369472, %v5764_v3  ;;  %v1935_v23 = vmul.bf16 1065369472, %v5774_v56  ;;  %v4010_v14 = vpop.eup %4009 }
 0x27a   :  { %v2507_v16 = vmul.bf16 %v2397_v8, %v5634_v9  ;;  %v1841_v12 = vadd.bf16 1065369472, %v4006_v43  ;;  %4029 = vpow.bf16 %v3327_v37  ;;  %v6708_v11 = vpack.c.bf16 %v6706_v20, %v6707_v31  ;;  %v6712_v37 = vld [vmem:[#allocation71_spill] sm:$0xff]  ;;  %v6713_v55 = vld [vmem:[#allocation66_spill] sm:$0xff]  ;;  %v6715_v20 = vld [vmem:[#allocation80_spill] sm:$0xff] }
 0x27b   :  { %v2509_v38 = vmul.bf16 %v2401_v15, %v5639_v5  ;;  %v2395_v0 = vmul.bf16 1065369472, %v4008_v26  ;;  %4031 = vpow.bf16 %v3329_v58  ;;  %v6711_v3 = vpack.c.bf16 %v6709_v4, %v6710_v47  ;;  %v4012_v56 = vpop.eup %4011  ;;  %v6716_v31 = vld [vmem:[#allocation78_spill] sm:$0xff]  ;;  %v6718_v4 = vld [vmem:[#allocation81_spill] sm:$0xff]  ;;  %v6719_v47 = vld [vmem:[#allocation76_spill] sm:$0xff] }
 0x27c   :  { %v6024_v42 = vmul.bf16 %v1937_v18, %v6708_v11  ;;  %2881 = vmatprep.mubr.bf16.mxu0 %v2507_v16  ;;  %4033 = vrcp.bf16 %v1841_v12  ;;  %v2319_v9 = vadd.bf16 1065369472, %v4010_v14  ;;  %v6714_v25 = vpack.c.bf16 %v6712_v37, %v6713_v55  ;;  %v4014_v60 = vpop.eup %4013 }
 0x27d   :  { %v6030_v44 = vmul.bf16 %v1931_v50, %v6711_v3  ;;  %3042 = vmatprep.mubr.bf16.mxu1 %v2509_v38  ;;  %v2506_v5 = vmul.bf16 %v2395_v0, %v5668_v62  ;;  %v2321_v8 = vadd.bf16 1065369472, %v4012_v56  ;;  %4035 = vpow.bf16 %v3359_v27  ;;  %v4016_v18 = vpop.eup %4015 }
 0x27e   :  { %v6035_v51 = vmul.bf16 %v1935_v23, %v6714_v25  ;;  %v3361_v58 = vmul.bf16 3216621497, %v5836_v41  ;;  %4037 = vrcp.bf16 %v2319_v9  ;;  %v2318_v43 = vadd.bf16 1065369472, %v4014_v60  ;;  %v4018_v26 = vpop.eup %4017 }
 0x27f   :  { %v3358_v15 = vmul.bf16 3216621497, %v5855_v45  ;;  %v1941_v50 = vmul.bf16 1065369472, %v5899_v22  ;;  %2882 = vmatmul.mubr.bf16.gmra.mrb[144].mxu0 %v2506_v5  ;;  %4039 = vrcp.bf16 %v2321_v8  ;;  %v2320_v23 = vadd.bf16 1065369472, %v4016_v18  ;;  %v4020_v62 = vpop.eup %4019 }
 0x280   :  { %v1945_v16 = vmul.bf16 1065369472, %v5908_v7  ;;  %v1939_v12 = vmul.bf16 1065369472, %v5844_v48  ;;  %4041 = vrcp.bf16 %v2318_v43  ;;  %v1842_v27 = vadd.bf16 1065369472, %v4018_v26  ;;  %v4022_v0 = vpop.eup %4021 }
 0x281   :  { %v6717_v11 = vpack.c.bf16 %v6715_v20, %v6716_v31  ;;  %v1943_v38 = vmul.bf16 1065369472, %v5893_v57  ;;  %4043 = vrcp.bf16 %v2320_v23  ;;  %v1844_v22 = vadd.bf16 1065369472, %v4020_v62  ;;  %v6721_v7 = vld [vmem:[#allocation77_spill] sm:$0xff]  ;;  %v6722_v48 = vld [vmem:[#allocation75_spill] sm:$0xff]  ;;  %v6059_v55 = vpop.eup %4023 }
 0x282   :  { %v6720_v3 = vpack.c.bf16 %v6718_v4, %v6719_v47  ;;  %v6723_v9 = vpack.c.bf16 %v6721_v7, %v6722_v48  ;;  %v2399_v25 = vmul.bf16 1065369472, %v4022_v0  ;;  %4045 = vrcp.bf16 %v1842_v27  ;;  %v6724_v57 = vld [vmem:[#allocation79_spill] sm:$0xff]  ;;  %v6725_v5 = vld [vmem:[#allocation74_spill] sm:$0xff] }
 0x283   :  { %v6046_v14 = vmul.bf16 %v1941_v50, %v6717_v11  ;;  %v3360_v60 = vmul.bf16 3216621497, %v5860_v29  ;;  %v6726_v8 = vpack.c.bf16 %v6724_v57, %v6725_v5  ;;  %v4026_v43 = vpop.eup %4025  ;;  %4047 = vrcp.bf16 %v1844_v22  ;;  %v6729_v11 = vld [vmem:[#allocation88_spill] sm:$0xff]  ;;  %v6737_v48 = vld [vmem:[#allocation83_spill] sm:$0xff] }
 0x284   :  { %v6052_v56 = vmul.bf16 %v1945_v16, %v6720_v3  ;;  %v6057_v37 = vmul.bf16 %v1939_v12, %v6723_v9  ;;  %v6727_v50 = vpack.c.bf16 %v5842_v6, %v5831_v40  ;;  %v1949_v23 = vmul.bf16 1065369472, %v5973_v63  ;;  %v4028_v16 = vpop.eup %4027  ;;  %v6740_v5 = vld [vmem:[#allocation87_spill] sm:$0xff] }
 0x285   :  { %v6065_v18 = vmul.bf16 %v1943_v38, %v6726_v8  ;;  %v2508_v12 = vmul.bf16 %v2399_v25, %v5673_v17  ;;  %4049 = vpow.bf16 %v3361_v58  ;;  %v6728_v62 = vpack.c.bf16 %v5866_v33, %v5849_v1  ;;  %v4030_v31 = vpop.eup %4029  ;;  %v6730_v38 = vld [vmem:[#allocation86_spill] sm:$0xff]  ;;  %v6732_v58 = vld [vmem:[#allocation89_spill] sm:$0xff]  ;;  %v6733_v1 = vld [vmem:[#allocation84_spill] sm:$0xff] }
 0x286   :  { %v3330_v26 = vmul.bf16 3216621497, %v6727_v50  ;;  %v1953_v20 = vmul.bf16 1065369472, %v5979_v54  ;;  %4051 = vpow.bf16 %v3358_v15  ;;  %v6731_v0 = vpack.c.bf16 %v6729_v11, %v6730_v38  ;;  %v4032_v63 = vpop.eup %4031  ;;  %v6741_v8 = vld [vmem:[#allocation82_spill] sm:$0xff] }
 0x287   :  { %v3332_v27 = vmul.bf16 3216621497, %v6728_v62  ;;  %v1947_v40 = vmul.bf16 1065369472, %v5952_v19  ;;  %v1951_v6 = vmul.bf16 1065369472, %v5964_v53  ;;  %3043 = vmatmul.mubr.bf16.gmra.mrb[144].mxu1 %v2508_v12  ;;  %4053 = vpow.bf16 %v3360_v60  ;;  %v4034_v15 = vpop.eup %4033 }
 0x288   :  { %v6079_v22 = vmul.bf16 %v1949_v23, %v6731_v0  ;;  %v1843_v17 = vadd.bf16 1065369472, %v4030_v31  ;;  %v6734_v33 = vpack.c.bf16 %v6732_v58, %v6733_v1  ;;  %v1957_v54 = vmul.bf16 1065369472, %v4028_v16  ;;  %v6736_v19 = vld [vmem:[#allocation85_spill] sm:$0xff]  ;;  %v4036_v25 = vpop.eup %4035  ;;  %v6744_v16 = vld [vmem:[#allocation94_spill] sm:$0xff] }
 0x289   :  { %v1845_v47 = vadd.bf16 1065369472, %v4032_v63  ;;  %4055 = vpow.bf16 %v3330_v26  ;;  %v6735_v3 = vpack.c.bf16 %v5883_v34, %v5877_v13  ;;  %v6738_v53 = vpack.c.bf16 %v6736_v19, %v6737_v48  ;;  %v6743_v26 = vld [vmem:[#allocation96_spill] sm:$0xff]  ;;  %v4038_v12 = vpop.eup %4037  ;;  %v6747_v63 = vld [vmem:[#allocation97_spill] sm:$0xff] }
 0x28a   :  { %v6086_v4 = vmul.bf16 %v1953_v20, %v6734_v33  ;;  %4057 = vrcp.bf16 %v1843_v17  ;;  %v6739_v60 = vpack.c.bf16 %v5887_v2, %v5873_v10  ;;  %v6742_v50 = vpack.c.bf16 %v6740_v5, %v6741_v8  ;;  %v6746_v20 = vld [vmem:[#allocation30_spill] sm:$0xff]  ;;  %v4040_v38 = vpop.eup %4039  ;;  %v6748_v17 = vld [vmem:[#allocation92_spill] sm:$0xff] }
 0x28b   :  { %v3331_v7 = vmul.bf16 3216621497, %v6735_v3  ;;  %v6094_v9 = vmul.bf16 %v1947_v40, %v6738_v53  ;;  %v6745_v13 = vpack.c.bf16 %v6743_v26, %v6744_v16  ;;  %4059 = vrcp.bf16 %v1845_v47  ;;  %v4042_v40 = vpop.eup %4041  ;;  %v6750_v47 = vld [vmem:[#allocation119_spill] sm:$0xff]  ;;  %v6751_v5 = vld [vmem:[#allocation120_spill] sm:$0xff] }
 0x28c   :  { %v3333_v57 = vmul.bf16 3216621497, %v6739_v60  ;;  %v6102_v23 = vmul.bf16 %v1951_v6, %v6742_v50  ;;  %v2323_v62 = vadd.bf16 1065369472, %v4036_v25  ;;  %v3363_v31 = vmul.bf16 3216621497, %v6746_v20 }
 0x28d   :  { %v6107_v34 = vmul.bf16 %v1957_v54, %v6745_v13  ;;  %v1961_v11 = vmul.bf16 1065369472, %v4034_v15  ;;  %v2405_v0 = vmul.bf16 1065369472, %v4038_v12  ;;  %4061 = vpow.bf16 %v3332_v27  ;;  %v4044_v54 = vpop.eup %4043  ;;  %v6752_v50 = vld [vmem:[#allocation93_spill] sm:$0xff]  ;;  %v6755_v13 = vld [vmem:[#allocation95_spill] sm:$0xff] }
 0x28e   :  { %v3365_v10 = vmul.bf16 3216621497, %v5923_v21  ;;  %v3362_v2 = vmul.bf16 3216621497, %v5928_v59  ;;  %v2409_v6 = vmul.bf16 1065369472, %v4040_v38  ;;  %4063 = vrcp.bf16 %v2323_v62  ;;  %v4046_v19 = vpop.eup %4045 }
 0x28f   :  { %v6749_v58 = vpack.c.bf16 %v6747_v63, %v6748_v17  ;;  %v1955_v33 = vmul.bf16 1065369472, %v6059_v55  ;;  %v2511_v15 = vmul.bf16 %v2405_v0, %v6750_v47  ;;  %v2403_v3 = vmul.bf16 1065369472, %v4042_v40  ;;  %v4048_v60 = vpop.eup %4047  ;;  %v6753_v55 = vld [vmem:[#allocation91_spill] sm:$0xff]  ;;  %v6759_v63 = vld [vmem:[#allocation101_spill] sm:$0xff] }
 0x290   :  { %4065 = vpow.bf16 %v3331_v7  ;;  %v1959_v27 = vmul.bf16 1065369472, %v4026_v43  ;;  %v2513_v48 = vmul.bf16 %v2409_v6, %v5743_v35  ;;  %v2407_v53 = vmul.bf16 1065369472, %v4044_v54  ;;  %v6756_v7 = vld [vmem:[#allocation90_spill] sm:$0xff]  ;;  %v4050_v35 = vpop.eup %4049  ;;  %v6760_v17 = vld [vmem:[#allocation99_spill] sm:$0xff] }
 0x291   :  { %v6115_v1 = vmul.bf16 %v1961_v11, %v6749_v58  ;;  %4067 = vpow.bf16 %v3333_v57  ;;  %v3364_v25 = vmul.bf16 3216621497, %v5933_v28  ;;  %2889 = vmatprep.mubr.bf16.mxu0 %v2511_v15  ;;  %v2510_v8 = vmul.bf16 %v2403_v3, %v6751_v5  ;;  %v6758_v57 = vld [vmem:[#allocation32_spill] sm:$0xff]  ;;  %v4052_v0 = vpop.eup %4051  ;;  %v6762_v54 = vld [vmem:[#allocation103_spill] sm:$0xff]  ;;  %v6763_v47 = vld [vmem:[#allocation98_spill] sm:$0xff] }
 0x292   :  { %4069 = vpow.bf16 %v3363_v31  ;;  %v6754_v26 = vpack.c.bf16 %v6752_v50, %v6753_v55  ;;  %v6757_v43 = vpack.c.bf16 %v6755_v13, %v6756_v7  ;;  %3050 = vmatprep.mubr.bf16.mxu1 %v2513_v48  ;;  %v2512_v62 = vmul.bf16 %v2407_v53, %v6758_v57  ;;  %v4054_v40 = vpop.eup %4053  ;;  %v6766_v7 = vld [vmem:[#allocation104_spill] sm:$0xff] }
 0x293   :  { %4071 = vpow.bf16 %v3365_v10  ;;  %v1963_v11 = vmul.bf16 1065369472, %v4046_v19  ;;  %v1967_v38 = vmul.bf16 1065369472, %v4048_v60  ;;  %2890 = vmatmul.mubr.bf16.gmra.mrb[148].mxu0 %v2510_v8  ;;  %v2325_v31 = vadd.bf16 1065369472, %v4050_v35 }
 0x294   :  { %v6125_v16 = vmul.bf16 %v1955_v33, %v6754_v26  ;;  %v6130_v12 = vmul.bf16 %v1959_v27, %v6757_v43  ;;  %4073 = vpow.bf16 %v3362_v2  ;;  %3051 = vmatmul.mubr.bf16.gmra.mrb[148].mxu1 %v2512_v62  ;;  %v2322_v6 = vadd.bf16 1065369472, %v4052_v0  ;;  %v4056_v10 = vpop.eup %4055  ;;  %v6765_v19 = vld [vmem:[#allocation33_spill] sm:$0xff]  ;;  %v6767_v43 = vld [vmem:[#allocation102_spill] sm:$0xff]  ;;  %v6770_v0 = vld [vmem:[#allocation100_spill] sm:$0xff] }
 0x295   :  { %4075 = vpow.bf16 %v3364_v25  ;;  %v6761_v58 = vpack.c.bf16 %v6759_v63, %v6760_v17  ;;  %v6764_v15 = vpack.c.bf16 %v6762_v54, %v6763_v47  ;;  %v2324_v27 = vadd.bf16 1065369472, %v4054_v40  ;;  %v4058_v2 = vpop.eup %4057 }
 0x296   :  { %4077 = vrcp.bf16 %v2325_v31  ;;  %v3367_v48 = vmul.bf16 3216621497, %v6765_v19  ;;  %v1846_v53 = vadd.bf16 1065369472, %v4056_v10  ;;  %v3369_v25 = vmul.bf16 3216621497, %v5957_v61  ;;  %v4060_v60 = vpop.eup %4059 }
 0x297   :  { %v6136_v33 = vmul.bf16 %v1963_v11, %v6761_v58  ;;  %v6141_v3 = vmul.bf16 %v1967_v38, %v6764_v15  ;;  %4079 = vrcp.bf16 %v2322_v6  ;;  %v1965_v5 = vmul.bf16 1065369472, %v4058_v2  ;;  %v6769_v38 = vld [vmem:[#allocation105_spill] sm:$0xff] }
 0x298   :  { %4081 = vrcp.bf16 %v2324_v27  ;;  %v4062_v8 = vpop.eup %4061  ;;  %v3366_v50 = vmul.bf16 3216621497, %v5962_v39  ;;  %v1969_v55 = vmul.bf16 1065369472, %v4060_v60  ;;  %v6768_v35 = vpack.c.bf16 %v6766_v7, %v6767_v43 }
 0x299   :  { %4083 = vrcp.bf16 %v1846_v53  ;;  %v4064_v26 = vpop.eup %4063  ;;  %v1848_v13 = vadd.bf16 1065369472, %v4062_v8  ;;  %v6771_v31 = vpack.c.bf16 %v6769_v38, %v6770_v0  ;;  %v3368_v53 = vmul.bf16 3216621497, %v5970_v32 }
 0x29a   :  { %4085 = vpow.bf16 %v3367_v48  ;;  %v6149_v57 = vmul.bf16 %v1965_v5, %v6768_v35  ;;  %v2413_v11 = vmul.bf16 1065369472, %v4064_v26  ;;  %v3371_v5 = vmul.bf16 3216621497, %v5984_v36 }
 0x29b   :  { %v4066_v62 = vpop.eup %4065  ;;  %4087 = vpow.bf16 %v3369_v25  ;;  %v6154_v40 = vmul.bf16 %v1969_v55, %v6771_v31 }
 0x29c   :  { %v4068_v6 = vpop.eup %4067  ;;  %4089 = vrcp.bf16 %v1848_v13  ;;  %v1847_v63 = vadd.bf16 1065369472, %v4066_v62  ;;  %v2515_v58 = vmul.bf16 %v2413_v11, %v5824_v46  ;;  %v3370_v13 = vmul.bf16 3216621497, %v5998_v24 }
 0x29d   :  { %v4070_v17 = vpop.eup %4069  ;;  %v1849_v54 = vadd.bf16 1065369472, %v4068_v6  ;;  %4091 = vpow.bf16 %v3366_v50  ;;  %v3373_v50 = vmul.bf16 3216621497, %v5993_v52 }
 0x29e   :  { %v4072_v47 = vpop.eup %4071  ;;  %4093 = vrcp.bf16 %v1847_v63  ;;  %v2327_v15 = vadd.bf16 1065369472, %v4070_v17  ;;  %2897 = vmatprep.mubr.bf16.mxu0 %v2515_v58  ;;  %v3372_v63 = vmul.bf16 3216621497, %v6003_v49 }
 0x29f   :  { %v4074_v10 = vpop.eup %4073  ;;  %4095 = vrcp.bf16 %v1849_v54  ;;  %v2329_v27 = vadd.bf16 1065369472, %v4072_v47  ;;  %v6773_v54 = vld [vmem:[#allocation107_spill] sm:$0xff] }
 0x2a0   :  { %v4076_v48 = vpop.eup %4075  ;;  %4097 = vrcp.bf16 %v2327_v15  ;;  %v2326_v2 = vadd.bf16 1065369472, %v4074_v10  ;;  %v3375_v10 = vmul.bf16 3216621497, %v6011_v30 }
 0x2a1   :  { %v4078_v25 = vpop.eup %4077  ;;  %4099 = vrcp.bf16 %v2329_v27  ;;  %v2328_v60 = vadd.bf16 1065369472, %v4076_v48 }
 0x2a2   :  { %v4080_v46 = vpop.eup %4079  ;;  %v2417_v8 = vmul.bf16 1065369472, %v4078_v25  ;;  %4101 = vrcp.bf16 %v2326_v2  ;;  %v3377_v2 = vmul.bf16 3216621497, %v6024_v42  ;;  %v3374_v25 = vmul.bf16 3216621497, %v6030_v44 }
 0x2a3   :  { %v4082_v55 = vpop.eup %4081  ;;  %v2411_v26 = vmul.bf16 1065369472, %v4080_v46  ;;  %4103 = vrcp.bf16 %v2328_v60  ;;  %v6776_v46 = vld [vmem:[#allocation106_spill] sm:$0xff] }
 0x2a4   :  { %v4084_v7 = vpop.eup %4083  ;;  %v2517_v43 = vmul.bf16 %v2417_v8, %v5836_v41  ;;  %v2415_v35 = vmul.bf16 1065369472, %v4082_v55  ;;  %4105 = vpow.bf16 %v3368_v53  ;;  %v6772_v41 = vld [vmem:[#allocation109_spill] sm:$0xff] }
 0x2a5   :  { %v4086_v62 = vpop.eup %4085  ;;  %v2514_v11 = vmul.bf16 %v2411_v26, %v5855_v45  ;;  %4107 = vpow.bf16 %v3371_v5  ;;  %v1971_v38 = vmul.bf16 1065369472, %v4084_v7  ;;  %v6774_v47 = vpack.c.bf16 %v6772_v41, %v6773_v54  ;;  %v6775_v5 = vld [vmem:[#allocation111_spill] sm:$0xff] }
 0x2a6   :  { %v4088_v0 = vpop.eup %4087  ;;  %3058 = vmatprep.mubr.bf16.mxu1 %v2517_v43  ;;  %v2516_v31 = vmul.bf16 %v2415_v35, %v5860_v29  ;;  %v2331_v6 = vadd.bf16 1065369472, %v4086_v62  ;;  %4109 = vpow.bf16 %v3373_v50  ;;  %v6777_v8 = vpack.c.bf16 %v6775_v5, %v6776_v46  ;;  %v6778_v62 = vld [vmem:[#allocation112_spill] sm:$0xff] }
 0x2a7   :  { %v4090_v17 = vpop.eup %4089  ;;  %2898 = vmatmul.mubr.bf16.gmra.mrb[152].mxu0 %v2514_v11  ;;  %v2333_v58 = vadd.bf16 1065369472, %v4088_v0  ;;  %4111 = vpow.bf16 %v3370_v13  ;;  %v6168_v15 = vmul.bf16 %v1971_v38, %v6774_v47  ;;  %v3376_v26 = vmul.bf16 3216621497, %v6035_v51  ;;  %v6779_v11 = vld [vmem:[#allocation110_spill] sm:$0xff] }
 0x2a8   :  { %v4092_v45 = vpop.eup %4091  ;;  %3059 = vmatmul.mubr.bf16.gmra.mrb[152].mxu1 %v2516_v31  ;;  %4113 = vrcp.bf16 %v2331_v6  ;;  %v1975_v27 = vmul.bf16 1065369472, %v4090_v17  ;;  %v3379_v35 = vmul.bf16 3216621497, %v6046_v14  ;;  %v6780_v38 = vpack.c.bf16 %v6778_v62, %v6779_v11  ;;  %v6781_v17 = vld [vmem:[#allocation113_spill] sm:$0xff] }
 0x2a9   :  { %v4094_v29 = vpop.eup %4093  ;;  %4115 = vrcp.bf16 %v2333_v58  ;;  %v2330_v48 = vadd.bf16 1065369472, %v4092_v45  ;;  %v6782_v58 = vld [vmem:[#allocation108_spill] sm:$0xff] }
 0x2aa   :  { %v4096_v53 = vpop.eup %4095  ;;  %4117 = vpow.bf16 %v3372_v63  ;;  %v1973_v60 = vmul.bf16 1065369472, %v4094_v29  ;;  %v6176_v50 = vmul.bf16 %v1975_v27, %v6777_v8  ;;  %v3381_v63 = vmul.bf16 3216621497, %v6052_v56 }
 0x2ab   :  { %v4098_v55 = vpop.eup %4097  ;;  %4119 = vrcp.bf16 %v2330_v48  ;;  %v1977_v13 = vmul.bf16 1065369472, %v4096_v53  ;;  %v6783_v41 = vpack.c.bf16 %v6781_v17, %v6782_v58 }
 0x2ac   :  { %v4100_v7 = vpop.eup %4099  ;;  %v2421_v43 = vmul.bf16 1065369472, %v4098_v55  ;;  %4121 = vpow.bf16 %v3375_v10  ;;  %v6183_v0 = vmul.bf16 %v1973_v60, %v6780_v38 }
 0x2ad   :  { %v4102_v31 = vpop.eup %4101  ;;  %v2425_v6 = vmul.bf16 1065369472, %v4100_v7  ;;  %4123 = vpow.bf16 %v3377_v2  ;;  %v6189_v54 = vmul.bf16 %v1977_v13, %v6783_v41 }
 0x2ae   :  { %v4104_v47 = vpop.eup %4103  ;;  %v2519_v45 = vmul.bf16 %v2421_v43, %v6746_v20  ;;  %v2419_v10 = vmul.bf16 1065369472, %v4102_v31  ;;  %4125 = vpow.bf16 %v3374_v25 }
 0x2af   :  { %v4106_v27 = vpop.eup %4105  ;;  %v2521_v29 = vmul.bf16 %v2425_v6, %v5923_v21  ;;  %v2423_v48 = vmul.bf16 1065369472, %v4104_v47  ;;  %4127 = vpow.bf16 %v3376_v26  ;;  %v3378_v21 = vmul.bf16 3216621497, %v6057_v37 }
 0x2b0   :  { %v4108_v53 = vpop.eup %4107  ;;  %2905 = vmatprep.mubr.bf16.mxu0 %v2519_v45  ;;  %v2518_v2 = vmul.bf16 %v2419_v10, %v5928_v59  ;;  %v2332_v60 = vadd.bf16 1065369472, %v4106_v27  ;;  %4129 = vpow.bf16 %v3379_v35  ;;  %v3380_v59 = vmul.bf16 3216621497, %v6065_v18 }
 0x2b1   :  { %v4110_v5 = vpop.eup %4109  ;;  %3066 = vmatprep.mubr.bf16.mxu1 %v2521_v29  ;;  %v2520_v46 = vmul.bf16 %v2423_v48, %v5933_v28  ;;  %v2335_v8 = vadd.bf16 1065369472, %v4108_v53  ;;  %4131 = vpow.bf16 %v3381_v63  ;;  %v3383_v28 = vmul.bf16 3216621497, %v6079_v22 }
 0x2b2   :  { %v4112_v20 = vpop.eup %4111  ;;  %2906 = vmatmul.mubr.bf16.gmra.mrb[156].mxu0 %v2518_v2  ;;  %4133 = vrcp.bf16 %v2332_v60  ;;  %v2337_v25 = vadd.bf16 1065369472, %v4110_v5  ;;  %v3385_v53 = vmul.bf16 3216621497, %v6086_v4  ;;  %v3382_v5 = vmul.bf16 3216621497, %v6094_v9 }
 0x2b3   :  { %v4114_v55 = vpop.eup %4113  ;;  %3067 = vmatmul.mubr.bf16.gmra.mrb[156].mxu1 %v2520_v46  ;;  %4135 = vrcp.bf16 %v2335_v8  ;;  %v2334_v26 = vadd.bf16 1065369472, %v4112_v20  ;;  %v3384_v8 = vmul.bf16 3216621497, %v6102_v23 }
 0x2b4   :  { %v4116_v13 = vpop.eup %4115  ;;  %v2429_v7 = vmul.bf16 1065369472, %v4114_v55  ;;  %4137 = vrcp.bf16 %v2337_v25 }
 0x2b5   :  { %v4118_v43 = vpop.eup %4117  ;;  %v2433_v35 = vmul.bf16 1065369472, %v4116_v13  ;;  %4139 = vrcp.bf16 %v2334_v26 }
 0x2b6   :  { %v4120_v62 = vpop.eup %4119  ;;  %v2523_v11 = vmul.bf16 %v2429_v7, %v6765_v19  ;;  %v2336_v38 = vadd.bf16 1065369472, %v4118_v43  ;;  %4141 = vpow.bf16 %v3378_v21  ;;  %v3387_v21 = vmul.bf16 3216621497, %v6107_v34 }
 0x2b7   :  { %v4122_v31 = vpop.eup %4121  ;;  %v2525_v6 = vmul.bf16 %v2433_v35, %v5957_v61  ;;  %v2427_v63 = vmul.bf16 1065369472, %v4120_v62  ;;  %4143 = vpow.bf16 %v3380_v59 }
 0x2b8   :  { %v4124_v17 = vpop.eup %4123  ;;  %2913 = vmatprep.mubr.bf16.mxu0 %v2523_v11  ;;  %4145 = vrcp.bf16 %v2336_v38  ;;  %v2339_v58 = vadd.bf16 1065369472, %v4122_v31  ;;  %v3389_v11 = vmul.bf16 3216621497, %v6115_v1 }
 0x2b9   :  { %v4126_v41 = vpop.eup %4125  ;;  %3074 = vmatprep.mubr.bf16.mxu1 %v2525_v6  ;;  %v2522_v47 = vmul.bf16 %v2427_v63, %v5962_v39  ;;  %v2341_v45 = vadd.bf16 1065369472, %v4124_v17  ;;  %4147 = vpow.bf16 %v3383_v28 }
 0x2ba   :  { %v4128_v10 = vpop.eup %4127  ;;  %4149 = vrcp.bf16 %v2339_v58  ;;  %v2338_v19 = vadd.bf16 1065369472, %v4126_v41  ;;  %v3388_v58 = vmul.bf16 3216621497, %v6130_v12 }
 0x2bb   :  { %v4130_v27 = vpop.eup %4129  ;;  %2914 = vmatmul.mubr.bf16.gmra.mrb[160].mxu0 %v2522_v47  ;;  %4151 = vrcp.bf16 %v2341_v45  ;;  %v2340_v29 = vadd.bf16 1065369472, %v4128_v10  ;;  %v3391_v45 = vmul.bf16 3216621497, %v6149_v57 }
 0x2bc   :  { %v4132_v61 = vpop.eup %4131  ;;  %4153 = vrcp.bf16 %v2338_v19  ;;  %v2343_v48 = vadd.bf16 1065369472, %v4130_v27  ;;  %v3393_v19 = vmul.bf16 3216621497, %v6154_v40  ;;  %v3390_v27 = vmul.bf16 3216621497, %v6136_v33 }
 0x2bd   :  { %v4134_v2 = vpop.eup %4133  ;;  %4155 = vrcp.bf16 %v2340_v29  ;;  %v2345_v60 = vadd.bf16 1065369472, %v4132_v61 }
 0x2be   :  { %v4136_v39 = vpop.eup %4135  ;;  %v2431_v46 = vmul.bf16 1065369472, %v4134_v2  ;;  %4157 = vrcp.bf16 %v2343_v48 }
 0x2bf   :  { %v4138_v20 = vpop.eup %4137  ;;  %v2437_v25 = vmul.bf16 1065369472, %v4136_v39  ;;  %4159 = vrcp.bf16 %v2345_v60 }
 0x2c0   :  { %v4140_v55 = vpop.eup %4139  ;;  %v2524_v26 = vmul.bf16 %v2431_v46, %v5970_v32  ;;  %v2441_v59 = vmul.bf16 1065369472, %v4138_v20  ;;  %4161 = vpow.bf16 %v3385_v53 }
 0x2c1   :  { %v4142_v13 = vpop.eup %4141  ;;  %v2527_v7 = vmul.bf16 %v2437_v25, %v5984_v36  ;;  %v2435_v43 = vmul.bf16 1065369472, %v4140_v55  ;;  %4163 = vpow.bf16 %v3382_v5  ;;  %v3386_v36 = vmul.bf16 3216621497, %v6125_v16 }
 0x2c2   :  { %v4144_v35 = vpop.eup %4143  ;;  %3075 = vmatmul.mubr.bf16.gmra.mrb[160].mxu1 %v2524_v26  ;;  %v2529_v28 = vmul.bf16 %v2441_v59, %v5993_v52  ;;  %v2342_v62 = vadd.bf16 1065369472, %v4142_v13  ;;  %4165 = vpow.bf16 %v3384_v8  ;;  %v3392_v5 = vmul.bf16 3216621497, %v6141_v3 }
 0x2c3   :  { %v4146_v38 = vpop.eup %4145  ;;  %2921 = vmatprep.mubr.bf16.mxu0 %v2527_v7  ;;  %v2526_v31 = vmul.bf16 %v2435_v43, %v5998_v24  ;;  %v2344_v32 = vadd.bf16 1065369472, %v4144_v35  ;;  %4167 = vpow.bf16 %v3387_v21  ;;  %v3395_v7 = vmul.bf16 3216621497, %v6183_v0 }
 0x2c4   :  { %v4148_v6 = vpop.eup %4147  ;;  %3082 = vmatprep.mubr.bf16.mxu1 %v2529_v28  ;;  %v2439_v63 = vmul.bf16 1065369472, %v4146_v38  ;;  %4169 = vrcp.bf16 %v2342_v62  ;;  %v3397_v28 = vmul.bf16 3216621497, %v6189_v54 }
 0x2c5   :  { %v4150_v17 = vpop.eup %4149  ;;  %2922 = vmatmul.mubr.bf16.gmra.mrb[164].mxu0 %v2526_v31  ;;  %4171 = vrcp.bf16 %v2344_v32  ;;  %v2347_v52 = vadd.bf16 1065369472, %v4148_v6  ;;  %v3394_v31 = vmul.bf16 3216621497, %v6168_v15 }
 0x2c6   :  { %v4152_v41 = vpop.eup %4151  ;;  %v2445_v47 = vmul.bf16 1065369472, %v4150_v17  ;;  %4173 = vpow.bf16 %v3389_v11  ;;  %v2528_v61 = vmul.bf16 %v2439_v63, %v6003_v49 }
 0x2c7   :  { %v4154_v24 = vpop.eup %4153  ;;  %v2449_v10 = vmul.bf16 1065369472, %v4152_v41  ;;  %4175 = vrcp.bf16 %v2347_v52 }
 0x2c8   :  { %v4156_v29 = vpop.eup %4155  ;;  %v2531_v48 = vmul.bf16 %v2445_v47, %v6011_v30  ;;  %v2443_v53 = vmul.bf16 1065369472, %v4154_v24  ;;  %4177 = vpow.bf16 %v3386_v36 }
 0x2c9   :  { %v4158_v2 = vpop.eup %4157  ;;  %v2533_v60 = vmul.bf16 %v2449_v10, %v6024_v42  ;;  %4179 = vpow.bf16 %v3388_v58  ;;  %v2447_v25 = vmul.bf16 1065369472, %v4156_v29 }
 0x2ca   :  { %v4160_v39 = vpop.eup %4159  ;;  %3083 = vmatmul.mubr.bf16.gmra.mrb[164].mxu1 %v2528_v61  ;;  %2929 = vmatprep.mubr.bf16.mxu0 %v2531_v48  ;;  %v2453_v46 = vmul.bf16 1065369472, %v4158_v2  ;;  %4181 = vpow.bf16 %v3391_v45  ;;  %v2530_v20 = vmul.bf16 %v2443_v53, %v6030_v44  ;;  %v3396_v61 = vmul.bf16 3216621497, %v6176_v50 }
 0x2cb   :  { %v4162_v8 = vpop.eup %4161  ;;  %3090 = vmatprep.mubr.bf16.mxu1 %v2533_v60  ;;  %v2457_v49 = vmul.bf16 1065369472, %v4160_v39  ;;  %4183 = vpow.bf16 %v3393_v19  ;;  %v2532_v62 = vmul.bf16 %v2447_v25, %v6035_v51 }
 0x2cc   :  { %v4164_v30 = vpop.eup %4163  ;;  %v2535_v21 = vmul.bf16 %v2453_v46, %v6046_v14  ;;  %v2349_v55 = vadd.bf16 1065369472, %v4162_v8  ;;  %4185 = vpow.bf16 %v3390_v27 }
 0x2cd   :  { %v4166_v42 = vpop.eup %4165  ;;  %2930 = vmatmul.mubr.bf16.gmra.mrb[168].mxu0 %v2530_v20  ;;  %v2346_v26 = vadd.bf16 1065369472, %v4164_v30  ;;  %4187 = vpow.bf16 %v3392_v5  ;;  %v2537_v44 = vmul.bf16 %v2457_v49, %v6052_v56 }
 0x2ce   :  { %v4168_v59 = vpop.eup %4167  ;;  %2937 = vmatprep.mubr.bf16.mxu0 %v2535_v21  ;;  %4189 = vrcp.bf16 %v2349_v55  ;;  %v2348_v13 = vadd.bf16 1065369472, %v4166_v42 }
 0x2cf   :  { %v4170_v43 = vpop.eup %4169  ;;  %4191 = vrcp.bf16 %v2346_v26  ;;  %v2351_v35 = vadd.bf16 1065369472, %v4168_v59 }
 0x2d0   :  { %v4172_v14 = vpop.eup %4171  ;;  %v2451_v11 = vmul.bf16 1065369472, %v4170_v43  ;;  %4193 = vrcp.bf16 %v2348_v13 }
 0x2d1   :  { %v4174_v38 = vpop.eup %4173  ;;  %4195 = vrcp.bf16 %v2351_v35  ;;  %v2455_v52 = vmul.bf16 1065369472, %v4172_v14 }
 0x2d2   :  { %v4176_v32 = vpop.eup %4175  ;;  %3091 = vmatmul.mubr.bf16.gmra.mrb[168].mxu1 %v2532_v62  ;;  %v2353_v6 = vadd.bf16 1065369472, %v4174_v38  ;;  %4197 = vpow.bf16 %v3395_v7  ;;  %v2534_v56 = vmul.bf16 %v2451_v11, %v6057_v37 }
 0x2d3   :  { %v4178_v63 = vpop.eup %4177  ;;  %3098 = vmatprep.mubr.bf16.mxu1 %v2537_v44  ;;  %v2461_v36 = vmul.bf16 1065369472, %v4176_v32  ;;  %4199 = vpow.bf16 %v3397_v28  ;;  %v2536_v27 = vmul.bf16 %v2455_v52, %v6065_v18 }
 0x2d4   :  { %v4180_v17 = vpop.eup %4179  ;;  %4201 = vrcp.bf16 %v2353_v6  ;;  %v2350_v51 = vadd.bf16 1065369472, %v4178_v63 }
 0x2d5   :  { %v4182_v58 = vpop.eup %4181  ;;  %2938 = vmatmul.mubr.bf16.gmra.mrb[172].mxu0 %v2534_v56  ;;  %v2539_v41 = vmul.bf16 %v2461_v36, %v6079_v22  ;;  %v2352_v47 = vadd.bf16 1065369472, %v4180_v17  ;;  %4203 = vpow.bf16 %v3394_v31 }
 0x2d6   :  { %v4184_v45 = vpop.eup %4183  ;;  %4205 = vrcp.bf16 %v2350_v51  ;;  %v2355_v24 = vadd.bf16 1065369472, %v4182_v58 }
 0x2d7   :  { %v4186_v10 = vpop.eup %4185  ;;  %2945 = vmatprep.mubr.bf16.mxu0 %v2539_v41  ;;  %4207 = vrcp.bf16 %v2352_v47  ;;  %v2357_v19 = vadd.bf16 1065369472, %v4184_v45 }
 0x2d8   :  { %v4188_v37 = vpop.eup %4187  ;;  %4209 = vrcp.bf16 %v2355_v24  ;;  %v2354_v29 = vadd.bf16 1065369472, %v4186_v10 }
 0x2d9   :  { %v4190_v48 = vpop.eup %4189  ;;  %4211 = vrcp.bf16 %v2357_v19  ;;  %v2356_v2 = vadd.bf16 1065369472, %v4188_v37 }
 0x2da   :  { %v4192_v53 = vpop.eup %4191  ;;  %3099 = vmatmul.mubr.bf16.gmra.mrb[172].mxu1 %v2536_v27  ;;  %v2465_v22 = vmul.bf16 1065369472, %v4190_v48  ;;  %4213 = vrcp.bf16 %v2354_v29 }
 0x2db   :  { %v4194_v60 = vpop.eup %4193  ;;  %v2459_v5 = vmul.bf16 1065369472, %v4192_v53  ;;  %4215 = vpow.bf16 %v3396_v61 }
 0x2dc   :  { %v4196_v39 = vpop.eup %4195  ;;  %v2541_v46 = vmul.bf16 %v2465_v22, %v6086_v4  ;;  %v2463_v8 = vmul.bf16 1065369472, %v4194_v60  ;;  %4217 = vrcp.bf16 %v2356_v2 }
 0x2dd   :  { %v4198_v20 = vpop.eup %4197  ;;  %v2538_v18 = vmul.bf16 %v2459_v5, %v6094_v9  ;;  %v2469_v49 = vmul.bf16 1065369472, %v4196_v39 }
 0x2de   :  { %v4200_v30 = vpop.eup %4199  ;;  %3106 = vmatprep.mubr.bf16.mxu1 %v2541_v46  ;;  %v2359_v25 = vadd.bf16 1065369472, %v4198_v20  ;;  %v2540_v59 = vmul.bf16 %v2463_v8, %v6102_v23 }
 0x2df   :  { %v4202_v21 = vpop.eup %4201  ;;  %2946 = vmatmul.mubr.bf16.gmra.mrb[176].mxu0 %v2538_v18  ;;  %v2543_v55 = vmul.bf16 %v2469_v49, %v6107_v34  ;;  %v2361_v42 = vadd.bf16 1065369472, %v4200_v30 }
 0x2e0   :  { %v4204_v26 = vpop.eup %4203  ;;  %v2473_v13 = vmul.bf16 1065369472, %v4202_v21  ;;  %4219 = vrcp.bf16 %v2359_v25 }
 0x2e1   :  { %v4206_v4 = vpop.eup %4205  ;;  %2953 = vmatprep.mubr.bf16.mxu0 %v2543_v55  ;;  %4221 = vrcp.bf16 %v2361_v42  ;;  %v2358_v7 = vadd.bf16 1065369472, %v4204_v26 }
 0x2e2   :  { %v4208_v9 = vpop.eup %4207  ;;  %3107 = vmatmul.mubr.bf16.gmra.mrb[176].mxu1 %v2540_v59  ;;  %v2545_v43 = vmul.bf16 %v2473_v13, %v6115_v1  ;;  %v2467_v44 = vmul.bf16 1065369472, %v4206_v4 }
 0x2e3   :  { %v4210_v35 = vpop.eup %4209  ;;  %4223 = vrcp.bf16 %v2358_v7  ;;  %v2471_v34 = vmul.bf16 1065369472, %v4208_v9 }
 0x2e4   :  { %v4212_v28 = vpop.eup %4211  ;;  %3114 = vmatprep.mubr.bf16.mxu1 %v2545_v43  ;;  %v2477_v14 = vmul.bf16 1065369472, %v4210_v35  ;;  %v2542_v62 = vmul.bf16 %v2467_v44, %v6125_v16 }
 0x2e5   :  { %v2481_v23 = vmul.bf16 1065369472, %v4212_v28  ;;  %v4214_v11 = vpop.eup %4213  ;;  %v2544_v6 = vmul.bf16 %v2471_v34, %v6130_v12 }
 0x2e6   :  { %v2547_v38 = vmul.bf16 %v2477_v14, %v6149_v57  ;;  %v4216_v31 = vpop.eup %4215  ;;  %v2475_v56 = vmul.bf16 1065369472, %v4214_v11 }
 0x2e7   :  { %2954 = vmatmul.mubr.bf16.gmra.mrb[180].mxu0 %v2542_v62  ;;  %v2549_v32 = vmul.bf16 %v2481_v23, %v6154_v40  ;;  %v2360_v1 = vadd.bf16 1065369472, %v4216_v31  ;;  %v4218_v63 = vpop.eup %4217 }
 0x2e8   :  { %2961 = vmatprep.mubr.bf16.mxu0 %v2547_v38  ;;  %v2479_v16 = vmul.bf16 1065369472, %v4218_v63  ;;  %v2546_v51 = vmul.bf16 %v2475_v56, %v6136_v33 }
 0x2e9   :  { %4225 = vrcp.bf16 %v2360_v1 }
 0x2ea   :  { %3115 = vmatmul.mubr.bf16.gmra.mrb[180].mxu1 %v2544_v6  ;;  %v2548_v40 = vmul.bf16 %v2479_v16, %v6141_v3 }
 0x2eb   :  { %v4220_v36 = vpop.eup %4219  ;;  %3122 = vmatprep.mubr.bf16.mxu1 %v2549_v32 }
 0x2ec   :  { %v4222_v17 = vpop.eup %4221  ;;  %v2485_v52 = vmul.bf16 1065369472, %v4220_v36 }
 0x2ed   :  { %v2489_v57 = vmul.bf16 1065369472, %v4222_v17 }
 0x2ee   :  { %v4224_v58 = vpop.eup %4223  ;;  %v2551_v41 = vmul.bf16 %v2485_v52, %v6183_v0  ;;  %v6248_v0 = vld [vmem:[%s6298_s4] ss:$0 sm:$0xff]  ;;  %s4354_s4 = smov [#allocation10]  }
 0x2ef   :  { %2962 = vmatmul.mubr.bf16.gmra.mrb[184].mxu0 %v2546_v51  ;;  %v2553_v12 = vmul.bf16 %v2489_v57, %v6189_v54  ;;  %v2483_v47 = vmul.bf16 1065369472, %v4224_v58  ;;  %s3176_s17 = sshll.u32 %s4354_s4, 4  ;;  %s3177_s17 = int_to_ptr.vmem [resolvable:$true] %s3176_s17 }
 0x2f0   :  { %2969 = vmatprep.mubr.bf16.mxu0 %v2551_v41  ;;  %s4315_s18 = scalar_lea.vmem %s3177_s17, 4096  ;;  %p4320_p5 = scmp.lt.s32.totalorder %s3177_s17, %s3177_s17 }
 0x2f1   :  { %v2550_v24 = vmul.bf16 %v2483_v47, %v6168_v15  ;;  %p4316_p4 = scmp.ne.s32.totalorder %s3177_s17, %s4315_s18  ;;  %p4321_p6 = scmp.lt.s32.totalorder %s4315_s18, %s4315_s18 }
 0x2f2   :  { %3123 = vmatmul.mubr.bf16.gmra.mrb[184].mxu1 %v2548_v40 }
 0x2f3   :  { %3130 = vmatprep.mubr.bf16.mxu1 %v2553_v12  ;;  %p4322_p7 = por %p4321_p6, %p4320_p5 }
 0x2f4   :  { %v4226_v45 = vpop.eup %4225 }
 0x2f5   :  { %v2487_v10 = vmul.bf16 1065369472, %v4226_v45  ;;  %p4323_p8 = pnand %p4322_p7, %p4316_p4 }
 0x2f7   :  { %2970 = vmatmul.mubr.bf16.gmra.mrb[188].mxu0 %v2550_v24  ;;  %v2552_v33 = vmul.bf16 %v2487_v10, %v6176_v50 }
 0x2fa   :  { %3131 = vmatmul.mubr.bf16.gmra.mrb[188].mxu1 %v2552_v33 }
 0x30a   :  { %v3447_v19 = vpop.f32.mrb[128].mxu0 }
 0x30b   :  { %v3559_v37 = vpop.f32.mrb[128].mxu1  ;;  %v3448_v3 = vpop.f32.mrb[129].mxu0 }
 0x30c   :  { %v3449_v54 = vadd.f32 %v3448_v3, %v3447_v19  ;;  %v3560_v27 = vpop.f32.mrb[129].mxu1  ;;  %v3450_v29 = vpop.f32.mrb[130].mxu0 }
 0x30d   :  { %v3561_v61 = vadd.f32 %v3560_v27, %v3559_v37  ;;  %v3562_v48 = vpop.f32.mrb[130].mxu1  ;;  %v3451_v53 = vpop.f32.mrb[131].mxu0 }
 0x30e   :  { %v2852_v15 = vadd.f32 %v3449_v54, %v6248_v0  ;;  %v3452_v22 = vadd.f32 %v3451_v53, %v3450_v29  ;;  %v3563_v2 = vpop.f32.mrb[131].mxu1 }
 0x30f   :  { %v3564_v50 = vadd.f32 %v3563_v2, %v3562_v48 }
 0x310   :  { %v3013_v60 = vadd.f32 %v3561_v61, %v2852_v15  ;;  %v2855_v5 = vadd.f32 %v3452_v22, %v6248_v0 }
 0x312   :  { %3139 = vst [vmem:[#allocation10] sm:$0xff] %v3013_v60  ;;  %v3016_v39 = vadd.f32 %v3564_v50, %v2855_v5 }
 0x314   :  { %3140 = vst [vmem:[#allocation10 + $0x8] sm:$0xff] %v3016_v39 }
 0x31e   :  { %v3453_v46 = vpop.f32.mrb[132].mxu0 }
 0x31f   :  { %v3454_v8 = vpop.f32.mrb[133].mxu0 }
 0x320   :  { %v3455_v20 = vadd.f32 %v3454_v8, %v3453_v46  ;;  %v3456_v18 = vpop.f32.mrb[134].mxu0 }
 0x321   :  { %v3565_v49 = vpop.f32.mrb[132].mxu1  ;;  %v3457_v30 = vpop.f32.mrb[135].mxu0 }
 0x322   :  { %v2860_v25 = vadd.f32 %v3455_v20, %v6248_v0  ;;  %v3566_v21 = vpop.f32.mrb[133].mxu1  ;;  %v3458_v55 = vadd.f32 %v3457_v30, %v3456_v18 }
 0x323   :  { %v3567_v42 = vadd.f32 %v3566_v21, %v3565_v49  ;;  %v3568_v26 = vpop.f32.mrb[134].mxu1 }
 0x324   :  { %v2863_v59 = vadd.f32 %v3458_v55, %v6248_v0  ;;  %v3569_v13 = vpop.f32.mrb[135].mxu1 }
 0x325   :  { %v3021_v4 = vadd.f32 %v3567_v42, %v2860_v25  ;;  %v3570_v7 = vadd.f32 %v3569_v13, %v3568_v26 }
 0x327   :  { %3141 = vst [vmem:[#allocation10 + $0x10] sm:$0xff] %v3021_v4  ;;  %v3024_v9 = vadd.f32 %v3570_v7, %v2863_v59 }
 0x329   :  { %3142 = vst [vmem:[#allocation10 + $0x18] sm:$0xff] %v3024_v9 }
 0x32e   :  { %v3459_v43 = vpop.f32.mrb[136].mxu0 }
 0x32f   :  { %v3571_v44 = vpop.f32.mrb[136].mxu1  ;;  %v3460_v35 = vpop.f32.mrb[137].mxu0 }
 0x330   :  { %v3461_v28 = vadd.f32 %v3460_v35, %v3459_v43  ;;  %v3572_v34 = vpop.f32.mrb[137].mxu1  ;;  %v3462_v14 = vpop.f32.mrb[138].mxu0 }
 0x331   :  { %v3573_v62 = vadd.f32 %v3572_v34, %v3571_v44  ;;  %v3574_v23 = vpop.f32.mrb[138].mxu1  ;;  %v3463_v11 = vpop.f32.mrb[139].mxu0 }
 0x332   :  { %v2868_v38 = vadd.f32 %v3461_v28, %v6248_v0  ;;  %v3464_v31 = vadd.f32 %v3463_v11, %v3462_v14  ;;  %v3575_v32 = vpop.f32.mrb[139].mxu1 }
 0x333   :  { %v3576_v6 = vadd.f32 %v3575_v32, %v3574_v23 }
 0x334   :  { %v3029_v1 = vadd.f32 %v3573_v62, %v2868_v38  ;;  %v2871_v63 = vadd.f32 %v3464_v31, %v6248_v0 }
 0x336   :  { %3143 = vst [vmem:[#allocation10 + $0x20] sm:$0xff] %v3029_v1  ;;  %v3032_v56 = vadd.f32 %v3576_v6, %v2871_v63 }
 0x338   :  { %3144 = vst [vmem:[#allocation10 + $0x28] sm:$0xff] %v3032_v56 }
 0x343   :  { %v3465_v36 = vpop.f32.mrb[140].mxu0 }
 0x344   :  { %v3577_v17 = vpop.f32.mrb[140].mxu1  ;;  %v3466_v16 = vpop.f32.mrb[141].mxu0 }
 0x345   :  { %v3467_v52 = vadd.f32 %v3466_v16, %v3465_v36  ;;  %v3578_v51 = vpop.f32.mrb[141].mxu1  ;;  %v3468_v57 = vpop.f32.mrb[142].mxu0 }
 0x346   :  { %v3579_v58 = vadd.f32 %v3578_v51, %v3577_v17  ;;  %v3580_v41 = vpop.f32.mrb[142].mxu1  ;;  %v3469_v12 = vpop.f32.mrb[143].mxu0 }
 0x347   :  { %v2876_v40 = vadd.f32 %v3467_v52, %v6248_v0  ;;  %v3470_v47 = vadd.f32 %v3469_v12, %v3468_v57  ;;  %v3581_v45 = vpop.f32.mrb[143].mxu1 }
 0x348   :  { %v3582_v24 = vadd.f32 %v3581_v45, %v3580_v41 }
 0x349   :  { %v3037_v10 = vadd.f32 %v3579_v58, %v2876_v40  ;;  %v2879_v33 = vadd.f32 %v3470_v47, %v6248_v0 }
 0x34b   :  { %3145 = vst [vmem:[#allocation10 + $0x30] sm:$0xff] %v3037_v10  ;;  %v3040_v19 = vadd.f32 %v3582_v24, %v2879_v33 }
 0x34d   :  { %3146 = vst [vmem:[#allocation10 + $0x38] sm:$0xff] %v3040_v19 }
 0x352   :  { %v3471_v37 = vpop.f32.mrb[144].mxu0 }
 0x353   :  { %v3472_v3 = vpop.f32.mrb[145].mxu0 }
 0x354   :  { %v3473_v54 = vadd.f32 %v3472_v3, %v3471_v37  ;;  %v3474_v27 = vpop.f32.mrb[146].mxu0 }
 0x355   :  { %v3475_v29 = vpop.f32.mrb[147].mxu0 }
 0x356   :  { %v3476_v61 = vadd.f32 %v3475_v29, %v3474_v27  ;;  %v2884_v53 = vadd.f32 %v3473_v54, %v6248_v0 }
 0x358   :  { %v2887_v50 = vadd.f32 %v3476_v61, %v6248_v0 }
 0x35a   :  { %v3583_v48 = vpop.f32.mrb[144].mxu1 }
 0x35b   :  { %v3584_v15 = vpop.f32.mrb[145].mxu1 }
 0x35c   :  { %v3585_v22 = vadd.f32 %v3584_v15, %v3583_v48  ;;  %v3586_v2 = vpop.f32.mrb[146].mxu1 }
 0x35d   :  { %v3587_v60 = vpop.f32.mrb[147].mxu1 }
 0x35e   :  { %v3045_v5 = vadd.f32 %v3585_v22, %v2884_v53  ;;  %v3588_v39 = vadd.f32 %v3587_v60, %v3586_v2 }
 0x360   :  { %3147 = vst [vmem:[#allocation10 + $0x40] sm:$0xff] %v3045_v5  ;;  %v3048_v46 = vadd.f32 %v3588_v39, %v2887_v50 }
 0x362   :  { %3148 = vst [vmem:[#allocation10 + $0x48] sm:$0xff] %v3048_v46 }
 0x366   :  { %v3477_v8 = vpop.f32.mrb[148].mxu0 }
 0x367   :  { %v3589_v20 = vpop.f32.mrb[148].mxu1  ;;  %v3478_v18 = vpop.f32.mrb[149].mxu0 }
 0x368   :  { %v3479_v49 = vadd.f32 %v3478_v18, %v3477_v8  ;;  %v3590_v30 = vpop.f32.mrb[149].mxu1  ;;  %v3480_v25 = vpop.f32.mrb[150].mxu0 }
 0x369   :  { %v3591_v21 = vadd.f32 %v3590_v30, %v3589_v20  ;;  %v3592_v55 = vpop.f32.mrb[150].mxu1  ;;  %v3481_v42 = vpop.f32.mrb[151].mxu0 }
 0x36a   :  { %v2892_v26 = vadd.f32 %v3479_v49, %v6248_v0  ;;  %v3482_v59 = vadd.f32 %v3481_v42, %v3480_v25  ;;  %v3593_v13 = vpop.f32.mrb[151].mxu1 }
 0x36b   :  { %v3594_v4 = vadd.f32 %v3593_v13, %v3592_v55 }
 0x36c   :  { %v3053_v7 = vadd.f32 %v3591_v21, %v2892_v26  ;;  %v2895_v9 = vadd.f32 %v3482_v59, %v6248_v0 }
 0x36e   :  { %3149 = vst [vmem:[#allocation10 + $0x50] sm:$0xff] %v3053_v7  ;;  %v3056_v43 = vadd.f32 %v3594_v4, %v2895_v9 }
 0x370   :  { %3150 = vst [vmem:[#allocation10 + $0x58] sm:$0xff] %v3056_v43 }
 0x37a   :  { %v3483_v44 = vpop.f32.mrb[152].mxu0 }
 0x37b   :  { %v3595_v35 = vpop.f32.mrb[152].mxu1  ;;  %v3484_v28 = vpop.f32.mrb[153].mxu0 }
 0x37c   :  { %v3485_v34 = vadd.f32 %v3484_v28, %v3483_v44  ;;  %v3596_v14 = vpop.f32.mrb[153].mxu1  ;;  %v3486_v62 = vpop.f32.mrb[154].mxu0 }
 0x37d   :  { %v3597_v23 = vadd.f32 %v3596_v14, %v3595_v35  ;;  %v3598_v11 = vpop.f32.mrb[154].mxu1  ;;  %v3487_v38 = vpop.f32.mrb[155].mxu0 }
 0x37e   :  { %v2900_v31 = vadd.f32 %v3485_v34, %v6248_v0  ;;  %v3488_v32 = vadd.f32 %v3487_v38, %v3486_v62  ;;  %v3599_v6 = vpop.f32.mrb[155].mxu1 }
 0x37f   :  { %v3600_v1 = vadd.f32 %v3599_v6, %v3598_v11 }
 0x380   :  { %v3061_v63 = vadd.f32 %v3597_v23, %v2900_v31  ;;  %v2903_v56 = vadd.f32 %v3488_v32, %v6248_v0 }
 0x382   :  { %3151 = vst [vmem:[#allocation10 + $0x60] sm:$0xff] %v3061_v63  ;;  %v3064_v36 = vadd.f32 %v3600_v1, %v2903_v56 }
 0x384   :  { %3152 = vst [vmem:[#allocation10 + $0x68] sm:$0xff] %v3064_v36 }
 0x385   :  { %v3489_v17 = vpop.f32.mrb[156].mxu0 }
 0x386   :  { %v3601_v16 = vpop.f32.mrb[156].mxu1  ;;  %v3490_v52 = vpop.f32.mrb[157].mxu0 }
 0x387   :  { %v3491_v51 = vadd.f32 %v3490_v52, %v3489_v17  ;;  %v3602_v57 = vpop.f32.mrb[157].mxu1  ;;  %v3492_v58 = vpop.f32.mrb[158].mxu0 }
 0x388   :  { %v3603_v41 = vadd.f32 %v3602_v57, %v3601_v16  ;;  %v3604_v12 = vpop.f32.mrb[158].mxu1  ;;  %v3493_v40 = vpop.f32.mrb[159].mxu0 }
 0x389   :  { %v2908_v47 = vadd.f32 %v3491_v51, %v6248_v0  ;;  %v3494_v45 = vadd.f32 %v3493_v40, %v3492_v58  ;;  %v3605_v24 = vpop.f32.mrb[159].mxu1 }
 0x38a   :  { %v3606_v10 = vadd.f32 %v3605_v24, %v3604_v12 }
 0x38b   :  { %v3069_v33 = vadd.f32 %v3603_v41, %v2908_v47  ;;  %v2911_v19 = vadd.f32 %v3494_v45, %v6248_v0 }
 0x38d   :  { %3153 = vst [vmem:[#allocation10 + $0x70] sm:$0xff] %v3069_v33  ;;  %v3072_v37 = vadd.f32 %v3606_v10, %v2911_v19 }
 0x38e   :  { %v3495_v3 = vpop.f32.mrb[160].mxu0 }
 0x38f   :  { %3154 = vst [vmem:[#allocation10 + $0x78] sm:$0xff] %v3072_v37  ;;  %v3496_v54 = vpop.f32.mrb[161].mxu0 }
 0x390   :  { %v3497_v27 = vadd.f32 %v3496_v54, %v3495_v3  ;;  %v3498_v29 = vpop.f32.mrb[162].mxu0 }
 0x391   :  { %v3499_v61 = vpop.f32.mrb[163].mxu0 }
 0x392   :  { %v3500_v48 = vadd.f32 %v3499_v61, %v3498_v29  ;;  %v2916_v15 = vadd.f32 %v3497_v27, %v6248_v0 }
 0x394   :  { %v2919_v60 = vadd.f32 %v3500_v48, %v6248_v0 }
 0x395   :  { %v3607_v53 = vpop.f32.mrb[160].mxu1 }
 0x396   :  { %v3608_v22 = vpop.f32.mrb[161].mxu1 }
 0x397   :  { %v3609_v2 = vadd.f32 %v3608_v22, %v3607_v53  ;;  %v3610_v50 = vpop.f32.mrb[162].mxu1 }
 0x398   :  { %v3611_v5 = vpop.f32.mrb[163].mxu1  ;;  %v3501_v39 = vpop.f32.mrb[164].mxu0 }
 0x399   :  { %v3077_v46 = vadd.f32 %v3609_v2, %v2916_v15  ;;  %v3612_v8 = vadd.f32 %v3611_v5, %v3610_v50  ;;  %v3502_v20 = vpop.f32.mrb[165].mxu0 }
 0x39a   :  { %v3503_v18 = vadd.f32 %v3502_v20, %v3501_v39  ;;  %v3504_v49 = vpop.f32.mrb[166].mxu0 }
 0x39b   :  { %3155 = vst [vmem:[#allocation10 + $0x80] sm:$0xff] %v3077_v46  ;;  %v3080_v30 = vadd.f32 %v3612_v8, %v2919_v60  ;;  %v3505_v25 = vpop.f32.mrb[167].mxu0 }
 0x39c   :  { %v3506_v21 = vadd.f32 %v3505_v25, %v3504_v49  ;;  %v2924_v42 = vadd.f32 %v3503_v18, %v6248_v0 }
 0x39d   :  { %3156 = vst [vmem:[#allocation10 + $0x88] sm:$0xff] %v3080_v30  ;;  %v3613_v55 = vpop.f32.mrb[164].mxu1 }
 0x39e   :  { %v3614_v26 = vpop.f32.mrb[165].mxu1  ;;  %v2927_v4 = vadd.f32 %v3506_v21, %v6248_v0 }
 0x39f   :  { %v3615_v59 = vadd.f32 %v3614_v26, %v3613_v55  ;;  %v3616_v13 = vpop.f32.mrb[166].mxu1 }
 0x3a0   :  { %v3617_v7 = vpop.f32.mrb[167].mxu1  ;;  %v3507_v9 = vpop.f32.mrb[168].mxu0 }
 0x3a1   :  { %v3085_v43 = vadd.f32 %v3615_v59, %v2924_v42  ;;  %v3618_v44 = vadd.f32 %v3617_v7, %v3616_v13  ;;  %v3508_v35 = vpop.f32.mrb[169].mxu0 }
 0x3a2   :  { %v3509_v28 = vadd.f32 %v3508_v35, %v3507_v9  ;;  %v3510_v34 = vpop.f32.mrb[170].mxu0 }
 0x3a3   :  { %3157 = vst [vmem:[#allocation10 + $0x90] sm:$0xff] %v3085_v43  ;;  %v3088_v14 = vadd.f32 %v3618_v44, %v2927_v4  ;;  %v3511_v62 = vpop.f32.mrb[171].mxu0 }
 0x3a4   :  { %v3512_v23 = vadd.f32 %v3511_v62, %v3510_v34  ;;  %v2932_v38 = vadd.f32 %v3509_v28, %v6248_v0 }
 0x3a5   :  { %3158 = vst [vmem:[#allocation10 + $0x98] sm:$0xff] %v3088_v14  ;;  %v3619_v11 = vpop.f32.mrb[168].mxu1 }
 0x3a6   :  { %v3620_v31 = vpop.f32.mrb[169].mxu1  ;;  %v2935_v1 = vadd.f32 %v3512_v23, %v6248_v0 }
 0x3a7   :  { %v3621_v32 = vadd.f32 %v3620_v31, %v3619_v11  ;;  %v3622_v6 = vpop.f32.mrb[170].mxu1 }
 0x3a8   :  { %v3623_v63 = vpop.f32.mrb[171].mxu1  ;;  %v3513_v56 = vpop.f32.mrb[172].mxu0 }
 0x3a9   :  { %v3093_v36 = vadd.f32 %v3621_v32, %v2932_v38  ;;  %v3624_v17 = vadd.f32 %v3623_v63, %v3622_v6  ;;  %v3514_v16 = vpop.f32.mrb[173].mxu0 }
 0x3aa   :  { %v3515_v52 = vadd.f32 %v3514_v16, %v3513_v56  ;;  %v3516_v51 = vpop.f32.mrb[174].mxu0 }
 0x3ab   :  { %3159 = vst [vmem:[#allocation10 + $0xa0] sm:$0xff] %v3093_v36  ;;  %v3096_v57 = vadd.f32 %v3624_v17, %v2935_v1  ;;  %v3517_v58 = vpop.f32.mrb[175].mxu0 }
 0x3ac   :  { %v3518_v41 = vadd.f32 %v3517_v58, %v3516_v51  ;;  %v2940_v40 = vadd.f32 %v3515_v52, %v6248_v0 }
 0x3ad   :  { %3160 = vst [vmem:[#allocation10 + $0xa8] sm:$0xff] %v3096_v57  ;;  %v3625_v12 = vpop.f32.mrb[172].mxu1 }
 0x3ae   :  { %v3626_v47 = vpop.f32.mrb[173].mxu1  ;;  %v2943_v10 = vadd.f32 %v3518_v41, %v6248_v0 }
 0x3af   :  { %v3627_v45 = vadd.f32 %v3626_v47, %v3625_v12  ;;  %v3628_v24 = vpop.f32.mrb[174].mxu1 }
 0x3b0   :  { %v3629_v33 = vpop.f32.mrb[175].mxu1 }
 0x3b1   :  { %v3101_v19 = vadd.f32 %v3627_v45, %v2940_v40  ;;  %v3630_v37 = vadd.f32 %v3629_v33, %v3628_v24 }
 0x3b2   :  { %v3519_v3 = vpop.f32.mrb[176].mxu0 }
 0x3b3   :  { %3161 = vst [vmem:[#allocation10 + $0xb0] sm:$0xff] %v3101_v19  ;;  %v3104_v54 = vadd.f32 %v3630_v37, %v2943_v10  ;;  %v3520_v27 = vpop.f32.mrb[177].mxu0 }
 0x3b4   :  { %v3521_v29 = vadd.f32 %v3520_v27, %v3519_v3  ;;  %v3522_v61 = vpop.f32.mrb[178].mxu0 }
 0x3b5   :  { %3162 = vst [vmem:[#allocation10 + $0xb8] sm:$0xff] %v3104_v54  ;;  %v3631_v48 = vpop.f32.mrb[176].mxu1  ;;  %v3523_v53 = vpop.f32.mrb[179].mxu0 }
 0x3b6   :  { %v2948_v15 = vadd.f32 %v3521_v29, %v6248_v0  ;;  %v3632_v22 = vpop.f32.mrb[177].mxu1  ;;  %v3524_v2 = vadd.f32 %v3523_v53, %v3522_v61 }
 0x3b7   :  { %v3633_v50 = vadd.f32 %v3632_v22, %v3631_v48  ;;  %v3634_v60 = vpop.f32.mrb[178].mxu1 }
 0x3b8   :  { %v2951_v5 = vadd.f32 %v3524_v2, %v6248_v0  ;;  %v3635_v39 = vpop.f32.mrb[179].mxu1 }
 0x3b9   :  { %v3109_v46 = vadd.f32 %v3633_v50, %v2948_v15  ;;  %v3636_v8 = vadd.f32 %v3635_v39, %v3634_v60 }
 0x3ba   :  { %v3525_v20 = vpop.f32.mrb[180].mxu0 }
 0x3bb   :  { %3163 = vst [vmem:[#allocation10 + $0xc0] sm:$0xff] %v3109_v46  ;;  %v3112_v18 = vadd.f32 %v3636_v8, %v2951_v5  ;;  %v3526_v49 = vpop.f32.mrb[181].mxu0 }
 0x3bc   :  { %v3527_v30 = vadd.f32 %v3526_v49, %v3525_v20  ;;  %v3528_v25 = vpop.f32.mrb[182].mxu0 }
 0x3bd   :  { %3164 = vst [vmem:[#allocation10 + $0xc8] sm:$0xff] %v3112_v18  ;;  %v3637_v21 = vpop.f32.mrb[180].mxu1  ;;  %v3529_v55 = vpop.f32.mrb[183].mxu0 }
 0x3be   :  { %v2956_v42 = vadd.f32 %v3527_v30, %v6248_v0  ;;  %v3638_v26 = vpop.f32.mrb[181].mxu1  ;;  %v3530_v59 = vadd.f32 %v3529_v55, %v3528_v25 }
 0x3bf   :  { %v3639_v13 = vadd.f32 %v3638_v26, %v3637_v21  ;;  %v3640_v4 = vpop.f32.mrb[182].mxu1 }
 0x3c0   :  { %v2959_v7 = vadd.f32 %v3530_v59, %v6248_v0  ;;  %v3641_v9 = vpop.f32.mrb[183].mxu1 }
 0x3c1   :  { %v3117_v43 = vadd.f32 %v3639_v13, %v2956_v42  ;;  %v3642_v44 = vadd.f32 %v3641_v9, %v3640_v4 }
 0x3c2   :  { %v3531_v35 = vpop.f32.mrb[184].mxu0 }
 0x3c3   :  { %3165 = vst [vmem:[#allocation10 + $0xd0] sm:$0xff] %v3117_v43  ;;  %v3120_v28 = vadd.f32 %v3642_v44, %v2959_v7  ;;  %v3532_v34 = vpop.f32.mrb[185].mxu0 }
 0x3c4   :  { %v3533_v14 = vadd.f32 %v3532_v34, %v3531_v35  ;;  %v3534_v62 = vpop.f32.mrb[186].mxu0 }
 0x3c5   :  { %3166 = vst [vmem:[#allocation10 + $0xd8] sm:$0xff] %v3120_v28  ;;  %v3643_v23 = vpop.f32.mrb[184].mxu1  ;;  %v3535_v11 = vpop.f32.mrb[187].mxu0 }
 0x3c6   :  { %v2964_v38 = vadd.f32 %v3533_v14, %v6248_v0  ;;  %v3644_v31 = vpop.f32.mrb[185].mxu1  ;;  %v3536_v32 = vadd.f32 %v3535_v11, %v3534_v62 }
 0x3c7   :  { %v3645_v6 = vadd.f32 %v3644_v31, %v3643_v23  ;;  %v3646_v1 = vpop.f32.mrb[186].mxu1 }
 0x3c8   :  { %v2967_v63 = vadd.f32 %v3536_v32, %v6248_v0  ;;  %v3647_v56 = vpop.f32.mrb[187].mxu1 }
 0x3c9   :  { %v3125_v36 = vadd.f32 %v3645_v6, %v2964_v38  ;;  %v3648_v17 = vadd.f32 %v3647_v56, %v3646_v1 }
 0x3ca   :  { %v3537_v16 = vpop.f32.mrb[188].mxu0 }
 0x3cb   :  { %3167 = vst [vmem:[#allocation10 + $0xe0] sm:$0xff] %v3125_v36  ;;  %v3128_v52 = vadd.f32 %v3648_v17, %v2967_v63  ;;  %v3538_v51 = vpop.f32.mrb[189].mxu0 }
 0x3cc   :  { %v3539_v57 = vadd.f32 %v3538_v51, %v3537_v16  ;;  %v3540_v58 = vpop.f32.mrb[190].mxu0 }
 0x3cd   :  { %3168 = vst [vmem:[#allocation10 + $0xe8] sm:$0xff] %v3128_v52  ;;  %v3649_v41 = vpop.f32.mrb[188].mxu1  ;;  %v3541_v12 = vpop.f32.mrb[191].mxu0 }
 0x3ce   :  { %v2972_v40 = vadd.f32 %v3539_v57, %v6248_v0  ;;  %v3650_v47 = vpop.f32.mrb[189].mxu1  ;;  %v3542_v45 = vadd.f32 %v3541_v12, %v3540_v58 }
 0x3cf   :  { %v3651_v24 = vadd.f32 %v3650_v47, %v3649_v41  ;;  %v3652_v10 = vpop.f32.mrb[190].mxu1 }
 0x3d0   :  { %v2975_v33 = vadd.f32 %v3542_v45, %v6248_v0  ;;  %v3653_v19 = vpop.f32.mrb[191].mxu1 }
 0x3d1   :  { %v3133_v37 = vadd.f32 %v3651_v24, %v2972_v40  ;;  %v3654_v3 = vadd.f32 %v3653_v19, %v3652_v10 }
 0x3d3   :  { %3169 = vst [vmem:[#allocation10 + $0xf0] sm:$0xff] %v3133_v37  ;;  %v3136_v54 = vadd.f32 %v3654_v3, %v2975_v33 }
 0x3d5   :  { %3170 = vst [vmem:[#allocation10 + $0xf8] sm:$0xff] %v3136_v54 }
 0x3d6   :  { %4326 = shalt.err (!%p4323_p8)
}
 0x3d7   :  { %s4327_s21 = scalar_lea.hbm %s6299_s5, 4096 }
 0x3d8   :  { %p4328_p9 = scmp.ne.s32.totalorder %s6299_s5, %s4327_s21  ;;  %p4331_p10 = scmp.lt.u32.totalorder %s4327_s21, %s6299_s5 }
 0x3da   :  { %p4333_p11 = pnand %p4331_p10, %p4328_p9 }
 0x3dc   :  { %4336 = shalt.err (!%p4333_p11)
}
 0x3dd   :  { %s4355_s26 = smov 128   ;;  %s4356_s27 = smov 8  }
 0x3de   :  { %3182 = dma.vmem_to_hbm [thread:$0]  %s3177_s17, 4096, %s6299_s5, [#allocation4], %s4355_s26, %s4355_s26, %s4356_s27  }
 0x3df   :  { %4343 = dma.done.wait [#allocation4], 4096  }
 0x3e0   :  { %4344 = vsyncadd [#allocation4], 4294963200 }
 0x3e1   :  { %3186 = vsyncpa [#allocation3], 1 }
 0x3e2   :  { %3187 = vsyncpa [#allocation6], 1 }
 0x3e3   :  { %3188 = vsyncpa [#allocation9], 1 }
 0x3e4   :  { %3189 = vsyncpa [#allocation4], 1 }

</bundles_post_ra>
